<compile_context>
chip_gen: v5e
topology: v5e:2x2
jax: 0.10.0
libtpu: 0.0.40
codegen_flags: <defaults>
</compile_context>

<pallas_src>
import functools

import jax
import jax.numpy as jnp
import numpy as np
from jax.experimental import pallas as pl
from jax.experimental.pallas import tpu as pltpu

BN_EPS = 1e-5
F_PAD = 1024          # resnet18 head width 1000, padded to a lane multiple
H1 = 512
H2 = 64
TK = 512              # backbone reduction (Din) tile


def _round_up(x, m):
    return (x + m - 1) // m * m


def _fold_bn(w, b, gamma, beta, mean, var):
    """Fold eval-mode BatchNorm1d into the preceding Linear (f32)."""
    s = gamma * jax.lax.rsqrt(var + BN_EPS)
    return w * s[None, :], (b - mean) * s + beta


# ----------------------------------------------------------------------------
# Fused kernel:
#   grid = (M_tiles, K_tiles)        K = flattened-image dim (reduction)
#   per K-step:  acc_i += x_i_tile @ bw_tile     (both images, shared weight)
#   on last K-step: combine, BN-folded head, sigmoid, write [tm, 1] output.
# ----------------------------------------------------------------------------
def siamese_fused_kernel(
    x1_ref, x2_ref, bw_ref, bb_ref,
    w1_ref, b1_ref, w2_ref, b2_ref, w3_ref, b3_ref,
    o_ref, acc1_ref, acc2_ref,
):
    k = pl.program_id(1)

    @pl.when(k == 0)
    def _():
        acc1_ref[...] = jnp.zeros_like(acc1_ref)
        acc2_ref[...] = jnp.zeros_like(acc2_ref)

    bw = bw_ref[...]                                   # bf16 (TK, F_PAD), loaded once per K-tile
    acc1_ref[...] += jnp.dot(x1_ref[...], bw, preferred_element_type=jnp.float32)
    acc2_ref[...] += jnp.dot(x2_ref[...], bw, preferred_element_type=jnp.float32)

    @pl.when(k == pl.num_programs(1) - 1)
    def _():
        f1 = acc1_ref[...] + bb_ref[...]
        f2 = acc2_ref[...] + bb_ref[...]
        x = (f1 * f2).astype(jnp.bfloat16)             # combined features

        # Linear(1024->512) with folded BN, ReLU   (Dropout = identity, eval)
        h = jnp.dot(x, w1_ref[...], preferred_element_type=jnp.float32) + b1_ref[...]
        h = jnp.maximum(h, 0.0).astype(jnp.bfloat16)

        # Linear(512->64) with folded BN, Sigmoid
        h = jnp.dot(h, w2_ref[...], preferred_element_type=jnp.float32) + b2_ref[...]
        h = jax.nn.sigmoid(h)

        # Linear(64->1) + Sigmoid: VPU multiply + lane reduce (skip the MXU)
        o = jnp.sum(h * w3_ref[...], axis=-1, keepdims=True) + b3_ref[...]
        o_ref[...] = jax.nn.sigmoid(o)


# ----------------------------------------------------------------------------
# Wrapper
# ----------------------------------------------------------------------------
@jax.jit
def siamese_forward(img1, img2, params):
    B = img1.shape[0]
    x1 = img1.reshape(B, -1)
    x2 = img2.reshape(B, -1)
    d_in = x1.shape[1]

    din_pad = _round_up(d_in, TK)
    tm = 128 if B >= 128 else _round_up(B, 16)         # >=16 rows for bf16 sublane packing
    b_pad = _round_up(B, tm)

    def pad_x(x):
        x = x.astype(jnp.float32)
        x = jnp.pad(x, ((0, b_pad - B), (0, din_pad - d_in)))
        return x.astype(jnp.bfloat16)

    x1p, x2p = pad_x(x1), pad_x(x2)

    m_tiles = b_pad // tm
    k_tiles = din_pad // TK

    flops = int(2 * 2 * b_pad * din_pad * F_PAD
                + 2 * b_pad * F_PAD * H1 + 2 * b_pad * H1 * H2 + 2 * b_pad * H2)
    bytes_accessed = int(
        2 * b_pad * din_pad * 2 + din_pad * F_PAD * 2 + F_PAD * 4
        + F_PAD * H1 * 2 + H1 * 4 + H1 * H2 * 2 + H2 * 4 + H2 * 4 + 4
        + b_pad * 4)
    cost = pl.CostEstimate(flops=flops,
                           transcendentals=int(b_pad * (H2 + 1)),
                           bytes_accessed=bytes_accessed)

    grid_spec = pltpu.PrefetchScalarGridSpec(
        num_scalar_prefetch=0,
        grid=(m_tiles, k_tiles),
        in_specs=[
            pl.BlockSpec((tm, TK), lambda i, k: (i, k)),        # x1 tile
            pl.BlockSpec((tm, TK), lambda i, k: (i, k)),        # x2 tile
            pl.BlockSpec((TK, F_PAD), lambda i, k: (k, 0)),     # backbone weight tile
            pl.BlockSpec((1, F_PAD), lambda i, k: (0, 0)),      # backbone bias
            pl.BlockSpec((F_PAD, H1), lambda i, k: (0, 0)),     # w1 (BN folded, bf16)
            pl.BlockSpec((1, H1), lambda i, k: (0, 0)),         # b1 (BN folded)
            pl.BlockSpec((H1, H2), lambda i, k: (0, 0)),        # w2 (BN folded, bf16)
            pl.BlockSpec((1, H2), lambda i, k: (0, 0)),         # b2 (BN folded)
            pl.BlockSpec((1, H2), lambda i, k: (0, 0)),         # w3 row vector
            pl.BlockSpec((1, 1), lambda i, k: (0, 0)),          # b3
        ],
        out_specs=pl.BlockSpec((tm, 1), lambda i, k: (i, 0)),
        scratch_shapes=[pltpu.VMEM((tm, F_PAD), jnp.float32),   # acc for feat1
                        pltpu.VMEM((tm, F_PAD), jnp.float32)],  # acc for feat2
    )

    out = pl.pallas_call(
        siamese_fused_kernel,
        out_shape=jax.ShapeDtypeStruct((b_pad, 1), jnp.float32),
        grid_spec=grid_spec,
        compiler_params=pltpu.CompilerParams(
            dimension_semantics=("parallel", "arbitrary")),
        cost_estimate=cost,
    )(x1p, x2p,
      params["bw"], params["bb"],
      params["w1"], params["b1"],
      params["w2"], params["b2"],
      params["w3"], params["b3"])
    return out[:B]


# ----------------------------------------------------------------------------
# Parameters
# ----------------------------------------------------------------------------
def init_raw_params(key, d_in, out_features=1000):
    ks = jax.random.split(key, 8)
    scale = lambda fan_in: 1.0 / np.sqrt(fan_in)
    return {
        # backbone stand-in linear projection
        "bw": jax.random.normal(ks[0], (d_in, out_features), jnp.float32) * scale(d_in),
        "bb": jax.random.normal(ks[1], (out_features,), jnp.float32) * 0.01,
        # Linear(out_features, 512) + BatchNorm1d(512)
        "w1": jax.random.normal(ks[2], (out_features, H1), jnp.float32) * scale(out_features),
        "b1": jnp.zeros((H1,), jnp.float32),
        "g1": jnp.ones((H1,), jnp.float32),
        "beta1": jnp.zeros((H1,), jnp.float32),
        "m1": jax.random.normal(ks[3], (H1,), jnp.float32) * 0.01,
        "v1": jnp.ones((H1,), jnp.float32) + jax.random.uniform(ks[7], (H1,)) * 0.1,
        # Linear(512, 64) + BatchNorm1d(64)
        "w2": jax.random.normal(ks[4], (H1, H2), jnp.float32) * scale(H1),
        "b2": jnp.zeros((H2,), jnp.float32),
        "g2": jnp.ones((H2,), jnp.float32),
        "beta2": jnp.zeros((H2,), jnp.float32),
        "m2": jax.random.normal(ks[5], (H2,), jnp.float32) * 0.01,
        "v2": jnp.ones((H2,), jnp.float32),
        # Linear(64, 1)
        "w3": jax.random.normal(ks[6], (H2, 1), jnp.float32) * scale(H2),
        "b3": jnp.zeros((1,), jnp.float32),
    }


def prepare_params(raw, d_in):
    """Fold BN, pad feature dim 1000->1024 and Din->multiple of TK, cast to bf16."""
    din_pad = _round_up(d_in, TK)
    out_f = raw["bw"].shape[1]

    bw = jnp.zeros((din_pad, F_PAD), jnp.float32).at[:d_in, :out_f].set(raw["bw"])
    bb = jnp.zeros((1, F_PAD), jnp.float32).at[0, :out_f].set(raw["bb"])

    w1, b1 = _fold_bn(raw["w1"], raw["b1"], raw["g1"], raw["beta1"], raw["m1"], raw["v1"])
    w1p = jnp.zeros((F_PAD, H1), jnp.float32).at[:out_f, :].set(w1)

    w2, b2 = _fold_bn(raw["w2"], raw["b2"], raw["g2"], raw["beta2"], raw["m2"], raw["v2"])

    return {
        "bw": bw.astype(jnp.bfloat16),
        "bb": bb,
        "w1": w1p.astype(jnp.bfloat16),
        "b1": b1.reshape(1, H1),
        "w2": w2.astype(jnp.bfloat16),
        "b2": b2.reshape(1, H2),
        "w3": raw["w3"].reshape(1, H2).astype(jnp.float32),
        "b3": raw["b3"].reshape(1, 1),
    }


# ----------------------------------------------------------------------------
# Pure-JAX reference (same precision: bf16 matmul operands, f32 accumulation,
# eval-mode BatchNorm with running stats).
# ----------------------------------------------------------------------------
def reference_forward(img1, img2, raw):
    B = img1.shape[0]
    x1 = img1.reshape(B, -1).astype(jnp.bfloat16)
    x2 = img2.reshape(B, -1).astype(jnp.bfloat16)
    bw = raw["bw"].astype(jnp.bfloat16)
    f1 = jnp.dot(x1, bw, preferred_element_type=jnp.float32) + raw["bb"]
    f2 = jnp.dot(x2, bw, preferred_element_type=jnp.float32) + raw["bb"]
    x = f1 * f2

    w1, b1 = _fold_bn(raw["w1"], raw["b1"], raw["g1"], raw["beta1"], raw["m1"], raw["v1"])
    h = jnp.dot(x.astype(jnp.bfloat16), w1.astype(jnp.bfloat16),
                preferred_element_type=jnp.float32) + b1
    h = jnp.maximum(h, 0.0)

    w2, b2 = _fold_bn(raw["w2"], raw["b2"], raw["g2"], raw["beta2"], raw["m2"], raw["v2"])
    h = jnp.dot(h.astype(jnp.bfloat16), w2.astype(jnp.bfloat16),
                preferred_element_type=jnp.float32) + b2
    h = jax.nn.sigmoid(h)

    o = jnp.sum(h * raw["w3"].T, axis=-1, keepdims=True) + raw["b3"]
    return jax.nn.sigmoid(o)


if __name__ == "__main__":
    key = jax.random.PRNGKey(0)
    k_img1, k_img2, k_param = jax.random.split(key, 3)

    # Small shapes consistent with forward(): [b, 3, H, W] pairs of images.
    B, C, H, W = 2, 3, 16, 16
    img1 = jax.random.normal(k_img1, (B, C, H, W), jnp.float32)
    img2 = jax.random.normal(k_img2, (B, C, H, W), jnp.float32)

    d_in = C * H * W
    raw = init_raw_params(k_param, d_in=d_in, out_features=1000)
    params = prepare_params(raw, d_in)

    out = siamese_forward(img1, img2, params)
    out = jax.block_until_ready(out)

    ref = reference_forward(img1, img2, raw)
    assert out.shape == (B, 1), out.shape
    np.testing.assert_allclose(np.asarray(out), np.asarray(ref), rtol=2e-3, atol=1e-5)

    print("KERNEL_OK")
</pallas_src>

<mosaic_0001>
module attributes {stable_mosaic.version = 11 : i64} {
  func.func @siamese_fused_kernel(%arg0: i32, %arg1: i32, %arg2: memref<16x512xbf16, #tpu.memory_space<vmem>>, %arg3: memref<16x512xbf16, #tpu.memory_space<vmem>>, %arg4: memref<512x1024xbf16, #tpu.memory_space<vmem>>, %arg5: memref<1x1024xf32, #tpu.memory_space<vmem>>, %arg6: memref<1024x512xbf16, #tpu.memory_space<vmem>>, %arg7: memref<1x512xf32, #tpu.memory_space<vmem>>, %arg8: memref<512x64xbf16, #tpu.memory_space<vmem>>, %arg9: memref<1x64xf32, #tpu.memory_space<vmem>>, %arg10: memref<1x64xf32, #tpu.memory_space<vmem>>, %arg11: memref<1x1xf32, #tpu.memory_space<vmem>>, %arg12: memref<16x1xf32, #tpu.memory_space<vmem>>, %arg13: memref<16x1024xf32, #tpu.memory_space<vmem>>, %arg14: memref<16x1024xf32, #tpu.memory_space<vmem>>) attributes {dimension_semantics = [#tpu.dimension_semantics<parallel>, #tpu.dimension_semantics<arbitrary>], iteration_bounds = array<i64: 1, 2>, scalar_prefetch = 0 : i64, scratch_operands = 2 : i64, tpu.core_type = #tpu.core_type<tc>, window_params = [{transform_indices = @transform_0, window_bounds = array<i64: 16, 512>}, {transform_indices = @transform_1, window_bounds = array<i64: 16, 512>}, {transform_indices = @transform_2, window_bounds = array<i64: 512, 1024>}, {pipeline_mode = #tpu.pipeline_mode<synchronous>, transform_indices = @transform_3, window_bounds = array<i64: 1, 1024>}, {pipeline_mode = #tpu.pipeline_mode<synchronous>, transform_indices = @transform_4, window_bounds = array<i64: 1024, 512>}, {pipeline_mode = #tpu.pipeline_mode<synchronous>, transform_indices = @transform_5, window_bounds = array<i64: 1, 512>}, {pipeline_mode = #tpu.pipeline_mode<synchronous>, transform_indices = @transform_6, window_bounds = array<i64: 512, 64>}, {pipeline_mode = #tpu.pipeline_mode<synchronous>, transform_indices = @transform_7, window_bounds = array<i64: 1, 64>}, {pipeline_mode = #tpu.pipeline_mode<synchronous>, transform_indices = @transform_8, window_bounds = array<i64: 1, 64>}, {pipeline_mode = #tpu.pipeline_mode<synchronous>, transform_indices = @transform_9, window_bounds = array<i64: 1, 1>}, {transform_indices = @transform_10, window_bounds = array<i64: 16, 1>}]} {
    %c0_i32 = arith.constant 0 : i32
    %0 = arith.cmpi eq, %arg1, %c0_i32 : i32
    %1 = arith.extui %0 : i1 to i32
    %c0_i32_0 = arith.constant 0 : i32
    %2 = arith.cmpi ne, %1, %c0_i32_0 : i32
    scf.if %2 {
      %cst_16 = arith.constant 0.000000e+00 : f32
      %17 = vector.broadcast %cst_16 : f32 to vector<16x1024xf32>
      %c0_17 = arith.constant 0 : index
      %c0_18 = arith.constant 0 : index
      %18 = vector.load %arg13[%c0_17, %c0_18] : memref<16x1024xf32, #tpu.memory_space<vmem>>, vector<16x1024xf32>
      tpu.vector_store %arg13[%c0_17, %c0_18], %17 {strides = array<i32>} : memref<16x1024xf32, #tpu.memory_space<vmem>>, vector<16x1024xf32>,
      %cst_19 = arith.constant 0.000000e+00 : f32
      %19 = vector.broadcast %cst_19 : f32 to vector<16x1024xf32>
      %c0_20 = arith.constant 0 : index
      %c0_21 = arith.constant 0 : index
      %20 = vector.load %arg14[%c0_20, %c0_21] : memref<16x1024xf32, #tpu.memory_space<vmem>>, vector<16x1024xf32>
      tpu.vector_store %arg14[%c0_20, %c0_21], %19 {strides = array<i32>} : memref<16x1024xf32, #tpu.memory_space<vmem>>, vector<16x1024xf32>,
    } else {
    }
    %c0 = arith.constant 0 : index
    %c0_1 = arith.constant 0 : index
    %3 = vector.load %arg4[%c0, %c0_1] : memref<512x1024xbf16, #tpu.memory_space<vmem>>, vector<512x1024xbf16>
    %c0_2 = arith.constant 0 : index
    %c0_3 = arith.constant 0 : index
    %4 = vector.load %arg13[%c0_2, %c0_3] : memref<16x1024xf32, #tpu.memory_space<vmem>>, vector<16x1024xf32>
    %c0_4 = arith.constant 0 : index
    %c0_5 = arith.constant 0 : index
    %5 = vector.load %arg2[%c0_4, %c0_5] : memref<16x512xbf16, #tpu.memory_space<vmem>>, vector<16x512xbf16>
    %cst = arith.constant dense<0.000000e+00> : vector<16x1024xf32>
    %6 = tpu.matmul %5, %3, %cst {dimension_numbers = #tpu.dot_dimension_numbers<[1], [0], [0], [1], [0, 0, 1, 1], [], []>} : vector<16x512xbf16>, vector<512x1024xbf16>, vector<16x1024xf32> -> vector<16x1024xf32>
    %7 = arith.addf %4, %6 : vector<16x1024xf32>
    %c0_6 = arith.constant 0 : index
    %c0_7 = arith.constant 0 : index
    %8 = vector.load %arg13[%c0_6, %c0_7] : memref<16x1024xf32, #tpu.memory_space<vmem>>, vector<16x1024xf32>
    tpu.vector_store %arg13[%c0_6, %c0_7], %7 {strides = array<i32>} : memref<16x1024xf32, #tpu.memory_space<vmem>>, vector<16x1024xf32>,
    %c0_8 = arith.constant 0 : index
    %c0_9 = arith.constant 0 : index
    %9 = vector.load %arg14[%c0_8, %c0_9] : memref<16x1024xf32, #tpu.memory_space<vmem>>, vector<16x1024xf32>
    %c0_10 = arith.constant 0 : index
    %c0_11 = arith.constant 0 : index
    %10 = vector.load %arg3[%c0_10, %c0_11] : memref<16x512xbf16, #tpu.memory_space<vmem>>, vector<16x512xbf16>
    %cst_12 = arith.constant dense<0.000000e+00> : vector<16x1024xf32>
    %11 = tpu.matmul %10, %3, %cst_12 {dimension_numbers = #tpu.dot_dimension_numbers<[1], [0], [0], [1], [0, 0, 1, 1], [], []>} : vector<16x512xbf16>, vector<512x1024xbf16>, vector<16x1024xf32> -> vector<16x1024xf32>
    %12 = arith.addf %9, %11 : vector<16x1024xf32>
    %c0_13 = arith.constant 0 : index
    %c0_14 = arith.constant 0 : index
    %13 = vector.load %arg14[%c0_13, %c0_14] : memref<16x1024xf32, #tpu.memory_space<vmem>>, vector<16x1024xf32>
    tpu.vector_store %arg14[%c0_13, %c0_14], %12 {strides = array<i32>} : memref<16x1024xf32, #tpu.memory_space<vmem>>, vector<16x1024xf32>,
    %c1_i32 = arith.constant 1 : i32
    %14 = arith.cmpi eq, %arg1, %c1_i32 : i32
    %15 = arith.extui %14 : i1 to i32
    %c0_i32_15 = arith.constant 0 : i32
    %16 = arith.cmpi ne, %15, %c0_i32_15 : i32
    scf.if %16 {
      %c0_16 = arith.constant 0 : index
      %c0_17 = arith.constant 0 : index
      %17 = vector.load %arg13[%c0_16, %c0_17] : memref<16x1024xf32, #tpu.memory_space<vmem>>, vector<16x1024xf32>
      %c0_18 = arith.constant 0 : index
      %c0_19 = arith.constant 0 : index
      %18 = vector.load %arg5[%c0_18, %c0_19] : memref<1x1024xf32, #tpu.memory_space<vmem>>, vector<1x1024xf32>
      %19 = vector.broadcast %18 : vector<1x1024xf32> to vector<16x1024xf32>
      %20 = arith.addf %17, %19 : vector<16x1024xf32>
      %c0_20 = arith.constant 0 : index
      %c0_21 = arith.constant 0 : index
      %21 = vector.load %arg14[%c0_20, %c0_21] : memref<16x1024xf32, #tpu.memory_space<vmem>>, vector<16x1024xf32>
      %c0_22 = arith.constant 0 : index
      %c0_23 = arith.constant 0 : index
      %22 = vector.load %arg5[%c0_22, %c0_23] : memref<1x1024xf32, #tpu.memory_space<vmem>>, vector<1x1024xf32>
      %23 = vector.broadcast %22 : vector<1x1024xf32> to vector<16x1024xf32>
      %24 = arith.addf %21, %23 : vector<16x1024xf32>
      %25 = arith.mulf %20, %24 : vector<16x1024xf32>
      %26 = arith.truncf %25 : vector<16x1024xf32> to vector<16x1024xbf16>
      %c0_24 = arith.constant 0 : index
      %c0_25 = arith.constant 0 : index
      %27 = vector.load %arg6[%c0_24, %c0_25] : memref<1024x512xbf16, #tpu.memory_space<vmem>>, vector<1024x512xbf16>
      %cst_26 = arith.constant dense<0.000000e+00> : vector<16x512xf32>
      %28 = tpu.matmul %26, %27, %cst_26 {dimension_numbers = #tpu.dot_dimension_numbers<[1], [0], [0], [1], [0, 0, 1, 1], [], []>} : vector<16x1024xbf16>, vector<1024x512xbf16>, vector<16x512xf32> -> vector<16x512xf32>
      %c0_27 = arith.constant 0 : index
      %c0_28 = arith.constant 0 : index
      %29 = vector.load %arg7[%c0_27, %c0_28] : memref<1x512xf32, #tpu.memory_space<vmem>>, vector<1x512xf32>
      %30 = vector.broadcast %29 : vector<1x512xf32> to vector<16x512xf32>
      %31 = arith.addf %28, %30 : vector<16x512xf32>
      %cst_29 = arith.constant 0.000000e+00 : f32
      %32 = vector.broadcast %cst_29 : f32 to vector<16x512xf32>
      %33 = arith.maximumf %31, %32 : vector<16x512xf32>
      %34 = arith.truncf %33 : vector<16x512xf32> to vector<16x512xbf16>
      %c0_30 = arith.constant 0 : index
      %c0_31 = arith.constant 0 : index
      %35 = vector.load %arg8[%c0_30, %c0_31] : memref<512x64xbf16, #tpu.memory_space<vmem>>, vector<512x64xbf16>
      %cst_32 = arith.constant dense<0.000000e+00> : vector<16x64xf32>
      %36 = tpu.matmul %34, %35, %cst_32 {dimension_numbers = #tpu.dot_dimension_numbers<[1], [0], [0], [1], [0, 0, 1, 1], [], []>} : vector<16x512xbf16>, vector<512x64xbf16>, vector<16x64xf32> -> vector<16x64xf32>
      %c0_33 = arith.constant 0 : index
      %c0_34 = arith.constant 0 : index
      %37 = vector.load %arg9[%c0_33, %c0_34] : memref<1x64xf32, #tpu.memory_space<vmem>>, vector<1x64xf32>
      %38 = vector.broadcast %37 : vector<1x64xf32> to vector<16x64xf32>
      %39 = arith.addf %36, %38 : vector<16x64xf32>
      %40 = arith.negf %39 : vector<16x64xf32>
      %41 = math.exp %40 : vector<16x64xf32>
      %cst_35 = arith.constant 1.000000e+00 : f32
      %42 = vector.broadcast %cst_35 : f32 to vector<16x64xf32>
      %43 = arith.addf %42, %41 : vector<16x64xf32>
      %44 = arith.divf %42, %43 : vector<16x64xf32>
      %c0_36 = arith.constant 0 : index
      %c0_37 = arith.constant 0 : index
      %45 = vector.load %arg10[%c0_36, %c0_37] : memref<1x64xf32, #tpu.memory_space<vmem>>, vector<1x64xf32>
      %46 = vector.broadcast %45 : vector<1x64xf32> to vector<16x64xf32>
      %47 = arith.mulf %44, %46 : vector<16x64xf32>
      %cst_38 = arith.constant dense<0.000000e+00> : vector<16xf32>
      %48 = vector.multi_reduction <add>, %47, %cst_38 [1] : vector<16x64xf32> to vector<16xf32>
      %49 = vector.shape_cast %48 : vector<16xf32> to vector<16x1xf32>
      %c0_39 = arith.constant 0 : index
      %c0_40 = arith.constant 0 : index
      %50 = vector.load %arg11[%c0_39, %c0_40] : memref<1x1xf32, #tpu.memory_space<vmem>>, vector<1x1xf32>
      %51 = vector.broadcast %50 : vector<1x1xf32> to vector<16x1xf32>
      %52 = arith.addf %49, %51 : vector<16x1xf32>
      %53 = arith.negf %52 : vector<16x1xf32>
      %54 = math.exp %53 : vector<16x1xf32>
      %cst_41 = arith.constant 1.000000e+00 : f32
      %55 = vector.broadcast %cst_41 : f32 to vector<16x1xf32>
      %56 = arith.addf %55, %54 : vector<16x1xf32>
      %57 = arith.divf %55, %56 : vector<16x1xf32>
      %c0_42 = arith.constant 0 : index
      %c0_43 = arith.constant 0 : index
      %58 = vector.load %arg12[%c0_42, %c0_43] : memref<16x1xf32, #tpu.memory_space<vmem>>, vector<16x1xf32>
      tpu.vector_store %arg12[%c0_42, %c0_43], %57 {strides = array<i32>} : memref<16x1xf32, #tpu.memory_space<vmem>>, vector<16x1xf32>,
    } else {
    }
    return
  }
  func.func @transform_0(%arg0: i32, %arg1: i32) -> (i32, i32) {
    %c0_i32 = arith.constant 0 : i32
    return %arg0, %arg1 : i32, i32
  }
  func.func @transform_1(%arg0: i32, %arg1: i32) -> (i32, i32) {
    %c0_i32 = arith.constant 0 : i32
    return %arg0, %arg1 : i32, i32
  }
  func.func @transform_2(%arg0: i32, %arg1: i32) -> (i32, i32) {
    %c0_i32 = arith.constant 0 : i32
    %c0_i32_0 = arith.constant 0 : i32
    return %arg1, %c0_i32 : i32, i32
  }
  func.func @transform_3(%arg0: i32, %arg1: i32) -> (i32, i32) {
    %c0_i32 = arith.constant 0 : i32
    %c0_i32_0 = arith.constant 0 : i32
    %c0_i32_1 = arith.constant 0 : i32
    return %c0_i32, %c0_i32_0 : i32, i32
  }
  func.func @transform_4(%arg0: i32, %arg1: i32) -> (i32, i32) {
    %c0_i32 = arith.constant 0 : i32
    %c0_i32_0 = arith.constant 0 : i32
    %c0_i32_1 = arith.constant 0 : i32
    return %c0_i32, %c0_i32_0 : i32, i32
  }
  func.func @transform_5(%arg0: i32, %arg1: i32) -> (i32, i32) {
    %c0_i32 = arith.constant 0 : i32
    %c0_i32_0 = arith.constant 0 : i32
    %c0_i32_1 = arith.constant 0 : i32
    return %c0_i32, %c0_i32_0 : i32, i32
  }
  func.func @transform_6(%arg0: i32, %arg1: i32) -> (i32, i32) {
    %c0_i32 = arith.constant 0 : i32
    %c0_i32_0 = arith.constant 0 : i32
    %c0_i32_1 = arith.constant 0 : i32
    return %c0_i32, %c0_i32_0 : i32, i32
  }
  func.func @transform_7(%arg0: i32, %arg1: i32) -> (i32, i32) {
    %c0_i32 = arith.constant 0 : i32
    %c0_i32_0 = arith.constant 0 : i32
    %c0_i32_1 = arith.constant 0 : i32
    return %c0_i32, %c0_i32_0 : i32, i32
  }
  func.func @transform_8(%arg0: i32, %arg1: i32) -> (i32, i32) {
    %c0_i32 = arith.constant 0 : i32
    %c0_i32_0 = arith.constant 0 : i32
    %c0_i32_1 = arith.constant 0 : i32
    return %c0_i32, %c0_i32_0 : i32, i32
  }
  func.func @transform_9(%arg0: i32, %arg1: i32) -> (i32, i32) {
    %c0_i32 = arith.constant 0 : i32
    %c0_i32_0 = arith.constant 0 : i32
    %c0_i32_1 = arith.constant 0 : i32
    return %c0_i32, %c0_i32_0 : i32, i32
  }
  func.func @transform_10(%arg0: i32, %arg1: i32) -> (i32, i32) {
    %c0_i32 = arith.constant 0 : i32
    %c0_i32_0 = arith.constant 0 : i32
    return %arg0, %c0_i32 : i32, i32
  }
}

</mosaic_0001>

<bundles_post_ra>
// kernel: siamese_forward.1
= control target key start
LH: loop header
LB: loop body
LE: loop exit
PB: predicated region body
PF: predicated region fallthrough
CT: control target
= control target key end

     0   :  { %s11253_s0 = inlined_call_operand.vmem [shape: bf16[16,1024], index: 0, kind: input, shape index: {}]   ;;  %s11254_s1 = inlined_call_operand.vmem [shape: bf16[16,1024], index: 1, kind: input, shape index: {}]   ;;  %s11255_s2 = inlined_call_operand.hbm [shape: bf16[1024,1024], index: 2, kind: input, shape index: {}]   ;;  %s11256_s3 = inlined_call_operand.hbm [shape: f32[1,1024], index: 3, kind: input, shape index: {}]   ;;  %s11257_s4 = inlined_call_operand.hbm [shape: bf16[1024,512], index: 4, kind: input, shape index: {}]   ;;  %s11258_s5 = inlined_call_operand.hbm [shape: f32[1,512], index: 5, kind: input, shape index: {}]   ;;  %s11259_s6 = inlined_call_operand.vmem [shape: bf16[512,64], index: 6, kind: input, shape index: {}]   ;;  %s11260_s7 = inlined_call_operand.hbm [shape: f32[1,64], index: 7, kind: input, shape index: {}]   ;;  %s11261_s8 = inlined_call_operand.hbm [shape: f32[1,64], index: 8, kind: input, shape index: {}]   ;;  %s11262_s9 = inlined_call_operand.<no memory space> [shape: f32[1,1], index: 9, kind: input, shape index: {}]   ;;  %s11263_s10 = inlined_call_operand.vmem [shape: f32[16,1], index: 10, kind: output, shape index: {}]  }
   0x1   :  { %11476 = sst [smem:[#allocation234_spill]] %s11256_s3  ;;  %v15_v0 = vstv %s11262_s9 }
   0x2   :  { %11477 = sst [smem:[#allocation235_spill]] %s11257_s4  ;;  %16 = vst [vmem:[#allocation4] sm:$0x1] %v15_v0 }
   0x3   :  { %11478 = sst [smem:[#allocation236_spill]] %s11258_s5 }
   0x4   :  { %17 = vsyncpa [#allocation8], 0 }
   0x5   :  { %19 = vsyncpa [#allocation8 + $0x1], 0 }
   0x6   :  { %20 = vsyncpa [#allocation10], 0 }
   0x7   :  { %21 = vsyncpa [#allocation13], 0 }
   0x8   :  { %22 = vsyncpa [#allocation16], 0  ;;  %s9121_s15 = smov 0   ;;  %s9123_s16 = smov 0  }
   0x9   :  { %s9125_s17 = smov 0   ;;  %s9127_s18 = smov 0  }
   0xa   :  { %s9129_s19 = smov 0   ;;  %s9131_s20 = smov 0  }
   0xb LB: > { %s5885_s9 = sadd.s32 4294967295, %s9051_s20   ;;  %s37_s21 = sadd.s32 1, %s9047_s19  ;;  %s9051_s20 = sphi %s9131_s20, %s28_s20   ;;  %s9047_s19 = sphi %s9129_s19, %s11917_s19   ;;  %s9043_s18 = sphi %s9127_s18, %s11916_s18   ;;  %s9039_s17 = sphi %s9125_s17, %s11915_s17   ;;  %s9035_s16 = sphi %s9123_s16, %s11914_s16   ;;  %s9031_s15 = sphi %s9121_s15, %s11913_s15  }
   0xc   : > { %p38_p0 = scmp.ge.s32.totalorder %s37_s21, 2  ;;  %s49_s22 = sadd.s32 1, %s9039_s17 }
   0xd   : > { %p56_p1 = scmp.ne.s32.totalorder %s9039_s17, %s9035_s16  ;;  %p57_p2 = scmp.eq.s32.totalorder %s9051_s20, 0 }
   0xe   : > { %s11919_s21 = smov (%p38_p0, %s37_s21), 0  ;;  %p116_p4 = scmp.ne.s32.totalorder %s9035_s16, %s9031_s15 }
   0xf   : > { %11479 = sst [smem:[#allocation21_spill]] %s11919_s21  ;;  %p9157_p3 = por %p57_p2, %p56_p1 }
  0x10   : > { %s45_s24 = ssub.s32 %s9047_s19, %s11919_s21  ;;  %p9164_p5 = scmp.eq.s32.totalorder %s5885_s9, 0 }
  0x11   : > { %p47_p6 = scmp.eq.s32.totalorder %s45_s24, 0  ;;  %p5886_p7 = scmp.ge.s32.totalorder %s9051_s20, 1 }
  0x12   : > { %p9171_p8 = por %p9164_p5, %p116_p4  ;;  %p300_p9 = scmp.lt.s32.totalorder %s9051_s20, 3 }
  0x13   : > { %s9177_s27 = scalar_select %p47_p6, %s9039_s17, %s49_s22  }
  0x14   : > { %p9179_p10 = pnand %p5886_p7, %p300_p9  ;;  %s11485_s3 = sld [smem:[#allocation234_spill]] }
  0x15   : > { %11483 = sst [smem:[#allocation22_spill]] %s9177_s27  ;;  %s9053_s12 = smov [#allocation9]  }
  0x16   : > { %p8708_p11 = pneg %p9179_p10  ;;  %s314_s13 = sshll.u32 %s9053_s12, 4  ;;  %s315_s13 = int_to_ptr.vmem [resolvable:$true] %s314_s13 }
  0x17   : > { %s11486_s5 = sld [smem:[#allocation236_spill]]  ;;  %s9054_s24 = smov [#allocation12]  }
  0x18   : > { %p9193_p12 = pnand %p8708_p11, %p9164_p5  ;;  %s340_s29 = sshll.u32 %s9054_s24, 4  ;;  %s341_s29 = int_to_ptr.vmem [resolvable:$true] %s340_s29 }
  0x19   : > { %s11488_s4 = sld [smem:[#allocation235_spill]]  ;;  %s9055_s15 = smov [#allocation11]  }
  0x1a   : > { %s312_s11 = sshll.u32 %s11485_s3, 4  ;;  %s325_s3 = sshll.u32 %s9055_s15, 4  ;;  %s313_s11 = int_to_ptr.hbm [resolvable:$true] %s312_s11  ;;  %s326_s3 = int_to_ptr.vmem [resolvable:$true] %s325_s3 }
  0x1b   : > { %8711 = dma.hbm_to_vmem [thread:$0]  (!%p9193_p12), %s313_s11, 128, %s315_s13, [#allocation10]  }
  0x1c   : > { %s9057_s21 = smov 16   ;;  %s353_s11 = sshll.u32 %s11260_s7, 4  ;;  %s354_s11 = int_to_ptr.hbm [resolvable:$true] %s353_s11 }
  0x1d   : > { %s338_s9 = sshll.u32 %s11486_s5, 4  ;;  %s9056_s5 = smov 256   ;;  %s339_s9 = int_to_ptr.hbm [resolvable:$true] %s338_s9 }
  0x1e   : > { %8717 = dma.hbm_to_vmem [thread:$0]  (!%p9193_p12), %s339_s9, 64, %s341_s29, [#allocation13]  }
  0x1f   : > { %s323_s14 = sshll.u32 %s11488_s4, 4  ;;  %s9058_s13 = smov [#allocation14]   ;;  %s324_s14 = int_to_ptr.hbm [resolvable:$true] %s323_s14 }
  0x20   : > { %8714 = dma.hbm_to_vmem [thread:$0]  (!%p9193_p12), %s324_s14, 32768, %s326_s3, [#allocation10], %s9056_s5, %s9056_s5, %s9057_s21  }
  0x21   : > { %s355_s30 = sshll.u32 %s9058_s13, 4  ;;  %s365_s9 = sshll.u32 %s11261_s8, 4  ;;  %s356_s30 = int_to_ptr.vmem [resolvable:$true] %s355_s30  ;;  %s366_s9 = int_to_ptr.hbm [resolvable:$true] %s365_s9 }
  0x22   : > { %8720 = dma.hbm_to_vmem [thread:$0]  (!%p9193_p12), %s354_s11, 16, %s356_s30, [#allocation13]  }
  0x23   : > { %s9059_s29 = smov [#allocation15]   ;;  %p5892_p13 = scmp.ge.s32.totalorder %s9051_s20, 2 }
  0x24   : > { %s367_s15 = sshll.u32 %s9059_s29, 4  ;;  %s368_s15 = int_to_ptr.vmem [resolvable:$true] %s367_s15 }
  0x25   : > { %8723 = dma.hbm_to_vmem [thread:$0]  (!%p9193_p12), %s366_s9, 16, %s368_s15, [#allocation16]  }
  0x26   : > { %377 = sbr.rel (%p5892_p13) target bundleno = 65 (0x41), region = 44 }
  0x2b   : > { %380 = sbr.rel (!%p9157_p3) target bundleno = 51 (0x33), region = 48  ;;  %s382_s3 = sand.u32 (%p9157_p3), 1, %s9039_s17  }
  0x2c   : > { %s8130_s5 = sshll.u32 (%p9157_p3), %s9047_s19, 4  ;;  %s5893_s4 = sshll.u32 (%p9157_p3), %s382_s3, 5 }
  0x2d   : > { %s390_s14 = scalar_lea.vmem (%p9157_p3), %s11253_s0, %s8130_s5  ;;  %s384_s22 = scalar_lea.vmem (%p9157_p3), [#allocation5], %s5893_s4 }
  0x2e   : > { %v403_v1 = vld [vmem:[%s390_s14] sm:$0xff] (%p9157_p3)  ;;  %v405_v2 = vld [vmem:[%s390_s14 + $0x8] sm:$0xff] (%p9157_p3) }
  0x2f   : > { %v407_v3 = vld [vmem:[%s390_s14 + $0x20] sm:$0xff] (%p9157_p3)  ;;  %404 = vst [vmem:[%s384_s22] sm:$0xff] (%p9157_p3), %v403_v1  ;;  %v409_v4 = vld [vmem:[%s390_s14 + $0x28] sm:$0xff] (%p9157_p3) }
  0x30   : > { %406 = vst [vmem:[%s384_s22 + $0x8] sm:$0xff] %v405_v2 }
  0x31   : > { %408 = vst [vmem:[%s384_s22 + $0x10] sm:$0xff] %v407_v3 }
  0x32   : > { %410 = vst [vmem:[%s384_s22 + $0x18] sm:$0xff] %v409_v4 }
  0x33 PF: > { %416 = sbr.rel (!%p9157_p3) target bundleno = 59 (0x3b), region = 71  ;;  %s418_s24 = sand.u32 (%p9157_p3), 1, %s9039_s17  }
  0x34   : > { %s8131_s11 = sshll.u32 (%p9157_p3), %s9047_s19, 4  ;;  %s5896_s13 = sshll.u32 (%p9157_p3), %s418_s24, 5 }
  0x35   : > { %s426_s9 = scalar_lea.vmem (%p9157_p3), %s11254_s1, %s8131_s11  ;;  %s420_s29 = scalar_lea.vmem (%p9157_p3), [#allocation6], %s5896_s13 }
  0x36   : > { %v439_v5 = vld [vmem:[%s426_s9] sm:$0xff] (%p9157_p3)  ;;  %v441_v6 = vld [vmem:[%s426_s9 + $0x8] sm:$0xff] (%p9157_p3) }
  0x37   : > { %v443_v7 = vld [vmem:[%s426_s9 + $0x20] sm:$0xff] (%p9157_p3)  ;;  %440 = vst [vmem:[%s420_s29] sm:$0xff] (%p9157_p3), %v439_v5  ;;  %v445_v8 = vld [vmem:[%s426_s9 + $0x28] sm:$0xff] (%p9157_p3) }
  0x38   : > { %442 = vst [vmem:[%s420_s29 + $0x8] sm:$0xff] %v441_v6 }
  0x39   : > { %444 = vst [vmem:[%s420_s29 + $0x10] sm:$0xff] %v443_v7 }
  0x3a   : > { %446 = vst [vmem:[%s420_s29 + $0x18] sm:$0xff] %v445_v8 }
  0x3b PF: > { %s453_s15 = sand.u32 1, %s9039_s17   ;;  %s8133_s3 = sshll.u32 %s9047_s19, 11 }
  0x3c   : > { %s5899_s5 = sshll.u32 %s453_s15, 11  ;;  %s463_s27 = scalar_lea.hbm %s11255_s2, %s8133_s3 }
  0x3d   : > { %s464_s14 = sshll.u32 %s463_s27, 4  ;;  %s457_s22 = scalar_lea.vmem [#allocation7], %s5899_s5  ;;  %s465_s14 = int_to_ptr.hbm [resolvable:$true] %s464_s14 }
  0x3e   : > { %s466_s24 = sshll.u32 %s457_s22, 4  ;;  %s454_s11 = scalar_lea.sflag [#allocation8], %s453_s15  ;;  %s467_s24 = int_to_ptr.vmem [resolvable:$true] %s466_s24 }
  0x3f   : > { %s9060_s13 = smov 512   ;;  %s9061_s30 = smov 32  }
  0x40   : > { %8696 = dma.hbm_to_vmem [thread:$0]  (%p9157_p3), %s465_s14, 32768, %s467_s24, %s454_s11, %s9060_s13, %s9060_s13, %s9061_s30  }
  0x41 PF: > { %478 = sbr.rel (%p9179_p10) target bundleno = 1656 (0x678), region = 98 }
  0x46   : > { %s481_s12 = sand.u32 1, %s9035_s16  }
  0x47   : > { %s5904_s9 = sshll.u32 %s481_s12, 5  ;;  %s5906_s29 = sshll.u32 %s481_s12, 11 }
  0x48   : > { %s9241_s3 = scalar_lea.vmem [#allocation5], %s5904_s9  ;;  %s9243_s5 = scalar_lea.vmem [#allocation6], %s5904_s9 }
  0x49   : > { %s495_s4 = scalar_lea.sflag [#allocation8], %s481_s12  ;;  %s9245_s21 = scalar_lea.vmem [#allocation7], %s5906_s29 }
  0x4a   : > { %9014 = dma.done.wait (%p9171_p8), %s495_s4, 32768  }
  0x4b   : > { %9016 = vsyncadd (%p9171_p8), %s495_s4, 4294934528 }
  0x4c   : > { %9018 = dma.done.wait (%p9164_p5), [#allocation10], 32896  }
  0x4d   : > { %9020 = vsyncadd (%p9164_p5), [#allocation10], 4294934400 }
  0x4e   : > { %9022 = dma.done.wait (%p9164_p5), [#allocation13], 80  }
  0x4f   : > { %9024 = vsyncadd (%p9164_p5), [#allocation13], 4294967216 }
  0x50   : > { %9026 = dma.done.wait (%p9164_p5), [#allocation16], 16  }
  0x51   : > { %9028 = vsyncadd (%p9164_p5), [#allocation16], 4294967280  ;;  %p5912_p0 = scmp.ne.s32.totalorder %s9043_s18, 0 }
  0x53   : > { %583 = sbr.rel (%p5912_p0) target bundleno = 121 (0x79), region = 134 }
  0x58   : > { %v9062_v9 = vmov 0.0  }
  0x59   : > { %584 = vst [vmem:[#allocation2 + $0x30] sm:$0xff] %v9062_v9 }
  0x5a   : > { %585 = vst [vmem:[#allocation2] sm:$0xff] %v9062_v9 }
  0x5b   : > { %586 = vst [vmem:[#allocation2 + $0x58] sm:$0xff] %v9062_v9 }
  0x5c   : > { %587 = vst [vmem:[#allocation2 + $0x18] sm:$0xff] %v9062_v9 }
  0x5d   : > { %588 = vst [vmem:[#allocation2 + $0x50] sm:$0xff] %v9062_v9 }
  0x5e   : > { %589 = vst [vmem:[#allocation2 + $0x68] sm:$0xff] %v9062_v9 }
  0x5f   : > { %590 = vst [vmem:[#allocation2 + $0x8] sm:$0xff] %v9062_v9 }
  0x60   : > { %591 = vst [vmem:[#allocation2 + $0x48] sm:$0xff] %v9062_v9 }
  0x61   : > { %592 = vst [vmem:[#allocation2 + $0x40] sm:$0xff] %v9062_v9 }
  0x62   : > { %593 = vst [vmem:[#allocation2 + $0x20] sm:$0xff] %v9062_v9 }
  0x63   : > { %594 = vst [vmem:[#allocation2 + $0x10] sm:$0xff] %v9062_v9 }
  0x64   : > { %595 = vst [vmem:[#allocation2 + $0x38] sm:$0xff] %v9062_v9 }
  0x65   : > { %596 = vst [vmem:[#allocation2 + $0x60] sm:$0xff] %v9062_v9 }
  0x66   : > { %597 = vst [vmem:[#allocation2 + $0x70] sm:$0xff] %v9062_v9 }
  0x67   : > { %598 = vst [vmem:[#allocation2 + $0x78] sm:$0xff] %v9062_v9 }
  0x68   : > { %599 = vst [vmem:[#allocation2 + $0x28] sm:$0xff] %v9062_v9 }
  0x69   : > { %600 = vst [vmem:[#allocation3 + $0x28] sm:$0xff] %v9062_v9 }
  0x6a   : > { %601 = vst [vmem:[#allocation3 + $0x68] sm:$0xff] %v9062_v9 }
  0x6b   : > { %602 = vst [vmem:[#allocation3 + $0x10] sm:$0xff] %v9062_v9 }
  0x6c   : > { %603 = vst [vmem:[#allocation3 + $0x40] sm:$0xff] %v9062_v9 }
  0x6d   : > { %604 = vst [vmem:[#allocation3 + $0x48] sm:$0xff] %v9062_v9 }
  0x6e   : > { %605 = vst [vmem:[#allocation3 + $0x30] sm:$0xff] %v9062_v9 }
  0x6f   : > { %606 = vst [vmem:[#allocation3 + $0x70] sm:$0xff] %v9062_v9 }
  0x70   : > { %607 = vst [vmem:[#allocation3 + $0x38] sm:$0xff] %v9062_v9 }
  0x71   : > { %608 = vst [vmem:[#allocation3 + $0x20] sm:$0xff] %v9062_v9 }
  0x72   : > { %609 = vst [vmem:[#allocation3 + $0x78] sm:$0xff] %v9062_v9 }
  0x73   : > { %610 = vst [vmem:[#allocation3 + $0x18] sm:$0xff] %v9062_v9 }
  0x74   : > { %611 = vst [vmem:[#allocation3 + $0x58] sm:$0xff] %v9062_v9 }
  0x75   : > { %612 = vst [vmem:[#allocation3] sm:$0xff] %v9062_v9 }
  0x76   : > { %613 = vst [vmem:[#allocation3 + $0x8] sm:$0xff] %v9062_v9 }
  0x77   : > { %614 = vst [vmem:[#allocation3 + $0x60] sm:$0xff] %v9062_v9 }
  0x78   : > { %615 = vst [vmem:[#allocation3 + $0x50] sm:$0xff] %v9062_v9 }
  0x79 PF: > { %v6155_v10 = vld [vmem:[%s9245_s21 + $0x1c0] sm:$0xf]  ;;  %p6969_p1 = scmp.ne.s32.totalorder %s9043_s18, 1 }
  0x7a   : > { %v8194_v11 = vld [vmem:[%s9245_s21 + $0x1dc] sm:$0xf0] }
  0x7b   : > { %v6411_v12 = vld [vmem:[%s9245_s21 + $0x3c0] sm:$0xf]  ;;  %v9267_v13 = vor.u32 %v8194_v11, %v6155_v10 }
  0x7c   : > { %v8258_v14 = vld [vmem:[%s9245_s21 + $0x3dc] sm:$0xf0] }
  0x7d   : > { %v6667_v15 = vld [vmem:[%s9245_s21 + $0x5c0] sm:$0xf]  ;;  %v9272_v17 = vor.u32 %v8258_v14, %v6411_v12  ;;  %2192 = vmatpush.bf16.msra.mxu0 %v9267_v13 }
  0x7e   : > { %v8322_v16 = vld [vmem:[%s9245_s21 + $0x5dc] sm:$0xf0] }
  0x7f   : > { %v9274_v18 = vor.u32 %v8322_v16, %v6667_v15  ;;  %v6923_v19 = vld [vmem:[%s9245_s21 + $0x7c0] sm:$0xf]  ;;  %2206 = vmatpush.bf16.msra.mxu1 %v9272_v17 }
  0x80   : > { %v8386_v20 = vld [vmem:[%s9245_s21 + $0x7dc] sm:$0xf0] }
  0x81   : > { %v6123_v21 = vld [vmem:[%s9245_s21 + $0x180] sm:$0xf]  ;;  %v9280_v22 = vor.u32 %v8386_v20, %v6923_v19  ;;  %2220 = vmatpush.bf16.msra.mxu2 %v9274_v18 }
  0x82   : > { %v8186_v23 = vld [vmem:[%s9245_s21 + $0x19c] sm:$0xf0] }
  0x83   : > { %v6379_v24 = vld [vmem:[%s9245_s21 + $0x380] sm:$0xf]  ;;  %v9287_v26 = vor.u32 %v8186_v23, %v6123_v21  ;;  %2234 = vmatpush.bf16.msra.mxu3 %v9280_v22 }
  0x84   : > { %v8250_v25 = vld [vmem:[%s9245_s21 + $0x39c] sm:$0xf0] }
  0x85   : > { %v9289_v27 = vor.u32 %v8250_v25, %v6379_v24  ;;  %v6635_v28 = vld [vmem:[%s9245_s21 + $0x580] sm:$0xf]  ;;  %2193 = vmatpush.bf16.msra.mxu0 %v9287_v26 }
  0x86   : > { %v8314_v29 = vld [vmem:[%s9245_s21 + $0x59c] sm:$0xf0] }
  0x87   : > { %v6891_v30 = vld [vmem:[%s9245_s21 + $0x780] sm:$0xf]  ;;  %v9295_v31 = vor.u32 %v8314_v29, %v6635_v28  ;;  %2207 = vmatpush.bf16.msra.mxu1 %v9289_v27 }
  0x88   : > { %v8378_v32 = vld [vmem:[%s9245_s21 + $0x79c] sm:$0xf0] }
  0x89   : > { %v6091_v33 = vld [vmem:[%s9245_s21 + $0x140] sm:$0xf]  ;;  %v9300_v35 = vor.u32 %v8378_v32, %v6891_v30  ;;  %2221 = vmatpush.bf16.msra.mxu2 %v9295_v31 }
  0x8a   : > { %v8178_v34 = vld [vmem:[%s9245_s21 + $0x15c] sm:$0xf0] }
  0x8b   : > { %v6347_v36 = vld [vmem:[%s9245_s21 + $0x340] sm:$0xf]  ;;  %v9306_v39 = vor.u32 %v8178_v34, %v6091_v33  ;;  %2235 = vmatpush.bf16.msra.mxu3 %v9300_v35 }
  0x8c   : > { %v8242_v37 = vld [vmem:[%s9245_s21 + $0x35c] sm:$0xf0] }
  0x8d   : > { %v6603_v38 = vld [vmem:[%s9245_s21 + $0x540] sm:$0xf]  ;;  %v9313_v43 = vor.u32 %v8242_v37, %v6347_v36  ;;  %2194 = vmatpush.bf16.msra.mxu0 %v9306_v39 }
  0x8e   : > { %v8306_v40 = vld [vmem:[%s9245_s21 + $0x55c] sm:$0xf0] }
  0x8f   : > { %v6859_v41 = vld [vmem:[%s9245_s21 + $0x740] sm:$0xf]  ;;  %v9315_v44 = vor.u32 %v8306_v40, %v6603_v38  ;;  %2208 = vmatpush.bf16.msra.mxu1 %v9313_v43 }
  0x90   : > { %v8370_v42 = vld [vmem:[%s9245_s21 + $0x75c] sm:$0xf0] }
  0x91   : > { %v6059_v45 = vld [vmem:[%s9245_s21 + $0x100] sm:$0xf]  ;;  %v9321_v48 = vor.u32 %v8370_v42, %v6859_v41  ;;  %2222 = vmatpush.bf16.msra.mxu2 %v9315_v44 }
  0x92   : > { %v8170_v46 = vld [vmem:[%s9245_s21 + $0x11c] sm:$0xf0] }
  0x93   : > { %v6315_v47 = vld [vmem:[%s9245_s21 + $0x300] sm:$0xf]  ;;  %v9329_v54 = vor.u32 %v8170_v46, %v6059_v45  ;;  %2236 = vmatpush.bf16.msra.mxu3 %v9321_v48 }
  0x94   : > { %v8234_v49 = vld [vmem:[%s9245_s21 + $0x31c] sm:$0xf0] }
  0x95   : > { %v6571_v50 = vld [vmem:[%s9245_s21 + $0x500] sm:$0xf]  ;;  %v9333_v55 = vor.u32 %v8234_v49, %v6315_v47  ;;  %2195 = vmatpush.bf16.msra.mxu0 %v9329_v54 }
  0x96   : > { %v8298_v51 = vld [vmem:[%s9245_s21 + $0x51c] sm:$0xf0] }
  0x97   : > { %v6827_v52 = vld [vmem:[%s9245_s21 + $0x700] sm:$0xf]  ;;  %v9335_v56 = vor.u32 %v8298_v51, %v6571_v50  ;;  %2209 = vmatpush.bf16.msra.mxu1 %v9333_v55  ;;  %v8190_v50 = vld [vmem:[%s9245_s21 + $0x1c4] sm:$0xf] }
  0x98   : > { %v8362_v53 = vld [vmem:[%s9245_s21 + $0x71c] sm:$0xf0]  ;;  %v6157_v51 = vld [vmem:[%s9245_s21 + $0x1e0] sm:$0xf0] }
  0x99   : > { %v6027_v57 = vld [vmem:[%s9245_s21 + $0xc0] sm:$0xf]  ;;  %v9341_v60 = vor.u32 %v8362_v53, %v6827_v52  ;;  %2223 = vmatpush.bf16.msra.mxu2 %v9335_v56  ;;  %v8254_v52 = vld [vmem:[%s9245_s21 + $0x3c4] sm:$0xf] }
  0x9a   : > { %v8162_v58 = vld [vmem:[%s9245_s21 + $0xdc] sm:$0xf0] }
  0x9b   : > { %v6283_v59 = vld [vmem:[%s9245_s21 + $0x2c0] sm:$0xf]  ;;  %v9349_v2 = vor.u32 %v8162_v58, %v6027_v57  ;;  %2237 = vmatpush.bf16.msra.mxu3 %v9341_v60  ;;  %v6413_v57 = vld [vmem:[%s9245_s21 + $0x3e0] sm:$0xf0] }
  0x9c   : > { %v8226_v61 = vld [vmem:[%s9245_s21 + $0x2dc] sm:$0xf0]  ;;  %v8318_v58 = vld [vmem:[%s9245_s21 + $0x5c4] sm:$0xf] }
  0x9d   : > { %v6539_v62 = vld [vmem:[%s9245_s21 + $0x4c0] sm:$0xf]  ;;  %v9353_v3 = vor.u32 %v8226_v61, %v6283_v59  ;;  %2196 = vmatpush.bf16.msra.mxu0 %v9349_v2  ;;  %v6669_v59 = vld [vmem:[%s9245_s21 + $0x5e0] sm:$0xf0] }
  0x9e   : > { %v8290_v63 = vld [vmem:[%s9245_s21 + $0x4dc] sm:$0xf0] }
  0x9f   : > { %v6795_v0 = vld [vmem:[%s9245_s21 + $0x6c0] sm:$0xf]  ;;  %v9355_v4 = vor.u32 %v8290_v63, %v6539_v62  ;;  %2210 = vmatpush.bf16.msra.mxu1 %v9353_v3  ;;  %v8382_v63 = vld [vmem:[%s9245_s21 + $0x7c4] sm:$0xf] }
  0xa0   : > { %v8354_v1 = vld [vmem:[%s9245_s21 + $0x6dc] sm:$0xf0] }
  0xa1   : > { %v5995_v5 = vld [vmem:[%s9245_s21 + $0x80] sm:$0xf]  ;;  %v9361_v8 = vor.u32 %v8354_v1, %v6795_v0  ;;  %2224 = vmatpush.bf16.msra.mxu2 %v9355_v4  ;;  %v6925_v0 = vld [vmem:[%s9245_s21 + $0x7e0] sm:$0xf0] }
  0xa2   : > { %v8154_v6 = vld [vmem:[%s9245_s21 + $0x9c] sm:$0xf0] }
  0xa3   : > { %v6251_v7 = vld [vmem:[%s9245_s21 + $0x280] sm:$0xf]  ;;  %v9369_v15 = vor.u32 %v8154_v6, %v5995_v5  ;;  %2238 = vmatpush.bf16.msra.mxu3 %v9361_v8  ;;  %v9428_v5 = vor.u32 %v8190_v50, %v6157_v51  ;;  %v9430_v6 = vor.u32 %v8254_v52, %v6413_v57  ;;  %v8166_v50 = vld [vmem:[%s9245_s21 + $0x104] sm:$0xf]  ;;  %v5923_v57 = vld [vmem:[%s9241_s3 + $0x8] sm:$0xf] }
  0xa4   : > { %v8218_v9 = vld [vmem:[%s9245_s21 + $0x29c] sm:$0xf0]  ;;  %v6061_v52 = vld [vmem:[%s9245_s21 + $0x120] sm:$0xf0] }
  0xa5   : > { %v6507_v10 = vld [vmem:[%s9245_s21 + $0x480] sm:$0xf]  ;;  %v9373_v16 = vor.u32 %v8218_v9, %v6251_v7  ;;  %2197 = vmatpush.bf16.msra.mxu0 %v9369_v15  ;;  %11489 = vst [vmem:[#allocation23_spill] sm:$0xff] %v9430_v6  ;;  %v9432_v7 = vor.u32 %v8318_v58, %v6669_v59  ;;  %v8182_v9 = vld [vmem:[%s9245_s21 + $0x184] sm:$0xf] }
  0xa6   : > { %v8282_v11 = vld [vmem:[%s9245_s21 + $0x49c] sm:$0xf0]  ;;  %v8393_v58 = vld [vmem:[%s9241_s3 + $0x14] sm:$0xf0] }
  0xa7   : > { %v6763_v12 = vld [vmem:[%s9245_s21 + $0x680] sm:$0xf]  ;;  %v9375_v19 = vor.u32 %v8282_v11, %v6507_v10  ;;  %2211 = vmatpush.bf16.msra.mxu1 %v9373_v16  ;;  %11490 = vst [vmem:[#allocation24_spill] sm:$0xff] %v9432_v7  ;;  %v6125_v10 = vld [vmem:[%s9245_s21 + $0x1a0] sm:$0xf0] }
  0xa8   : > { %v8346_v14 = vld [vmem:[%s9245_s21 + $0x69c] sm:$0xf0]  ;;  %v8246_v11 = vld [vmem:[%s9245_s21 + $0x384] sm:$0xf] }
  0xa9   : > { %v5963_v20 = vld [vmem:[%s9245_s21 + $0x40] sm:$0xf]  ;;  %v9381_v24 = vor.u32 %v8346_v14, %v6763_v12  ;;  %2225 = vmatpush.bf16.msra.mxu2 %v9375_v19  ;;  %v9438_v12 = vor.u32 %v8382_v63, %v6925_v0  ;;  %v6381_v14 = vld [vmem:[%s9245_s21 + $0x3a0] sm:$0xf0] }
  0xaa   : > { %v8146_v21 = vld [vmem:[%s9245_s21 + $0x5c] sm:$0xf0]  ;;  %v8230_v0 = vld [vmem:[%s9245_s21 + $0x304] sm:$0xf] }
  0xab   : > { %v6219_v23 = vld [vmem:[%s9245_s21 + $0x240] sm:$0xf]  ;;  %v9389_v33 = vor.u32 %v8146_v21, %v5963_v20  ;;  %2239 = vmatpush.bf16.msra.mxu3 %v9381_v24  ;;  %11491 = vst [vmem:[#allocation25_spill] sm:$0xff] %v9438_v12  ;;  %v8310_v20 = vld [vmem:[%s9245_s21 + $0x584] sm:$0xf] }
  0xac   : > { %v8210_v25 = vld [vmem:[%s9245_s21 + $0x25c] sm:$0xf0]  ;;  %v6637_v21 = vld [vmem:[%s9245_s21 + $0x5a0] sm:$0xf0] }
  0xad   : > { %v6475_v28 = vld [vmem:[%s9245_s21 + $0x440] sm:$0xf]  ;;  %v9395_v37 = vor.u32 %v8210_v25, %v6219_v23  ;;  %2198 = vmatpush.bf16.msra.mxu0 %v9389_v33  ;;  %v8374_v23 = vld [vmem:[%s9245_s21 + $0x784] sm:$0xf] }
  0xae   : > { %v8274_v29 = vld [vmem:[%s9245_s21 + $0x45c] sm:$0xf0]  ;;  %v6893_v25 = vld [vmem:[%s9245_s21 + $0x7a0] sm:$0xf0] }
  0xaf   : > { %v6731_v30 = vld [vmem:[%s9245_s21 + $0x640] sm:$0xf]  ;;  %v9397_v38 = vor.u32 %v8274_v29, %v6475_v28  ;;  %2212 = vmatpush.bf16.msra.mxu1 %v9395_v37  ;;  %v9449_v28 = vor.u32 %v8182_v9, %v6125_v10  ;;  %v9453_v29 = vor.u32 %v8246_v11, %v6381_v14  ;;  %v9482_v9 = vor.u32 %v8393_v58, %v5923_v57  ;;  %v8391_v10 = vld [vmem:[%s9241_s3 + $0xc] sm:$0xf]  ;;  %v5925_v11 = vld [vmem:[%s9241_s3 + $0x18] sm:$0xf0] }
  0xb0   : > { %v8338_v32 = vld [vmem:[%s9245_s21 + $0x65c] sm:$0xf0]  ;;  %v8222_v58 = vld [vmem:[%s9245_s21 + $0x2c4] sm:$0xf] }
  0xb1   : > { %v5931_v34 = vld [vmem:[%s9245_s21] sm:$0xf]  ;;  %v9403_v45 = vor.u32 %v8338_v32, %v6731_v30  ;;  %2226 = vmatpush.bf16.msra.mxu2 %v9397_v38  ;;  %11492 = vst [vmem:[#allocation26_spill] sm:$0xff] %v9449_v28  ;;  %v9455_v30 = vor.u32 %v8310_v20, %v6637_v21  ;;  %v8174_v32 = vld [vmem:[%s9245_s21 + $0x144] sm:$0xf] }
  0xb2   : > { %v8138_v36 = vld [vmem:[%s9245_s21 + $0x1c] sm:$0xf0]  ;;  %11493 = vst [vmem:[#allocation27_spill] sm:$0xff] %v9453_v29  ;;  %v6317_v20 = vld [vmem:[%s9245_s21 + $0x320] sm:$0xf0] }
  0xb3   : > { %v6187_v40 = vld [vmem:[%s9245_s21 + $0x200] sm:$0xf]  ;;  %v9412_v53 = vor.u32 %v8138_v36, %v5931_v34  ;;  %2240 = vmatpush.bf16.msra.mxu3 %v9403_v45  ;;  %11494 = vst [vmem:[#allocation28_spill] sm:$0xff] %v9455_v30  ;;  %v6093_v34 = vld [vmem:[%s9245_s21 + $0x160] sm:$0xf0] }
  0xb4   : > { %v8202_v41 = vld [vmem:[%s9245_s21 + $0x21c] sm:$0xf0]  ;;  %v8238_v36 = vld [vmem:[%s9245_s21 + $0x344] sm:$0xf]  ;;  %v9470_v51 = vor.u32 %v8174_v32, %v6093_v34 }
  0xb5   : > { %v6443_v42 = vld [vmem:[%s9245_s21 + $0x400] sm:$0xf]  ;;  %v9419_v61 = vor.u32 %v8202_v41, %v6187_v40  ;;  %2199 = vmatpush.bf16.msra.mxu0 %v9412_v53  ;;  %v9461_v40 = vor.u32 %v8374_v23, %v6893_v25  ;;  %v6349_v41 = vld [vmem:[%s9245_s21 + $0x360] sm:$0xf0]  ;;  %v9492_v25 = vor.u32 %v8391_v10, %v5925_v11  ;;  %v5917_v10 = vld [vmem:[%s9241_s3 + $0x10] sm:$0xf0] }
  0xb6   : > { %v8266_v46 = vld [vmem:[%s9245_s21 + $0x41c] sm:$0xf0]  ;;  %11496 = vst [vmem:[#allocation30_spill] sm:$0xff] %v9470_v51  ;;  %v9477_v59 = vor.u32 %v8238_v36, %v6349_v41  ;;  %v8294_v21 = vld [vmem:[%s9245_s21 + $0x504] sm:$0xf]  ;;  %v9499_v41 = vor.u32 %v8166_v50, %v6061_v52 }
  0xb7   : > { %v6699_v47 = vld [vmem:[%s9245_s21 + $0x600] sm:$0xf]  ;;  %v9421_v62 = vor.u32 %v8266_v46, %v6443_v42  ;;  %2213 = vmatpush.bf16.msra.mxu1 %v9419_v61  ;;  %11495 = vst [vmem:[#allocation29_spill] sm:$0xff] %v9461_v40  ;;  %v8302_v42 = vld [vmem:[%s9245_s21 + $0x544] sm:$0xf] }
  0xb8   : > { %v8330_v49 = vld [vmem:[%s9245_s21 + $0x61c] sm:$0xf0]  ;;  %v6605_v46 = vld [vmem:[%s9245_s21 + $0x560] sm:$0xf0]  ;;  %11497 = vst [vmem:[#allocation31_spill] sm:$0xff] %v9477_v59 }
  0xb9   : > { %v9426_v1 = vor.u32 %v8330_v49, %v6699_v47  ;;  %2227 = vmatpush.bf16.msra.mxu2 %v9421_v62  ;;  %2248 = vmatpush.bf16.msrb.mxu0 %v9428_v5  ;;  %v8366_v47 = vld [vmem:[%s9245_s21 + $0x744] sm:$0xf]  ;;  %v9479_v63 = vor.u32 %v8302_v42, %v6605_v46  ;;  %11500 = vst [vmem:[#allocation34_spill] sm:$0xff] %v9499_v41  ;;  %v5915_v46 = vld [vmem:[%s9241_s3] sm:$0xf] }
  0xba   : > { %v6861_v49 = vld [vmem:[%s9245_s21 + $0x760] sm:$0xf0] }
  0xbb   : > { %2241 = vmatpush.bf16.msra.mxu3 %v9426_v1  ;;  %2262 = vmatpush.bf16.msrb.mxu1 %v9430_v6  ;;  %11498 = vst [vmem:[#allocation32_spill] sm:$0xff] %v9479_v63  ;;  %v9487_v14 = vor.u32 %v8366_v47, %v6861_v49  ;;  %v6573_v23 = vld [vmem:[%s9245_s21 + $0x520] sm:$0xf0]  ;;  %v8392_v47 = vld [vmem:[%s9241_s3 + $0xc] sm:$0xf0]  ;;  %v9507_v49 = vor.u32 %v8230_v0, %v6317_v20 }
  0xbc   : > { %v8358_v32 = vld [vmem:[%s9245_s21 + $0x704] sm:$0xf]  ;;  %2228 = vmatmul.bf16.vlgmr.msra.gmra.mxu2 %v9482_v9  ;;  %v9509_v57 = vor.u32 %v8294_v21, %v6573_v23  ;;  %v9512_v50 = vor.u32 %v8392_v47, %v5915_v46 }
  0xbd   : > { %2276 = vmatpush.bf16.msrb.mxu2 %v9432_v7  ;;  %2249 = vmatpush.bf16.msrb.mxu0 %v9449_v28  ;;  %11499 = vst [vmem:[#allocation33_spill] sm:$0xff] %v9487_v14  ;;  %v6829_v34 = vld [vmem:[%s9245_s21 + $0x720] sm:$0xf0]  ;;  %v6717_v28 = vld [vmem:[%s9245_s21 + $0x630] sm:$0xf0] }
  0xbe   : > { %v8158_v36 = vld [vmem:[%s9245_s21 + $0xc4] sm:$0xf]  ;;  %2242 = vmatmul.bf16.vlgmr.msra.gmra.mxu3 %v9492_v25  ;;  %11501 = vst [vmem:[#allocation35_spill] sm:$0xff] %v9507_v49  ;;  %v9517_v11 = vor.u32 %v8358_v32, %v6829_v34  ;;  %2200 = vmatmul.bf16.vlgmr.msra.gmra.mxu0 %v9512_v50  ;;  %v8325_v7 = vld [vmem:[%s9245_s21 + $0x5f4] sm:$0xf0] }
  0xbf   : > { %2290 = vmatpush.bf16.msrb.mxu3 %v9438_v12  ;;  %2263 = vmatpush.bf16.msrb.mxu1 %v9453_v29  ;;  %v6029_v42 = vld [vmem:[%s9245_s21 + $0xe0] sm:$0xf0]  ;;  %11502 = vst [vmem:[#allocation36_spill] sm:$0xff] %v9509_v57  ;;  %v6691_v12 = vld [vmem:[%s9245_s21 + $0x5d8] sm:$0xf] }
  0xc0   : > { %v8390_v52 = vld [vmem:[%s9241_s3 + $0x4] sm:$0xf]  ;;  %11503 = vst [vmem:[#allocation37_spill] sm:$0xff] %v9517_v11  ;;  %v9528_v21 = vor.u32 %v8158_v36, %v6029_v42 }
  0xc1   : > { %2277 = vmatpush.bf16.msrb.mxu2 %v9455_v30  ;;  %2250 = vmatpush.bf16.msrb.mxu0 %v9470_v51  ;;  %v6285_v51 = vld [vmem:[%s9245_s21 + $0x2e0] sm:$0xf0]  ;;  %v8387_v30 = vld [vmem:[%s9245_s21 + $0x7e4] sm:$0xf0] }
  0xc2   : > { %v8350_v0 = vld [vmem:[%s9245_s21 + $0x6c4] sm:$0xf]  ;;  %11504 = vst [vmem:[#allocation38_spill] sm:$0xff] %v9528_v21  ;;  %v9533_v23 = vor.u32 %v8222_v58, %v6285_v51 }
  0xc3   : > { %2291 = vmatpush.bf16.msrb.mxu3 %v9461_v40  ;;  %2264 = vmatpush.bf16.msrb.mxu1 %v9477_v59  ;;  %v8286_v59 = vld [vmem:[%s9245_s21 + $0x4c4] sm:$0xf] }
  0xc4   : > { %v6541_v40 = vld [vmem:[%s9245_s21 + $0x4e0] sm:$0xf0]  ;;  %11505 = vst [vmem:[#allocation39_spill] sm:$0xff] %v9533_v23 }
  0xc5   : > { %2278 = vmatpush.bf16.msrb.mxu2 %v9479_v63  ;;  %v9522_v63 = vor.u32 %v8390_v52, %v5917_v10  ;;  %v6797_v20 = vld [vmem:[%s9245_s21 + $0x6e0] sm:$0xf0]  ;;  %2251 = vmatpush.bf16.msrb.mxu0 %v9499_v41  ;;  %v9535_v32 = vor.u32 %v8286_v59, %v6541_v40 }
  0xc6   : > { %v8150_v34 = vld [vmem:[%s9245_s21 + $0x84] sm:$0xf]  ;;  %v9541_v36 = vor.u32 %v8350_v0, %v6797_v20 }
  0xc7   : > { %2292 = vmatpush.bf16.msrb.mxu3 %v9487_v14  ;;  %2214 = vmatmul.bf16.vlgmr.msra.gmra.mxu1 %v9522_v63  ;;  %11506 = vst [vmem:[#allocation40_spill] sm:$0xff] %v9535_v32  ;;  %v5997_v46 = vld [vmem:[%s9245_s21 + $0xa0] sm:$0xf0]  ;;  %v8195_v14 = vld [vmem:[%s9245_s21 + $0x1e4] sm:$0xf0] }
  0xc8   : > { %2265 = vmatpush.bf16.msrb.mxu1 %v9507_v49  ;;  %v8214_v47 = vld [vmem:[%s9245_s21 + $0x284] sm:$0xf]  ;;  %11507 = vst [vmem:[#allocation41_spill] sm:$0xff] %v9541_v36  ;;  %v9549_v59 = vor.u32 %v8150_v34, %v5997_v46 }
  0xc9   : > { %2279 = vmatpush.bf16.msrb.mxu2 %v9509_v57  ;;  %v6253_v42 = vld [vmem:[%s9245_s21 + $0x2a0] sm:$0xf0]  ;;  %2252 = vmatpush.bf16.msrb.mxu0 %v9528_v21 }
  0xca   : > { %v8278_v52 = vld [vmem:[%s9245_s21 + $0x484] sm:$0xf]  ;;  %11508 = vst [vmem:[#allocation42_spill] sm:$0xff] %v9549_v59  ;;  %v9553_v58 = vor.u32 %v8214_v47, %v6253_v42 }
  0xcb   : > { %2293 = vmatpush.bf16.msrb.mxu3 %v9517_v11  ;;  %v6509_v10 = vld [vmem:[%s9245_s21 + $0x4a0] sm:$0xf0] }
  0xcc   : > { %v8342_v51 = vld [vmem:[%s9245_s21 + $0x684] sm:$0xf]  ;;  %2266 = vmatpush.bf16.msrb.mxu1 %v9533_v23  ;;  %11509 = vst [vmem:[#allocation43_spill] sm:$0xff] %v9553_v58  ;;  %v9555_v0 = vor.u32 %v8278_v52, %v6509_v10 }
  0xcd   : > { %v6765_v40 = vld [vmem:[%s9245_s21 + $0x6a0] sm:$0xf0]  ;;  %2280 = vmatpush.bf16.msrb.mxu2 %v9535_v32  ;;  %2253 = vmatpush.bf16.msrb.mxu0 %v9549_v59 }
  0xce   : > { %11510 = vst [vmem:[#allocation44_spill] sm:$0xff] %v9555_v0  ;;  %v8142_v20 = vld [vmem:[%s9245_s21 + $0x44] sm:$0xf]  ;;  %v9561_v21 = vor.u32 %v8342_v51, %v6765_v40 }
  0xcf   : > { %v5965_v11 = vld [vmem:[%s9245_s21 + $0x60] sm:$0xf0]  ;;  %2294 = vmatpush.bf16.msrb.mxu3 %v9541_v36 }
  0xd0   : > { %v8206_v57 = vld [vmem:[%s9245_s21 + $0x244] sm:$0xf]  ;;  %11511 = vst [vmem:[#allocation45_spill] sm:$0xff] %v9561_v21  ;;  %v9569_v42 = vor.u32 %v8142_v20, %v5965_v11  ;;  %2267 = vmatpush.bf16.msrb.mxu1 %v9553_v58 }
  0xd1   : > { %v6221_v34 = vld [vmem:[%s9245_s21 + $0x260] sm:$0xf0]  ;;  %2281 = vmatpush.bf16.msrb.mxu2 %v9555_v0  ;;  %v6163_v0 = vld [vmem:[%s9245_s21 + $0x1c8] sm:$0xf] }
  0xd2   : > { %v8270_v46 = vld [vmem:[%s9245_s21 + $0x444] sm:$0xf]  ;;  %11512 = vst [vmem:[#allocation46_spill] sm:$0xff] %v9569_v42  ;;  %v9575_v51 = vor.u32 %v8206_v57, %v6221_v34  ;;  %v6419_v57 = vld [vmem:[%s9245_s21 + $0x3c8] sm:$0xf]  ;;  %2254 = vmatpush.bf16.msrb.mxu0 %v9569_v42 }
  0xd3   : > { %v6477_v23 = vld [vmem:[%s9245_s21 + $0x460] sm:$0xf0]  ;;  %2295 = vmatpush.bf16.msrb.mxu3 %v9561_v21  ;;  %v8259_v34 = vld [vmem:[%s9245_s21 + $0x3e4] sm:$0xf0] }
  0xd4   : > { %v8334_v32 = vld [vmem:[%s9245_s21 + $0x644] sm:$0xf]  ;;  %11513 = vst [vmem:[#allocation47_spill] sm:$0xff] %v9575_v51  ;;  %v9577_v40 = vor.u32 %v8270_v46, %v6477_v23  ;;  %v6675_v46 = vld [vmem:[%s9245_s21 + $0x5c8] sm:$0xf]  ;;  %2268 = vmatpush.bf16.msrb.mxu1 %v9575_v51  ;;  %v9610_v51 = vor.u32 %v8259_v34, %v6419_v57 }
  0xd5   : > { %v6733_v47 = vld [vmem:[%s9245_s21 + $0x660] sm:$0xf0]  ;;  %v8323_v21 = vld [vmem:[%s9245_s21 + $0x5e4] sm:$0xf0] }
  0xd6   : > { %v8134_v52 = vld [vmem:[%s9245_s21 + $0x4] sm:$0xf]  ;;  %11514 = vst [vmem:[#allocation48_spill] sm:$0xff] %v9577_v40  ;;  %v9583_v11 = vor.u32 %v8334_v32, %v6733_v47  ;;  %2282 = vmatpush.bf16.msrb.mxu2 %v9577_v40  ;;  %v6931_v42 = vld [vmem:[%s9245_s21 + $0x7c8] sm:$0xf]  ;;  %v9612_v29 = vor.u32 %v8323_v21, %v6675_v46 }
  0xd7   : > { %v5933_v10 = vld [vmem:[%s9245_s21 + $0x20] sm:$0xf0]  ;;  %11521 = vst [vmem:[#allocation55_spill] sm:$0xff] %v9610_v51  ;;  %v6131_v40 = vld [vmem:[%s9245_s21 + $0x188] sm:$0xf] }
  0xd8   : > { %v8198_v36 = vld [vmem:[%s9245_s21 + $0x204] sm:$0xf]  ;;  %11515 = vst [vmem:[#allocation49_spill] sm:$0xff] %v9583_v11  ;;  %v9592_v23 = vor.u32 %v8134_v52, %v5933_v10  ;;  %2296 = vmatpush.bf16.msrb.mxu3 %v9583_v11  ;;  %v9608_v10 = vor.u32 %v8195_v14, %v6163_v0  ;;  %v6643_v11 = vld [vmem:[%s9245_s21 + $0x588] sm:$0xf] }
  0xd9   : > { %v6189_v59 = vld [vmem:[%s9245_s21 + $0x220] sm:$0xf0]  ;;  %11522 = vst [vmem:[#allocation56_spill] sm:$0xff] %v9612_v29  ;;  %v6899_v14 = vld [vmem:[%s9245_s21 + $0x788] sm:$0xf] }
  0xda   : > { %v8262_v49 = vld [vmem:[%s9245_s21 + $0x404] sm:$0xf]  ;;  %11516 = vst [vmem:[#allocation50_spill] sm:$0xff] %v9592_v23  ;;  %v9599_v32 = vor.u32 %v8198_v36, %v6189_v59  ;;  %v8187_v36 = vld [vmem:[%s9245_s21 + $0x1a4] sm:$0xf0]  ;;  %2255 = vmatpush.bf16.msrb.mxu0 %v9592_v23 }
  0xdb   : > { %v6445_v20 = vld [vmem:[%s9245_s21 + $0x420] sm:$0xf0]  ;;  %11520 = vst [vmem:[#allocation54_spill] sm:$0xff] %v9608_v10  ;;  %v6387_v59 = vld [vmem:[%s9245_s21 + $0x388] sm:$0xf] }
  0xdc   : > { %v8326_v58 = vld [vmem:[%s9245_s21 + $0x604] sm:$0xf]  ;;  %11517 = vst [vmem:[#allocation51_spill] sm:$0xff] %v9599_v32  ;;  %v9601_v47 = vor.u32 %v8262_v49, %v6445_v20  ;;  %v9618_v49 = vor.u32 %v8387_v30, %v6931_v42  ;;  %v8251_v20 = vld [vmem:[%s9245_s21 + $0x3a4] sm:$0xf0]  ;;  %2269 = vmatpush.bf16.msrb.mxu1 %v9599_v32  ;;  %v9629_v30 = vor.u32 %v8187_v36, %v6131_v40 }
  0xdd   : > { %v6701_v41 = vld [vmem:[%s9245_s21 + $0x620] sm:$0xf0]  ;;  %v8379_v21 = vld [vmem:[%s9245_s21 + $0x7a4] sm:$0xf0]  ;;  %2256 = vmatmul.bf16.vlgmr.msrb.gmra.mxu0 %v9512_v50  ;;  %v6933_v32 = vld [vmem:[%s9245_s21 + $0x7e8] sm:$0xf0] }
  0xde   : > { %11518 = vst [vmem:[#allocation52_spill] sm:$0xff] %v9601_v47  ;;  %v9606_v52 = vor.u32 %v8326_v58, %v6701_v41  ;;  %v8315_v41 = vld [vmem:[%s9245_s21 + $0x5a4] sm:$0xf0]  ;;  %2283 = vmatpush.bf16.msrb.mxu2 %v9601_v47  ;;  %2304 = vmatpush.bf16.msra.mxu0 %v9608_v10  ;;  %v9633_v58 = vor.u32 %v8251_v20, %v6387_v59  ;;  %v6165_v47 = vld [vmem:[%s9245_s21 + $0x1e8] sm:$0xf0] }
  0xdf   : > { %11523 = vst [vmem:[#allocation57_spill] sm:$0xff] %v9618_v49  ;;  %v9635_v0 = vor.u32 %v8315_v41, %v6643_v11  ;;  %v6099_v42 = vld [vmem:[%s9245_s21 + $0x148] sm:$0xf]  ;;  %v9641_v46 = vor.u32 %v8379_v21, %v6899_v14  ;;  %2270 = vmatmul.bf16.vlgmr.msrb.gmra.mxu1 %v9522_v63 }
  0xe0   : > { %11519 = vst [vmem:[#allocation53_spill] sm:$0xff] %v9606_v52  ;;  %2297 = vmatpush.bf16.msrb.mxu3 %v9606_v52  ;;  %2318 = vmatpush.bf16.msra.mxu1 %v9610_v51  ;;  %v8179_v57 = vld [vmem:[%s9245_s21 + $0x164] sm:$0xf0] }
  0xe1   : > { %11524 = vst [vmem:[#allocation58_spill] sm:$0xff] %v9629_v30  ;;  %v6355_v34 = vld [vmem:[%s9245_s21 + $0x348] sm:$0xf]  ;;  %2284 = vmatmul.bf16.vlgmr.msrb.gmra.mxu2 %v9482_v9  ;;  %v9652_v11 = vor.u32 %v8179_v57, %v6099_v42 }
  0xe2   : > { %2332 = vmatpush.bf16.msra.mxu2 %v9612_v29  ;;  %11525 = vst [vmem:[#allocation59_spill] sm:$0xff] %v9633_v58  ;;  %v8243_v10 = vld [vmem:[%s9245_s21 + $0x364] sm:$0xf0]  ;;  %2305 = vmatpush.bf16.msra.mxu0 %v9629_v30 }
  0xe3   : > { %11526 = vst [vmem:[#allocation60_spill] sm:$0xff] %v9635_v0  ;;  %v6611_v40 = vld [vmem:[%s9245_s21 + $0x548] sm:$0xf]  ;;  %2298 = vmatmul.bf16.vlgmr.msrb.gmra.mxu3 %v9492_v25  ;;  %v9657_v20 = vor.u32 %v8243_v10, %v6355_v34 }
  0xe4   : > { %2346 = vmatpush.bf16.msra.mxu3 %v9618_v49  ;;  %11527 = vst [vmem:[#allocation61_spill] sm:$0xff] %v9641_v46  ;;  %v8307_v36 = vld [vmem:[%s9245_s21 + $0x564] sm:$0xf0]  ;;  %2319 = vmatpush.bf16.msra.mxu1 %v9633_v58 }
  0xe5   : > { %v6867_v29 = vld [vmem:[%s9245_s21 + $0x748] sm:$0xf]  ;;  %11528 = vst [vmem:[#allocation62_spill] sm:$0xff] %v9652_v11  ;;  %v9659_v41 = vor.u32 %v8307_v36, %v6611_v40 }
  0xe6   : > { %v8371_v59 = vld [vmem:[%s9245_s21 + $0x764] sm:$0xf0]  ;;  %2333 = vmatpush.bf16.msra.mxu2 %v9635_v0  ;;  %11529 = vst [vmem:[#allocation63_spill] sm:$0xff] %v9657_v20  ;;  %2306 = vmatpush.bf16.msra.mxu0 %v9652_v11 }
  0xe7   : > { %11530 = vst [vmem:[#allocation64_spill] sm:$0xff] %v9659_v41  ;;  %v6067_v14 = vld [vmem:[%s9245_s21 + $0x108] sm:$0xf]  ;;  %v9665_v42 = vor.u32 %v8371_v59, %v6867_v29 }
  0xe8   : > { %v8171_v21 = vld [vmem:[%s9245_s21 + $0x124] sm:$0xf0]  ;;  %2347 = vmatpush.bf16.msra.mxu3 %v9641_v46  ;;  %2320 = vmatpush.bf16.msra.mxu1 %v9657_v20 }
  0xe9   : > { %v6323_v49 = vld [vmem:[%s9245_s21 + $0x308] sm:$0xf]  ;;  %11531 = vst [vmem:[#allocation65_spill] sm:$0xff] %v9665_v42  ;;  %v9673_v40 = vor.u32 %v8171_v21, %v6067_v14 }
  0xea   : > { %v8235_v57 = vld [vmem:[%s9245_s21 + $0x324] sm:$0xf0]  ;;  %2334 = vmatpush.bf16.msra.mxu2 %v9659_v41 }
  0xeb   : > { %v6579_v30 = vld [vmem:[%s9245_s21 + $0x508] sm:$0xf]  ;;  %11532 = vst [vmem:[#allocation66_spill] sm:$0xff] %v9673_v40  ;;  %v9677_v29 = vor.u32 %v8235_v57, %v6323_v49  ;;  %2307 = vmatpush.bf16.msra.mxu0 %v9673_v40 }
  0xec   : > { %v8299_v58 = vld [vmem:[%s9245_s21 + $0x524] sm:$0xf0]  ;;  %2348 = vmatpush.bf16.msra.mxu3 %v9665_v42 }
  0xed   : > { %v6835_v10 = vld [vmem:[%s9245_s21 + $0x708] sm:$0xf]  ;;  %11533 = vst [vmem:[#allocation67_spill] sm:$0xff] %v9677_v29  ;;  %v9679_v36 = vor.u32 %v8299_v58, %v6579_v30  ;;  %2321 = vmatpush.bf16.msra.mxu1 %v9677_v29 }
  0xee   : > { %v8363_v34 = vld [vmem:[%s9245_s21 + $0x724] sm:$0xf0] }
  0xef   : > { %11534 = vst [vmem:[#allocation68_spill] sm:$0xff] %v9679_v36  ;;  %v6035_v59 = vld [vmem:[%s9245_s21 + $0xc8] sm:$0xf]  ;;  %v9685_v51 = vor.u32 %v8363_v34, %v6835_v10  ;;  %2335 = vmatpush.bf16.msra.mxu2 %v9679_v36 }
  0xf0   : > { %v8163_v46 = vld [vmem:[%s9245_s21 + $0xe4] sm:$0xf0] }
  0xf1   : > { %v6291_v0 = vld [vmem:[%s9245_s21 + $0x2c8] sm:$0xf]  ;;  %11535 = vst [vmem:[#allocation69_spill] sm:$0xff] %v9685_v51  ;;  %v9693_v58 = vor.u32 %v8163_v46, %v6035_v59  ;;  %2349 = vmatpush.bf16.msra.mxu3 %v9685_v51 }
  0xf2   : > { %v8227_v14 = vld [vmem:[%s9245_s21 + $0x2e4] sm:$0xf0] }
  0xf3   : > { %v6547_v21 = vld [vmem:[%s9245_s21 + $0x4c8] sm:$0xf]  ;;  %11536 = vst [vmem:[#allocation70_spill] sm:$0xff] %v9693_v58  ;;  %v9697_v57 = vor.u32 %v8227_v14, %v6291_v0  ;;  %2308 = vmatpush.bf16.msra.mxu0 %v9693_v58 }
  0xf4   : > { %v8291_v20 = vld [vmem:[%s9245_s21 + $0x4e4] sm:$0xf0] }
  0xf5   : > { %v6803_v49 = vld [vmem:[%s9245_s21 + $0x6c8] sm:$0xf]  ;;  %11537 = vst [vmem:[#allocation71_spill] sm:$0xff] %v9697_v57  ;;  %v9699_v10 = vor.u32 %v8291_v20, %v6547_v21  ;;  %2322 = vmatpush.bf16.msra.mxu1 %v9697_v57 }
  0xf6   : > { %v8355_v30 = vld [vmem:[%s9245_s21 + $0x6e4] sm:$0xf0] }
  0xf7   : > { %11538 = vst [vmem:[#allocation72_spill] sm:$0xff] %v9699_v10  ;;  %v6003_v34 = vld [vmem:[%s9245_s21 + $0x88] sm:$0xf]  ;;  %v9705_v11 = vor.u32 %v8355_v30, %v6803_v49  ;;  %2336 = vmatpush.bf16.msra.mxu2 %v9699_v10 }
  0xf8   : > { %v8155_v42 = vld [vmem:[%s9245_s21 + $0xa4] sm:$0xf0] }
  0xf9   : > { %v6259_v41 = vld [vmem:[%s9245_s21 + $0x288] sm:$0xf]  ;;  %11539 = vst [vmem:[#allocation73_spill] sm:$0xff] %v9705_v11  ;;  %v9713_v14 = vor.u32 %v8155_v42, %v6003_v34  ;;  %2350 = vmatpush.bf16.msra.mxu3 %v9705_v11 }
  0xfa   : > { %v8219_v46 = vld [vmem:[%s9245_s21 + $0x2a4] sm:$0xf0] }
  0xfb   : > { %v6515_v59 = vld [vmem:[%s9245_s21 + $0x488] sm:$0xf]  ;;  %11540 = vst [vmem:[#allocation74_spill] sm:$0xff] %v9713_v14  ;;  %v9717_v21 = vor.u32 %v8219_v46, %v6259_v41  ;;  %2309 = vmatpush.bf16.msra.mxu0 %v9713_v14 }
  0xfc   : > { %v8283_v29 = vld [vmem:[%s9245_s21 + $0x4a4] sm:$0xf0] }
  0xfd   : > { %v6771_v0 = vld [vmem:[%s9245_s21 + $0x688] sm:$0xf]  ;;  %11541 = vst [vmem:[#allocation75_spill] sm:$0xff] %v9717_v21  ;;  %v9719_v49 = vor.u32 %v8283_v29, %v6515_v59  ;;  %2323 = vmatpush.bf16.msra.mxu1 %v9717_v21 }
  0xfe   : > { %v8347_v20 = vld [vmem:[%s9245_s21 + $0x6a4] sm:$0xf0] }
  0xff   : > { %11542 = vst [vmem:[#allocation76_spill] sm:$0xff] %v9719_v49  ;;  %v5971_v30 = vld [vmem:[%s9245_s21 + $0x48] sm:$0xf]  ;;  %v9725_v58 = vor.u32 %v8347_v20, %v6771_v0  ;;  %2337 = vmatpush.bf16.msra.mxu2 %v9719_v49  ;;  %v8191_v49 = vld [vmem:[%s9245_s21 + $0x1cc] sm:$0xf] }
 0x100   : > { %v8147_v51 = vld [vmem:[%s9245_s21 + $0x64] sm:$0xf0] }
 0x101   : > { %v6227_v36 = vld [vmem:[%s9245_s21 + $0x248] sm:$0xf]  ;;  %11543 = vst [vmem:[#allocation77_spill] sm:$0xff] %v9725_v58  ;;  %v9733_v29 = vor.u32 %v8147_v51, %v5971_v30  ;;  %2351 = vmatpush.bf16.msra.mxu3 %v9725_v58  ;;  %v6677_v58 = vld [vmem:[%s9245_s21 + $0x5e8] sm:$0xf0] }
 0x102   : > { %v8211_v42 = vld [vmem:[%s9245_s21 + $0x264] sm:$0xf0] }
 0x103   : > { %v6483_v34 = vld [vmem:[%s9245_s21 + $0x448] sm:$0xf]  ;;  %11544 = vst [vmem:[#allocation78_spill] sm:$0xff] %v9733_v29  ;;  %v9739_v0 = vor.u32 %v8211_v42, %v6227_v36  ;;  %v8255_v36 = vld [vmem:[%s9245_s21 + $0x3cc] sm:$0xf]  ;;  %2310 = vmatpush.bf16.msra.mxu0 %v9733_v29 }
 0x104   : > { %v8275_v57 = vld [vmem:[%s9245_s21 + $0x464] sm:$0xf0]  ;;  %v6421_v42 = vld [vmem:[%s9245_s21 + $0x3e8] sm:$0xf0] }
 0x105   : > { %v6739_v10 = vld [vmem:[%s9245_s21 + $0x648] sm:$0xf]  ;;  %11545 = vst [vmem:[#allocation79_spill] sm:$0xff] %v9739_v0  ;;  %v9741_v20 = vor.u32 %v8275_v57, %v6483_v34  ;;  %v8319_v34 = vld [vmem:[%s9245_s21 + $0x5cc] sm:$0xf]  ;;  %2324 = vmatpush.bf16.msra.mxu1 %v9739_v0  ;;  %v9774_v0 = vor.u32 %v8255_v36, %v6421_v42 }
 0x106   : > { %v8339_v41 = vld [vmem:[%s9245_s21 + $0x664] sm:$0xf0]  ;;  %v8383_v29 = vld [vmem:[%s9245_s21 + $0x7cc] sm:$0xf]  ;;  %v9776_v23 = vor.u32 %v8319_v34, %v6677_v58 }
 0x107   : > { %v5939_v46 = vld [vmem:[%s9245_s21 + $0x8] sm:$0xf]  ;;  %11546 = vst [vmem:[#allocation80_spill] sm:$0xff] %v9741_v20  ;;  %v9747_v51 = vor.u32 %v8339_v41, %v6739_v10  ;;  %2338 = vmatpush.bf16.msra.mxu2 %v9741_v20  ;;  %v8183_v20 = vld [vmem:[%s9245_s21 + $0x18c] sm:$0xf] }
 0x108   : > { %v8139_v59 = vld [vmem:[%s9245_s21 + $0x24] sm:$0xf0]  ;;  %11553 = vst [vmem:[#allocation87_spill] sm:$0xff] %v9774_v0  ;;  %v6901_v58 = vld [vmem:[%s9245_s21 + $0x7a8] sm:$0xf0] }
 0x109   : > { %v6195_v11 = vld [vmem:[%s9245_s21 + $0x208] sm:$0xf]  ;;  %11547 = vst [vmem:[#allocation81_spill] sm:$0xff] %v9747_v51  ;;  %v9756_v57 = vor.u32 %v8139_v59, %v5939_v46  ;;  %2352 = vmatpush.bf16.msra.mxu3 %v9747_v51  ;;  %v9772_v59 = vor.u32 %v8191_v49, %v6165_v47  ;;  %v8311_v51 = vld [vmem:[%s9245_s21 + $0x58c] sm:$0xf] }
 0x10a   : > { %v8203_v14 = vld [vmem:[%s9245_s21 + $0x224] sm:$0xf0]  ;;  %11554 = vst [vmem:[#allocation88_spill] sm:$0xff] %v9776_v23  ;;  %v8375_v47 = vld [vmem:[%s9245_s21 + $0x78c] sm:$0xf] }
 0x10b   : > { %v6451_v40 = vld [vmem:[%s9245_s21 + $0x408] sm:$0xf]  ;;  %11548 = vst [vmem:[#allocation82_spill] sm:$0xff] %v9756_v57  ;;  %v9763_v10 = vor.u32 %v8203_v14, %v6195_v11  ;;  %v6133_v11 = vld [vmem:[%s9245_s21 + $0x1a8] sm:$0xf0]  ;;  %2311 = vmatpush.bf16.msra.mxu0 %v9756_v57  ;;  %v9805_v34 = vor.u32 %v8375_v47, %v6901_v58 }
 0x10c   : > { %v8267_v30 = vld [vmem:[%s9245_s21 + $0x424] sm:$0xf0]  ;;  %11552 = vst [vmem:[#allocation86_spill] sm:$0xff] %v9772_v59  ;;  %v8247_v14 = vld [vmem:[%s9245_s21 + $0x38c] sm:$0xf] }
 0x10d   : > { %v6707_v21 = vld [vmem:[%s9245_s21 + $0x608] sm:$0xf]  ;;  %11549 = vst [vmem:[#allocation83_spill] sm:$0xff] %v9763_v10  ;;  %v9765_v41 = vor.u32 %v8267_v30, %v6451_v40  ;;  %v9782_v40 = vor.u32 %v8383_v29, %v6933_v32  ;;  %v6389_v30 = vld [vmem:[%s9245_s21 + $0x3a8] sm:$0xf0]  ;;  %2325 = vmatpush.bf16.msra.mxu1 %v9763_v10  ;;  %v9793_v32 = vor.u32 %v8183_v20, %v6133_v11 }
 0x10e   : > { %v8331_v52 = vld [vmem:[%s9245_s21 + $0x624] sm:$0xf0]  ;;  %v8175_v29 = vld [vmem:[%s9245_s21 + $0x14c] sm:$0xf]  ;;  %11559 = vst [vmem:[#allocation93_spill] sm:$0xff] %v9805_v34  ;;  %2312 = vmatmul.bf16.vlgmr.msra.gmra.mxu0 %v9512_v50 }
 0x10f   : > { %11550 = vst [vmem:[#allocation84_spill] sm:$0xff] %v9765_v41  ;;  %v9770_v46 = vor.u32 %v8331_v52, %v6707_v21  ;;  %v6645_v52 = vld [vmem:[%s9245_s21 + $0x5a8] sm:$0xf0]  ;;  %2339 = vmatpush.bf16.msra.mxu2 %v9765_v41  ;;  %2360 = vmatpush.bf16.msrb.mxu0 %v9772_v59  ;;  %v9797_v21 = vor.u32 %v8247_v14, %v6389_v30  ;;  %v8196_v41 = vld [vmem:[%s9245_s21 + $0x1ec] sm:$0xf0] }
 0x110   : > { %11555 = vst [vmem:[#allocation89_spill] sm:$0xff] %v9782_v40  ;;  %v9799_v49 = vor.u32 %v8311_v51, %v6645_v52  ;;  %v6101_v36 = vld [vmem:[%s9245_s21 + $0x168] sm:$0xf0]  ;;  %2326 = vmatmul.bf16.vlgmr.msra.gmra.mxu1 %v9522_v63  ;;  %v8388_v10 = vld [vmem:[%s9245_s21 + $0x7ec] sm:$0xf0] }
 0x111   : > { %11551 = vst [vmem:[#allocation85_spill] sm:$0xff] %v9770_v46  ;;  %2353 = vmatpush.bf16.msra.mxu3 %v9770_v46  ;;  %2374 = vmatpush.bf16.msrb.mxu1 %v9774_v0  ;;  %v8239_v42 = vld [vmem:[%s9245_s21 + $0x34c] sm:$0xf]  ;;  %v9816_v51 = vor.u32 %v8175_v29, %v6101_v36 }
 0x112   : > { %11556 = vst [vmem:[#allocation90_spill] sm:$0xff] %v9793_v32  ;;  %v6357_v59 = vld [vmem:[%s9245_s21 + $0x368] sm:$0xf0]  ;;  %2340 = vmatmul.bf16.vlgmr.msra.gmra.mxu2 %v9482_v9 }
 0x113   : > { %2388 = vmatpush.bf16.msrb.mxu2 %v9776_v23  ;;  %11557 = vst [vmem:[#allocation91_spill] sm:$0xff] %v9797_v21  ;;  %v8303_v20 = vld [vmem:[%s9245_s21 + $0x54c] sm:$0xf]  ;;  %2361 = vmatpush.bf16.msrb.mxu0 %v9793_v32  ;;  %v9821_v30 = vor.u32 %v8239_v42, %v6357_v59 }
 0x114   : > { %11558 = vst [vmem:[#allocation92_spill] sm:$0xff] %v9799_v49  ;;  %v6613_v11 = vld [vmem:[%s9245_s21 + $0x568] sm:$0xf0]  ;;  %2354 = vmatmul.bf16.vlgmr.msra.gmra.mxu3 %v9492_v25 }
 0x115   : > { %2402 = vmatpush.bf16.msrb.mxu3 %v9782_v40  ;;  %v8367_v23 = vld [vmem:[%s9245_s21 + $0x74c] sm:$0xf]  ;;  %11560 = vst [vmem:[#allocation94_spill] sm:$0xff] %v9816_v51  ;;  %2375 = vmatpush.bf16.msrb.mxu1 %v9797_v21  ;;  %v9823_v52 = vor.u32 %v8303_v20, %v6613_v11 }
 0x116   : > { %v6869_v14 = vld [vmem:[%s9245_s21 + $0x768] sm:$0xf0]  ;;  %11561 = vst [vmem:[#allocation95_spill] sm:$0xff] %v9821_v30 }
 0x117   : > { %2389 = vmatpush.bf16.msrb.mxu2 %v9799_v49  ;;  %11562 = vst [vmem:[#allocation96_spill] sm:$0xff] %v9823_v52  ;;  %v8167_v47 = vld [vmem:[%s9245_s21 + $0x10c] sm:$0xf]  ;;  %v9829_v29 = vor.u32 %v8367_v23, %v6869_v14  ;;  %2362 = vmatpush.bf16.msrb.mxu0 %v9816_v51 }
 0x118   : > { %v6069_v58 = vld [vmem:[%s9245_s21 + $0x128] sm:$0xf0] }
 0x119   : > { %v8231_v40 = vld [vmem:[%s9245_s21 + $0x30c] sm:$0xf]  ;;  %2403 = vmatpush.bf16.msrb.mxu3 %v9805_v34  ;;  %11563 = vst [vmem:[#allocation97_spill] sm:$0xff] %v9829_v29  ;;  %v9837_v20 = vor.u32 %v8167_v47, %v6069_v58  ;;  %2376 = vmatpush.bf16.msrb.mxu1 %v9821_v30 }
 0x11a   : > { %v6325_v36 = vld [vmem:[%s9245_s21 + $0x328] sm:$0xf0] }
 0x11b   : > { %v8295_v32 = vld [vmem:[%s9245_s21 + $0x50c] sm:$0xf]  ;;  %11564 = vst [vmem:[#allocation98_spill] sm:$0xff] %v9837_v20  ;;  %2390 = vmatpush.bf16.msrb.mxu2 %v9823_v52  ;;  %v9841_v23 = vor.u32 %v8231_v40, %v6325_v36  ;;  %2363 = vmatpush.bf16.msrb.mxu0 %v9837_v20 }
 0x11c   : > { %v6581_v21 = vld [vmem:[%s9245_s21 + $0x528] sm:$0xf0] }
 0x11d   : > { %v8359_v59 = vld [vmem:[%s9245_s21 + $0x70c] sm:$0xf]  ;;  %11565 = vst [vmem:[#allocation99_spill] sm:$0xff] %v9841_v23  ;;  %v9843_v11 = vor.u32 %v8295_v32, %v6581_v21  ;;  %2404 = vmatpush.bf16.msrb.mxu3 %v9829_v29  ;;  %2377 = vmatpush.bf16.msrb.mxu1 %v9841_v23 }
 0x11e   : > { %v6837_v42 = vld [vmem:[%s9245_s21 + $0x728] sm:$0xf0] }
 0x11f   : > { %11566 = vst [vmem:[#allocation100_spill] sm:$0xff] %v9843_v11  ;;  %v8159_v14 = vld [vmem:[%s9245_s21 + $0xcc] sm:$0xf]  ;;  %v9849_v0 = vor.u32 %v8359_v59, %v6837_v42  ;;  %2391 = vmatpush.bf16.msrb.mxu2 %v9843_v11 }
 0x120   : > { %v6037_v34 = vld [vmem:[%s9245_s21 + $0xe8] sm:$0xf0] }
 0x121   : > { %v8223_v49 = vld [vmem:[%s9245_s21 + $0x2cc] sm:$0xf]  ;;  %11567 = vst [vmem:[#allocation101_spill] sm:$0xff] %v9849_v0  ;;  %v9857_v21 = vor.u32 %v8159_v14, %v6037_v34  ;;  %2405 = vmatpush.bf16.msrb.mxu3 %v9849_v0 }
 0x122   : > { %v6293_v47 = vld [vmem:[%s9245_s21 + $0x2e8] sm:$0xf0] }
 0x123   : > { %v8287_v58 = vld [vmem:[%s9245_s21 + $0x4cc] sm:$0xf]  ;;  %11568 = vst [vmem:[#allocation102_spill] sm:$0xff] %v9857_v21  ;;  %v9861_v36 = vor.u32 %v8223_v49, %v6293_v47  ;;  %2364 = vmatpush.bf16.msrb.mxu0 %v9857_v21 }
 0x124   : > { %v6549_v30 = vld [vmem:[%s9245_s21 + $0x4e8] sm:$0xf0] }
 0x125   : > { %v8351_v40 = vld [vmem:[%s9245_s21 + $0x6cc] sm:$0xf]  ;;  %11569 = vst [vmem:[#allocation103_spill] sm:$0xff] %v9861_v36  ;;  %v9863_v59 = vor.u32 %v8287_v58, %v6549_v30  ;;  %2378 = vmatpush.bf16.msrb.mxu1 %v9861_v36 }
 0x126   : > { %v6805_v32 = vld [vmem:[%s9245_s21 + $0x6e8] sm:$0xf0] }
 0x127   : > { %11570 = vst [vmem:[#allocation104_spill] sm:$0xff] %v9863_v59  ;;  %v8151_v42 = vld [vmem:[%s9245_s21 + $0x8c] sm:$0xf]  ;;  %v9869_v51 = vor.u32 %v8351_v40, %v6805_v32  ;;  %2392 = vmatpush.bf16.msrb.mxu2 %v9863_v59 }
 0x128   : > { %v6005_v29 = vld [vmem:[%s9245_s21 + $0xa8] sm:$0xf0] }
 0x129   : > { %v8215_v52 = vld [vmem:[%s9245_s21 + $0x28c] sm:$0xf]  ;;  %11571 = vst [vmem:[#allocation105_spill] sm:$0xff] %v9869_v51  ;;  %v9877_v47 = vor.u32 %v8151_v42, %v6005_v29  ;;  %2406 = vmatpush.bf16.msrb.mxu3 %v9869_v51 }
 0x12a   : > { %v6261_v34 = vld [vmem:[%s9245_s21 + $0x2a8] sm:$0xf0] }
 0x12b   : > { %v8279_v14 = vld [vmem:[%s9245_s21 + $0x48c] sm:$0xf]  ;;  %11572 = vst [vmem:[#allocation106_spill] sm:$0xff] %v9877_v47  ;;  %v9881_v58 = vor.u32 %v8215_v52, %v6261_v34  ;;  %2365 = vmatpush.bf16.msrb.mxu0 %v9877_v47 }
 0x12c   : > { %v6517_v23 = vld [vmem:[%s9245_s21 + $0x4a8] sm:$0xf0] }
 0x12d   : > { %v8343_v49 = vld [vmem:[%s9245_s21 + $0x68c] sm:$0xf]  ;;  %11573 = vst [vmem:[#allocation107_spill] sm:$0xff] %v9881_v58  ;;  %v9883_v40 = vor.u32 %v8279_v14, %v6517_v23  ;;  %2379 = vmatpush.bf16.msrb.mxu1 %v9881_v58 }
 0x12e   : > { %v6773_v30 = vld [vmem:[%s9245_s21 + $0x6a8] sm:$0xf0] }
 0x12f   : > { %11574 = vst [vmem:[#allocation108_spill] sm:$0xff] %v9883_v40  ;;  %v8143_v32 = vld [vmem:[%s9245_s21 + $0x4c] sm:$0xf]  ;;  %v9889_v21 = vor.u32 %v8343_v49, %v6773_v30  ;;  %2393 = vmatpush.bf16.msrb.mxu2 %v9883_v40  ;;  %v6171_v40 = vld [vmem:[%s9245_s21 + $0x1d0] sm:$0xf] }
 0x130   : > { %v5973_v0 = vld [vmem:[%s9245_s21 + $0x68] sm:$0xf0] }
 0x131   : > { %v8207_v11 = vld [vmem:[%s9245_s21 + $0x24c] sm:$0xf]  ;;  %11575 = vst [vmem:[#allocation109_spill] sm:$0xff] %v9889_v21  ;;  %v9897_v23 = vor.u32 %v8143_v32, %v5973_v0  ;;  %2407 = vmatpush.bf16.msrb.mxu3 %v9889_v21  ;;  %v8324_v21 = vld [vmem:[%s9245_s21 + $0x5ec] sm:$0xf0] }
 0x132   : > { %v6229_v29 = vld [vmem:[%s9245_s21 + $0x268] sm:$0xf0] }
 0x133   : > { %v8271_v42 = vld [vmem:[%s9245_s21 + $0x44c] sm:$0xf]  ;;  %11576 = vst [vmem:[#allocation110_spill] sm:$0xff] %v9897_v23  ;;  %v9903_v49 = vor.u32 %v8207_v11, %v6229_v29  ;;  %v6427_v11 = vld [vmem:[%s9245_s21 + $0x3d0] sm:$0xf]  ;;  %2366 = vmatpush.bf16.msrb.mxu0 %v9897_v23 }
 0x134   : > { %v6485_v36 = vld [vmem:[%s9245_s21 + $0x468] sm:$0xf0]  ;;  %v8260_v29 = vld [vmem:[%s9245_s21 + $0x3ec] sm:$0xf0] }
 0x135   : > { %v8335_v59 = vld [vmem:[%s9245_s21 + $0x64c] sm:$0xf]  ;;  %11577 = vst [vmem:[#allocation111_spill] sm:$0xff] %v9903_v49  ;;  %v9905_v30 = vor.u32 %v8271_v42, %v6485_v36  ;;  %v6683_v42 = vld [vmem:[%s9245_s21 + $0x5d0] sm:$0xf]  ;;  %2380 = vmatpush.bf16.msrb.mxu1 %v9903_v49  ;;  %v9938_v49 = vor.u32 %v8260_v29, %v6427_v11 }
 0x136   : > { %v6741_v52 = vld [vmem:[%s9245_s21 + $0x668] sm:$0xf0]  ;;  %v6939_v23 = vld [vmem:[%s9245_s21 + $0x7d0] sm:$0xf]  ;;  %v9940_v57 = vor.u32 %v8324_v21, %v6683_v42 }
 0x137   : > { %v8135_v34 = vld [vmem:[%s9245_s21 + $0xc] sm:$0xf]  ;;  %11578 = vst [vmem:[#allocation112_spill] sm:$0xff] %v9905_v30  ;;  %v9911_v0 = vor.u32 %v8335_v59, %v6741_v52  ;;  %2394 = vmatpush.bf16.msrb.mxu2 %v9905_v30  ;;  %v6139_v30 = vld [vmem:[%s9245_s21 + $0x190] sm:$0xf] }
 0x138   : > { %v5941_v14 = vld [vmem:[%s9245_s21 + $0x28] sm:$0xf0]  ;;  %11585 = vst [vmem:[#allocation119_spill] sm:$0xff] %v9938_v49  ;;  %v8380_v21 = vld [vmem:[%s9245_s21 + $0x7ac] sm:$0xf0] }
 0x139   : > { %v8199_v51 = vld [vmem:[%s9245_s21 + $0x20c] sm:$0xf]  ;;  %11579 = vst [vmem:[#allocation113_spill] sm:$0xff] %v9911_v0  ;;  %v9920_v36 = vor.u32 %v8135_v34, %v5941_v14  ;;  %2408 = vmatpush.bf16.msrb.mxu3 %v9911_v0  ;;  %v9936_v14 = vor.u32 %v8196_v41, %v6171_v40  ;;  %v6651_v0 = vld [vmem:[%s9245_s21 + $0x590] sm:$0xf] }
 0x13a   : > { %v6197_v47 = vld [vmem:[%s9245_s21 + $0x228] sm:$0xf0]  ;;  %11586 = vst [vmem:[#allocation120_spill] sm:$0xff] %v9940_v57  ;;  %v6907_v41 = vld [vmem:[%s9245_s21 + $0x790] sm:$0xf] }
 0x13b   : > { %v8263_v20 = vld [vmem:[%s9245_s21 + $0x40c] sm:$0xf]  ;;  %11580 = vst [vmem:[#allocation114_spill] sm:$0xff] %v9920_v36  ;;  %v9927_v59 = vor.u32 %v8199_v51, %v6197_v47  ;;  %v8188_v51 = vld [vmem:[%s9245_s21 + $0x1ac] sm:$0xf0]  ;;  %2367 = vmatpush.bf16.msrb.mxu0 %v9920_v36  ;;  %v9969_v42 = vor.u32 %v8380_v21, %v6907_v41 }
 0x13c   : > { %v6453_v32 = vld [vmem:[%s9245_s21 + $0x428] sm:$0xf0]  ;;  %11584 = vst [vmem:[#allocation118_spill] sm:$0xff] %v9936_v14  ;;  %v6395_v47 = vld [vmem:[%s9245_s21 + $0x390] sm:$0xf] }
 0x13d   : > { %v8327_v58 = vld [vmem:[%s9245_s21 + $0x60c] sm:$0xf]  ;;  %11581 = vst [vmem:[#allocation115_spill] sm:$0xff] %v9927_v59  ;;  %v9929_v52 = vor.u32 %v8263_v20, %v6453_v32  ;;  %v9946_v20 = vor.u32 %v8388_v10, %v6939_v23  ;;  %v8252_v32 = vld [vmem:[%s9245_s21 + $0x3ac] sm:$0xf0]  ;;  %2381 = vmatpush.bf16.msrb.mxu1 %v9927_v59  ;;  %v9957_v10 = vor.u32 %v8188_v51, %v6139_v30 }
 0x13e   : > { %v6709_v46 = vld [vmem:[%s9245_s21 + $0x628] sm:$0xf0]  ;;  %v6107_v23 = vld [vmem:[%s9245_s21 + $0x150] sm:$0xf]  ;;  %11591 = vst [vmem:[#allocation125_spill] sm:$0xff] %v9969_v42  ;;  %2368 = vmatmul.bf16.vlgmr.msrb.gmra.mxu0 %v9512_v50 }
 0x13f   : > { %11582 = vst [vmem:[#allocation116_spill] sm:$0xff] %v9929_v52  ;;  %v9934_v34 = vor.u32 %v8327_v58, %v6709_v46  ;;  %v8316_v46 = vld [vmem:[%s9245_s21 + $0x5ac] sm:$0xf0]  ;;  %2395 = vmatpush.bf16.msrb.mxu2 %v9929_v52  ;;  %2416 = vmatpush.bf16.msra.mxu0 %v9936_v14  ;;  %v9961_v58 = vor.u32 %v8252_v32, %v6395_v47  ;;  %v6173_v52 = vld [vmem:[%s9245_s21 + $0x1f0] sm:$0xf0] }
 0x140   : > { %11587 = vst [vmem:[#allocation121_spill] sm:$0xff] %v9946_v20  ;;  %v9963_v40 = vor.u32 %v8316_v46, %v6651_v0  ;;  %v8180_v11 = vld [vmem:[%s9245_s21 + $0x16c] sm:$0xf0]  ;;  %2382 = vmatmul.bf16.vlgmr.msrb.gmra.mxu1 %v9522_v63  ;;  %v6941_v59 = vld [vmem:[%s9245_s21 + $0x7f0] sm:$0xf0] }
 0x141   : > { %11583 = vst [vmem:[#allocation117_spill] sm:$0xff] %v9934_v34  ;;  %2409 = vmatpush.bf16.msrb.mxu3 %v9934_v34  ;;  %2430 = vmatpush.bf16.msra.mxu1 %v9938_v49  ;;  %v6363_v29 = vld [vmem:[%s9245_s21 + $0x350] sm:$0xf]  ;;  %v9980_v0 = vor.u32 %v8180_v11, %v6107_v23 }
 0x142   : > { %11588 = vst [vmem:[#allocation122_spill] sm:$0xff] %v9957_v10  ;;  %v8244_v14 = vld [vmem:[%s9245_s21 + $0x36c] sm:$0xf0]  ;;  %2396 = vmatmul.bf16.vlgmr.msrb.gmra.mxu2 %v9482_v9 }
 0x143   : > { %2444 = vmatpush.bf16.msra.mxu2 %v9940_v57  ;;  %11589 = vst [vmem:[#allocation123_spill] sm:$0xff] %v9961_v58  ;;  %v6619_v30 = vld [vmem:[%s9245_s21 + $0x550] sm:$0xf]  ;;  %2417 = vmatpush.bf16.msra.mxu0 %v9957_v10  ;;  %v9985_v32 = vor.u32 %v8244_v14, %v6363_v29 }
 0x144   : > { %11590 = vst [vmem:[#allocation124_spill] sm:$0xff] %v9963_v40  ;;  %v8308_v51 = vld [vmem:[%s9245_s21 + $0x56c] sm:$0xf0]  ;;  %2410 = vmatmul.bf16.vlgmr.msrb.gmra.mxu3 %v9492_v25 }
 0x145   : > { %2458 = vmatpush.bf16.msra.mxu3 %v9946_v20  ;;  %v6875_v57 = vld [vmem:[%s9245_s21 + $0x750] sm:$0xf]  ;;  %11592 = vst [vmem:[#allocation126_spill] sm:$0xff] %v9980_v0  ;;  %2431 = vmatpush.bf16.msra.mxu1 %v9961_v58  ;;  %v9987_v46 = vor.u32 %v8308_v51, %v6619_v30 }
 0x146   : > { %v8372_v47 = vld [vmem:[%s9245_s21 + $0x76c] sm:$0xf0]  ;;  %11593 = vst [vmem:[#allocation127_spill] sm:$0xff] %v9985_v32 }
 0x147   : > { %2445 = vmatpush.bf16.msra.mxu2 %v9963_v40  ;;  %11594 = vst [vmem:[#allocation128_spill] sm:$0xff] %v9987_v46  ;;  %v6075_v41 = vld [vmem:[%s9245_s21 + $0x110] sm:$0xf]  ;;  %v9993_v23 = vor.u32 %v8372_v47, %v6875_v57  ;;  %2418 = vmatpush.bf16.msra.mxu0 %v9980_v0 }
 0x148   : > { %v8172_v21 = vld [vmem:[%s9245_s21 + $0x12c] sm:$0xf0] }
 0x149   : > { %v6331_v20 = vld [vmem:[%s9245_s21 + $0x310] sm:$0xf]  ;;  %2459 = vmatpush.bf16.msra.mxu3 %v9969_v42  ;;  %11595 = vst [vmem:[#allocation129_spill] sm:$0xff] %v9993_v23  ;;  %v10001_v30 = vor.u32 %v8172_v21, %v6075_v41  ;;  %2432 = vmatpush.bf16.msra.mxu1 %v9985_v32 }
 0x14a   : > { %v8236_v11 = vld [vmem:[%s9245_s21 + $0x32c] sm:$0xf0] }
 0x14b   : > { %v6587_v10 = vld [vmem:[%s9245_s21 + $0x510] sm:$0xf]  ;;  %11596 = vst [vmem:[#allocation130_spill] sm:$0xff] %v10001_v30  ;;  %2446 = vmatpush.bf16.msra.mxu2 %v9987_v46  ;;  %v10005_v57 = vor.u32 %v8236_v11, %v6331_v20  ;;  %2419 = vmatpush.bf16.msra.mxu0 %v10001_v30 }
 0x14c   : > { %v8300_v58 = vld [vmem:[%s9245_s21 + $0x52c] sm:$0xf0] }
 0x14d   : > { %v6843_v14 = vld [vmem:[%s9245_s21 + $0x710] sm:$0xf]  ;;  %11597 = vst [vmem:[#allocation131_spill] sm:$0xff] %v10005_v57  ;;  %v10007_v51 = vor.u32 %v8300_v58, %v6587_v10  ;;  %2460 = vmatpush.bf16.msra.mxu3 %v9993_v23  ;;  %2433 = vmatpush.bf16.msra.mxu1 %v10005_v57 }
 0x14e   : > { %v8364_v29 = vld [vmem:[%s9245_s21 + $0x72c] sm:$0xf0] }
 0x14f   : > { %11598 = vst [vmem:[#allocation132_spill] sm:$0xff] %v10007_v51  ;;  %v6043_v47 = vld [vmem:[%s9245_s21 + $0xd0] sm:$0xf]  ;;  %v10013_v49 = vor.u32 %v8364_v29, %v6843_v14  ;;  %2447 = vmatpush.bf16.msra.mxu2 %v10007_v51 }
 0x150   : > { %v8164_v42 = vld [vmem:[%s9245_s21 + $0xec] sm:$0xf0] }
 0x151   : > { %v6299_v40 = vld [vmem:[%s9245_s21 + $0x2d0] sm:$0xf]  ;;  %11599 = vst [vmem:[#allocation133_spill] sm:$0xff] %v10013_v49  ;;  %v10021_v58 = vor.u32 %v8164_v42, %v6043_v47  ;;  %2461 = vmatpush.bf16.msra.mxu3 %v10013_v49 }
 0x152   : > { %v8228_v41 = vld [vmem:[%s9245_s21 + $0x2ec] sm:$0xf0] }
 0x153   : > { %v6555_v21 = vld [vmem:[%s9245_s21 + $0x4d0] sm:$0xf]  ;;  %11600 = vst [vmem:[#allocation134_spill] sm:$0xff] %v10021_v58  ;;  %v10025_v11 = vor.u32 %v8228_v41, %v6299_v40  ;;  %2420 = vmatpush.bf16.msra.mxu0 %v10021_v58 }
 0x154   : > { %v8292_v32 = vld [vmem:[%s9245_s21 + $0x4ec] sm:$0xf0] }
 0x155   : > { %v6811_v20 = vld [vmem:[%s9245_s21 + $0x6d0] sm:$0xf]  ;;  %11601 = vst [vmem:[#allocation135_spill] sm:$0xff] %v10025_v11  ;;  %v10027_v14 = vor.u32 %v8292_v32, %v6555_v21  ;;  %2434 = vmatpush.bf16.msra.mxu1 %v10025_v11 }
 0x156   : > { %v8356_v10 = vld [vmem:[%s9245_s21 + $0x6ec] sm:$0xf0] }
 0x157   : > { %11602 = vst [vmem:[#allocation136_spill] sm:$0xff] %v10027_v14  ;;  %v6011_v29 = vld [vmem:[%s9245_s21 + $0x90] sm:$0xf]  ;;  %v10033_v0 = vor.u32 %v8356_v10, %v6811_v20  ;;  %2448 = vmatpush.bf16.msra.mxu2 %v10027_v14 }
 0x158   : > { %v8156_v23 = vld [vmem:[%s9245_s21 + $0xac] sm:$0xf0] }
 0x159   : > { %v6267_v46 = vld [vmem:[%s9245_s21 + $0x290] sm:$0xf]  ;;  %11603 = vst [vmem:[#allocation137_spill] sm:$0xff] %v10033_v0  ;;  %v10041_v41 = vor.u32 %v8156_v23, %v6011_v29  ;;  %2462 = vmatpush.bf16.msra.mxu3 %v10033_v0 }
 0x15a   : > { %v8220_v42 = vld [vmem:[%s9245_s21 + $0x2ac] sm:$0xf0] }
 0x15b   : > { %v6523_v47 = vld [vmem:[%s9245_s21 + $0x490] sm:$0xf]  ;;  %11604 = vst [vmem:[#allocation138_spill] sm:$0xff] %v10041_v41  ;;  %v10045_v21 = vor.u32 %v8220_v42, %v6267_v46  ;;  %2421 = vmatpush.bf16.msra.mxu0 %v10041_v41 }
 0x15c   : > { %v8284_v57 = vld [vmem:[%s9245_s21 + $0x4ac] sm:$0xf0] }
 0x15d   : > { %v6779_v40 = vld [vmem:[%s9245_s21 + $0x690] sm:$0xf]  ;;  %11605 = vst [vmem:[#allocation139_spill] sm:$0xff] %v10045_v21  ;;  %v10047_v20 = vor.u32 %v8284_v57, %v6523_v47  ;;  %2435 = vmatpush.bf16.msra.mxu1 %v10045_v21 }
 0x15e   : > { %v8348_v32 = vld [vmem:[%s9245_s21 + $0x6ac] sm:$0xf0] }
 0x15f   : > { %11606 = vst [vmem:[#allocation140_spill] sm:$0xff] %v10047_v20  ;;  %v5979_v10 = vld [vmem:[%s9245_s21 + $0x50] sm:$0xf]  ;;  %v10053_v58 = vor.u32 %v8348_v32, %v6779_v40  ;;  %2449 = vmatpush.bf16.msra.mxu2 %v10047_v20  ;;  %v8192_v20 = vld [vmem:[%s9245_s21 + $0x1d4] sm:$0xf] }
 0x160   : > { %v8148_v49 = vld [vmem:[%s9245_s21 + $0x6c] sm:$0xf0] }
 0x161   : > { %v6235_v51 = vld [vmem:[%s9245_s21 + $0x250] sm:$0xf]  ;;  %11607 = vst [vmem:[#allocation141_spill] sm:$0xff] %v10053_v58  ;;  %v10061_v57 = vor.u32 %v8148_v49, %v5979_v10  ;;  %2463 = vmatpush.bf16.msra.mxu3 %v10053_v58  ;;  %v6685_v58 = vld [vmem:[%s9245_s21 + $0x5f0] sm:$0xf0] }
 0x162   : > { %v8212_v23 = vld [vmem:[%s9245_s21 + $0x26c] sm:$0xf0] }
 0x163   : > { %v6491_v29 = vld [vmem:[%s9245_s21 + $0x450] sm:$0xf]  ;;  %11608 = vst [vmem:[#allocation142_spill] sm:$0xff] %v10061_v57  ;;  %v10067_v40 = vor.u32 %v8212_v23, %v6235_v51  ;;  %v8256_v51 = vld [vmem:[%s9245_s21 + $0x3d4] sm:$0xf]  ;;  %2422 = vmatpush.bf16.msra.mxu0 %v10061_v57 }
 0x164   : > { %v8276_v11 = vld [vmem:[%s9245_s21 + $0x46c] sm:$0xf0]  ;;  %v6429_v23 = vld [vmem:[%s9245_s21 + $0x3f0] sm:$0xf0] }
 0x165   : > { %v6747_v14 = vld [vmem:[%s9245_s21 + $0x650] sm:$0xf]  ;;  %11609 = vst [vmem:[#allocation143_spill] sm:$0xff] %v10067_v40  ;;  %v10069_v32 = vor.u32 %v8276_v11, %v6491_v29  ;;  %v8320_v29 = vld [vmem:[%s9245_s21 + $0x5d4] sm:$0xf]  ;;  %2436 = vmatpush.bf16.msra.mxu1 %v10067_v40  ;;  %v10102_v40 = vor.u32 %v8256_v51, %v6429_v23 }
 0x166   : > { %v8340_v46 = vld [vmem:[%s9245_s21 + $0x66c] sm:$0xf0]  ;;  %v8384_v57 = vld [vmem:[%s9245_s21 + $0x7d4] sm:$0xf]  ;;  %v10104_v36 = vor.u32 %v8320_v29, %v6685_v58 }
 0x167   : > { %v5947_v42 = vld [vmem:[%s9245_s21 + $0x10] sm:$0xf]  ;;  %11610 = vst [vmem:[#allocation144_spill] sm:$0xff] %v10069_v32  ;;  %v10075_v49 = vor.u32 %v8340_v46, %v6747_v14  ;;  %2450 = vmatpush.bf16.msra.mxu2 %v10069_v32  ;;  %v8184_v32 = vld [vmem:[%s9245_s21 + $0x194] sm:$0xf] }
 0x168   : > { %v8140_v47 = vld [vmem:[%s9245_s21 + $0x2c] sm:$0xf0]  ;;  %11617 = vst [vmem:[#allocation151_spill] sm:$0xff] %v10102_v40  ;;  %v6909_v58 = vld [vmem:[%s9245_s21 + $0x7b0] sm:$0xf0] }
 0x169   : > { %v6203_v0 = vld [vmem:[%s9245_s21 + $0x210] sm:$0xf]  ;;  %11611 = vst [vmem:[#allocation145_spill] sm:$0xff] %v10075_v49  ;;  %v10084_v11 = vor.u32 %v8140_v47, %v5947_v42  ;;  %2464 = vmatpush.bf16.msra.mxu3 %v10075_v49  ;;  %v10100_v47 = vor.u32 %v8192_v20, %v6173_v52  ;;  %v8312_v49 = vld [vmem:[%s9245_s21 + $0x594] sm:$0xf] }
 0x16a   : > { %v8204_v41 = vld [vmem:[%s9245_s21 + $0x22c] sm:$0xf0]  ;;  %11618 = vst [vmem:[#allocation152_spill] sm:$0xff] %v10104_v36  ;;  %v8376_v52 = vld [vmem:[%s9245_s21 + $0x794] sm:$0xf] }
 0x16b   : > { %v6459_v30 = vld [vmem:[%s9245_s21 + $0x410] sm:$0xf]  ;;  %11612 = vst [vmem:[#allocation146_spill] sm:$0xff] %v10084_v11  ;;  %v10091_v14 = vor.u32 %v8204_v41, %v6203_v0  ;;  %v6141_v0 = vld [vmem:[%s9245_s21 + $0x1b0] sm:$0xf0]  ;;  %2423 = vmatpush.bf16.msra.mxu0 %v10084_v11  ;;  %v10133_v29 = vor.u32 %v8376_v52, %v6909_v58 }
 0x16c   : > { %v8268_v10 = vld [vmem:[%s9245_s21 + $0x42c] sm:$0xf0]  ;;  %11616 = vst [vmem:[#allocation150_spill] sm:$0xff] %v10100_v47  ;;  %v8248_v41 = vld [vmem:[%s9245_s21 + $0x394] sm:$0xf] }
 0x16d   : > { %v6715_v21 = vld [vmem:[%s9245_s21 + $0x610] sm:$0xf]  ;;  %11613 = vst [vmem:[#allocation147_spill] sm:$0xff] %v10091_v14  ;;  %v10093_v46 = vor.u32 %v8268_v10, %v6459_v30  ;;  %v10110_v30 = vor.u32 %v8384_v57, %v6941_v59  ;;  %v6397_v10 = vld [vmem:[%s9245_s21 + $0x3b0] sm:$0xf0]  ;;  %2437 = vmatpush.bf16.msra.mxu1 %v10091_v14  ;;  %v10121_v59 = vor.u32 %v8184_v32, %v6141_v0 }
 0x16e   : > { %v8332_v34 = vld [vmem:[%s9245_s21 + $0x62c] sm:$0xf0]  ;;  %v8176_v57 = vld [vmem:[%s9245_s21 + $0x154] sm:$0xf]  ;;  %11623 = vst [vmem:[#allocation157_spill] sm:$0xff] %v10133_v29  ;;  %2424 = vmatmul.bf16.vlgmr.msra.gmra.mxu0 %v9512_v50 }
 0x16f   : > { %11614 = vst [vmem:[#allocation148_spill] sm:$0xff] %v10093_v46  ;;  %v10098_v42 = vor.u32 %v8332_v34, %v6715_v21  ;;  %v6653_v34 = vld [vmem:[%s9245_s21 + $0x5b0] sm:$0xf0]  ;;  %2451 = vmatpush.bf16.msra.mxu2 %v10093_v46  ;;  %2472 = vmatpush.bf16.msrb.mxu0 %v10100_v47  ;;  %v10125_v21 = vor.u32 %v8248_v41, %v6397_v10 }
 0x170   : > { %11619 = vst [vmem:[#allocation153_spill] sm:$0xff] %v10110_v30  ;;  %v10127_v20 = vor.u32 %v8312_v49, %v6653_v34  ;;  %v6109_v51 = vld [vmem:[%s9245_s21 + $0x170] sm:$0xf0]  ;;  %2438 = vmatmul.bf16.vlgmr.msra.gmra.mxu1 %v9522_v63 }
 0x171   : > { %11615 = vst [vmem:[#allocation149_spill] sm:$0xff] %v10098_v42  ;;  %2465 = vmatpush.bf16.msra.mxu3 %v10098_v42  ;;  %2486 = vmatpush.bf16.msrb.mxu1 %v10102_v40  ;;  %v8240_v23 = vld [vmem:[%s9245_s21 + $0x354] sm:$0xf]  ;;  %v10144_v49 = vor.u32 %v8176_v57, %v6109_v51 }
 0x172   : > { %11620 = vst [vmem:[#allocation154_spill] sm:$0xff] %v10121_v59  ;;  %v6365_v47 = vld [vmem:[%s9245_s21 + $0x370] sm:$0xf0]  ;;  %2452 = vmatmul.bf16.vlgmr.msra.gmra.mxu2 %v9482_v9 }
 0x173   : > { %2500 = vmatpush.bf16.msrb.mxu2 %v10104_v36  ;;  %11621 = vst [vmem:[#allocation155_spill] sm:$0xff] %v10125_v21  ;;  %v8304_v32 = vld [vmem:[%s9245_s21 + $0x554] sm:$0xf]  ;;  %2473 = vmatpush.bf16.msrb.mxu0 %v10121_v59  ;;  %v10149_v10 = vor.u32 %v8240_v23, %v6365_v47 }
 0x174   : > { %11622 = vst [vmem:[#allocation156_spill] sm:$0xff] %v10127_v20  ;;  %v6621_v0 = vld [vmem:[%s9245_s21 + $0x570] sm:$0xf0]  ;;  %2466 = vmatmul.bf16.vlgmr.msra.gmra.mxu3 %v9492_v25 }
 0x175   : > { %2514 = vmatpush.bf16.msrb.mxu3 %v10110_v30  ;;  %v8368_v36 = vld [vmem:[%s9245_s21 + $0x754] sm:$0xf]  ;;  %11624 = vst [vmem:[#allocation158_spill] sm:$0xff] %v10144_v49  ;;  %2487 = vmatpush.bf16.msrb.mxu1 %v10125_v21  ;;  %v10151_v34 = vor.u32 %v8304_v32, %v6621_v0 }
 0x176   : > { %v6877_v41 = vld [vmem:[%s9245_s21 + $0x770] sm:$0xf0]  ;;  %11625 = vst [vmem:[#allocation159_spill] sm:$0xff] %v10149_v10 }
 0x177   : > { %2501 = vmatpush.bf16.msrb.mxu2 %v10127_v20  ;;  %11626 = vst [vmem:[#allocation160_spill] sm:$0xff] %v10151_v34  ;;  %v8168_v52 = vld [vmem:[%s9245_s21 + $0x114] sm:$0xf]  ;;  %v10157_v57 = vor.u32 %v8368_v36, %v6877_v41  ;;  %2474 = vmatpush.bf16.msrb.mxu0 %v10144_v49 }
 0x178   : > { %v6077_v58 = vld [vmem:[%s9245_s21 + $0x130] sm:$0xf0] }
 0x179   : > { %v8232_v30 = vld [vmem:[%s9245_s21 + $0x314] sm:$0xf]  ;;  %2515 = vmatpush.bf16.msrb.mxu3 %v10133_v29  ;;  %11627 = vst [vmem:[#allocation161_spill] sm:$0xff] %v10157_v57  ;;  %v10165_v32 = vor.u32 %v8168_v52, %v6077_v58  ;;  %2488 = vmatpush.bf16.msrb.mxu1 %v10149_v10 }
 0x17a   : > { %v6333_v51 = vld [vmem:[%s9245_s21 + $0x330] sm:$0xf0] }
 0x17b   : > { %v8296_v59 = vld [vmem:[%s9245_s21 + $0x514] sm:$0xf]  ;;  %11628 = vst [vmem:[#allocation162_spill] sm:$0xff] %v10165_v32  ;;  %2502 = vmatpush.bf16.msrb.mxu2 %v10151_v34  ;;  %v10169_v36 = vor.u32 %v8232_v30, %v6333_v51  ;;  %2475 = vmatpush.bf16.msrb.mxu0 %v10165_v32 }
 0x17c   : > { %v6589_v21 = vld [vmem:[%s9245_s21 + $0x530] sm:$0xf0] }
 0x17d   : > { %v8360_v47 = vld [vmem:[%s9245_s21 + $0x714] sm:$0xf]  ;;  %11629 = vst [vmem:[#allocation163_spill] sm:$0xff] %v10169_v36  ;;  %v10171_v0 = vor.u32 %v8296_v59, %v6589_v21  ;;  %2516 = vmatpush.bf16.msrb.mxu3 %v10157_v57  ;;  %2489 = vmatpush.bf16.msrb.mxu1 %v10169_v36 }
 0x17e   : > { %v6845_v23 = vld [vmem:[%s9245_s21 + $0x730] sm:$0xf0] }
 0x17f   : > { %11630 = vst [vmem:[#allocation164_spill] sm:$0xff] %v10171_v0  ;;  %v8160_v41 = vld [vmem:[%s9245_s21 + $0xd4] sm:$0xf]  ;;  %v10177_v40 = vor.u32 %v8360_v47, %v6845_v23  ;;  %2503 = vmatpush.bf16.msrb.mxu2 %v10171_v0 }
 0x180   : > { %v6045_v29 = vld [vmem:[%s9245_s21 + $0xf0] sm:$0xf0] }
 0x181   : > { %v8224_v20 = vld [vmem:[%s9245_s21 + $0x2d4] sm:$0xf]  ;;  %11631 = vst [vmem:[#allocation165_spill] sm:$0xff] %v10177_v40  ;;  %v10185_v21 = vor.u32 %v8160_v41, %v6045_v29  ;;  %2517 = vmatpush.bf16.msrb.mxu3 %v10177_v40 }
 0x182   : > { %v6301_v52 = vld [vmem:[%s9245_s21 + $0x2f0] sm:$0xf0] }
 0x183   : > { %v8288_v58 = vld [vmem:[%s9245_s21 + $0x4d4] sm:$0xf]  ;;  %11632 = vst [vmem:[#allocation166_spill] sm:$0xff] %v10185_v21  ;;  %v10189_v51 = vor.u32 %v8224_v20, %v6301_v52  ;;  %2476 = vmatpush.bf16.msrb.mxu0 %v10185_v21  ;;  %v2201_v52 = vpop.f32.mrf.mxu0  ;;  %v2215_v21 = vpop.f32.mrf.mxu1 }
 0x184   : > { %v6557_v10 = vld [vmem:[%s9245_s21 + $0x4f0] sm:$0xf0] }
 0x185   : > { %v8352_v30 = vld [vmem:[%s9245_s21 + $0x6d4] sm:$0xf]  ;;  %11633 = vst [vmem:[#allocation167_spill] sm:$0xff] %v10189_v51  ;;  %v10191_v47 = vor.u32 %v8288_v58, %v6557_v10  ;;  %2490 = vmatpush.bf16.msrb.mxu1 %v10189_v51 }
 0x186   : > { %v6813_v59 = vld [vmem:[%s9245_s21 + $0x6f0] sm:$0xf0] }
 0x187   : > { %11634 = vst [vmem:[#allocation168_spill] sm:$0xff] %v10191_v47  ;;  %v8152_v23 = vld [vmem:[%s9245_s21 + $0x94] sm:$0xf]  ;;  %v10197_v49 = vor.u32 %v8352_v30, %v6813_v59  ;;  %2504 = vmatpush.bf16.msrb.mxu2 %v10191_v47  ;;  %v2216_v47 = vadd.f32 %v2215_v21, %v2201_v52 }
 0x188   : > { %v6013_v57 = vld [vmem:[%s9245_s21 + $0xb0] sm:$0xf0] }
 0x189   : > { %v8216_v34 = vld [vmem:[%s9245_s21 + $0x294] sm:$0xf]  ;;  %11635 = vst [vmem:[#allocation169_spill] sm:$0xff] %v10197_v49  ;;  %v10205_v10 = vor.u32 %v8152_v23, %v6013_v57  ;;  %2518 = vmatpush.bf16.msrb.mxu3 %v10197_v49 }
 0x18a   : > { %v6269_v29 = vld [vmem:[%s9245_s21 + $0x2b0] sm:$0xf0] }
 0x18b   : > { %v8280_v41 = vld [vmem:[%s9245_s21 + $0x494] sm:$0xf]  ;;  %11636 = vst [vmem:[#allocation170_spill] sm:$0xff] %v10205_v10  ;;  %v10209_v58 = vor.u32 %v8216_v34, %v6269_v29  ;;  %v2229_v34 = vpop.f32.mrf.mxu2  ;;  %2477 = vmatpush.bf16.msrb.mxu0 %v10205_v10 }
 0x18c   : > { %v6525_v32 = vld [vmem:[%s9245_s21 + $0x4b0] sm:$0xf0]  ;;  %v2230_v14 = vadd.f32 %v2229_v34, %v2216_v47 }
 0x18d   : > { %v8344_v36 = vld [vmem:[%s9245_s21 + $0x694] sm:$0xf]  ;;  %11637 = vst [vmem:[#allocation171_spill] sm:$0xff] %v10209_v58  ;;  %v10211_v30 = vor.u32 %v8280_v41, %v6525_v32  ;;  %v2243_v41 = vpop.f32.mrf.mxu3  ;;  %2491 = vmatpush.bf16.msrb.mxu1 %v10209_v58 }
 0x18e   : > { %v6781_v20 = vld [vmem:[%s9245_s21 + $0x6b0] sm:$0xf0]  ;;  %v2244_v58 = vadd.f32 %v2243_v41, %v2230_v14  ;;  %v8389_v41 = vld [vmem:[%s9245_s21 + $0x7f4] sm:$0xf0] }
 0x18f   : > { %11638 = vst [vmem:[#allocation172_spill] sm:$0xff] %v10211_v30  ;;  %v8144_v59 = vld [vmem:[%s9245_s21 + $0x54] sm:$0xf]  ;;  %v10217_v57 = vor.u32 %v8344_v36, %v6781_v20  ;;  %2505 = vmatpush.bf16.msrb.mxu2 %v10211_v30  ;;  %v6435_v30 = vld [vmem:[%s9245_s21 + $0x3d8] sm:$0xf] }
 0x190   : > { %v5981_v40 = vld [vmem:[%s9245_s21 + $0x70] sm:$0xf0] }
 0x191   : > { %v8208_v0 = vld [vmem:[%s9245_s21 + $0x254] sm:$0xf]  ;;  %11639 = vst [vmem:[#allocation173_spill] sm:$0xff] %v10217_v57  ;;  %v10225_v46 = vor.u32 %v8144_v59, %v5981_v40  ;;  %2519 = vmatpush.bf16.msrb.mxu3 %v10217_v57  ;;  %v2203_v57 = vpop.f32.mrf.mxu0 }
 0x192   : > { %v6237_v23 = vld [vmem:[%s9245_s21 + $0x270] sm:$0xf0] }
 0x193   : > { %v8272_v51 = vld [vmem:[%s9245_s21 + $0x454] sm:$0xf]  ;;  %11640 = vst [vmem:[#allocation174_spill] sm:$0xff] %v10225_v46  ;;  %v10232_v21 = vor.u32 %v8208_v0, %v6237_v23  ;;  %v6179_v0 = vld [vmem:[%s9245_s21 + $0x1d8] sm:$0xf]  ;;  %2478 = vmatpush.bf16.msrb.mxu0 %v10225_v46 }
 0x194   : > { %v6493_v42 = vld [vmem:[%s9245_s21 + $0x470] sm:$0xf0]  ;;  %v8197_v23 = vld [vmem:[%s9245_s21 + $0x1f4] sm:$0xf0] }
 0x195   : > { %v8336_v32 = vld [vmem:[%s9245_s21 + $0x654] sm:$0xf]  ;;  %11641 = vst [vmem:[#allocation175_spill] sm:$0xff] %v10232_v21  ;;  %v10234_v52 = vor.u32 %v8272_v51, %v6493_v42  ;;  %v8261_v51 = vld [vmem:[%s9245_s21 + $0x3f4] sm:$0xf0]  ;;  %2492 = vmatpush.bf16.msrb.mxu1 %v10232_v21  ;;  %v2245_v46 = vpop.f32.mrf.mxu3 }
 0x196   : > { %v6749_v29 = vld [vmem:[%s9245_s21 + $0x670] sm:$0xf0]  ;;  %v6403_v21 = vld [vmem:[%s9245_s21 + $0x398] sm:$0xf] }
 0x197   : > { %v8136_v49 = vld [vmem:[%s9245_s21 + $0x14] sm:$0xf]  ;;  %11642 = vst [vmem:[#allocation176_spill] sm:$0xff] %v10234_v52  ;;  %v10239_v11 = vor.u32 %v8336_v32, %v6749_v29  ;;  %2506 = vmatpush.bf16.msrb.mxu2 %v10234_v52  ;;  %v6947_v29 = vld [vmem:[%s9245_s21 + $0x7d8] sm:$0xf]  ;;  %v2231_v52 = vpop.f32.mrf.mxu2 }
 0x198   : > { %v5949_v36 = vld [vmem:[%s9245_s21 + $0x30] sm:$0xf0] }
 0x199   : > { %v8200_v20 = vld [vmem:[%s9245_s21 + $0x214] sm:$0xf]  ;;  %11643 = vst [vmem:[#allocation177_spill] sm:$0xff] %v10239_v11  ;;  %v10248_v42 = vor.u32 %v8136_v49, %v5949_v36  ;;  %v2217_v49 = vpop.f32.mrf.mxu1  ;;  %2520 = vmatpush.bf16.msrb.mxu3 %v10239_v11  ;;  %v10274_v11 = vor.u32 %v8389_v41, %v6947_v29  ;;  %v6115_v29 = vld [vmem:[%s9245_s21 + $0x158] sm:$0xf] }
 0x19a   : > { %v6205_v40 = vld [vmem:[%s9245_s21 + $0x230] sm:$0xf0]  ;;  %v2218_v36 = vadd.f32 %v2217_v49, %v2203_v57  ;;  %v8181_v41 = vld [vmem:[%s9245_s21 + $0x174] sm:$0xf0] }
 0x19b   : > { %v8264_v59 = vld [vmem:[%s9245_s21 + $0x414] sm:$0xf]  ;;  %v10255_v14 = vor.u32 %v8200_v20, %v6205_v40  ;;  %v10266_v20 = vor.u32 %v8261_v51, %v6435_v30  ;;  %v10268_v40 = vor.u32 %v8325_v7, %v6691_v12  ;;  %2479 = vmatpush.bf16.msrb.mxu0 %v10248_v42  ;;  %11650 = vst [vmem:[#allocation184_spill] sm:$0xff] %v10274_v11  ;;  %v6915_v7 = vld [vmem:[%s9245_s21 + $0x798] sm:$0xf]  ;;  %v880_v30 = vld [vmem:[#allocation2 + $0x40] sm:$0xff] }
 0x19c   : > { %v872_v10 = vld [vmem:[#allocation2 + $0x30] sm:$0xff]  ;;  %v2232_v57 = vadd.f32 %v2231_v52, %v2218_v36  ;;  %v8381_v12 = vld [vmem:[%s9245_s21 + $0x7b4] sm:$0xf0] }
 0x19d   : > { %v6461_v47 = vld [vmem:[%s9245_s21 + $0x430] sm:$0xf0]  ;;  %v2640_v6 = vadd.f32 %v2244_v58, %v872_v10  ;;  %11644 = vst [vmem:[#allocation178_spill] sm:$0xff] %v10255_v14  ;;  %v10264_v58 = vor.u32 %v8197_v23, %v6179_v0  ;;  %2493 = vmatpush.bf16.msrb.mxu1 %v10255_v14  ;;  %v6371_v49 = vld [vmem:[%s9245_s21 + $0x358] sm:$0xf]  ;;  %v10297_v36 = vor.u32 %v8381_v12, %v6915_v7 }
 0x19e   : > { %v8328_v34 = vld [vmem:[%s9245_s21 + $0x614] sm:$0xf]  ;;  %v10257_v32 = vor.u32 %v8264_v59, %v6461_v47  ;;  %11648 = vst [vmem:[#allocation182_spill] sm:$0xff] %v10266_v20  ;;  %v6147_v59 = vld [vmem:[%s9245_s21 + $0x198] sm:$0xf]  ;;  %v2246_v23 = vadd.f32 %v2245_v46, %v2232_v57  ;;  %2480 = vmatmul.bf16.vlgmr.msrb.gmra.mxu0 %v9512_v50 }
 0x19f   : > { %v10262_v10 = vor.u32 %v8328_v34, %v6717_v28  ;;  %11647 = vst [vmem:[#allocation181_spill] sm:$0xff] %v10264_v58  ;;  %v8189_v47 = vld [vmem:[%s9245_s21 + $0x1b4] sm:$0xf0]  ;;  %2528 = vmatpush.bf16.msra.mxu0 %v10264_v58  ;;  %v8321_v14 = vld [vmem:[%s9245_s21 + $0x5dc] sm:$0xf] }
 0x1a0   : > { %11645 = vst [vmem:[#allocation179_spill] sm:$0xff] %v10257_v32  ;;  %v8253_v28 = vld [vmem:[%s9245_s21 + $0x3b4] sm:$0xf0]  ;;  %2507 = vmatpush.bf16.msrb.mxu2 %v10257_v32  ;;  %v10285_v0 = vor.u32 %v8189_v47, %v6147_v59  ;;  %v2648_v57 = vadd.f32 %v2246_v23, %v880_v30  ;;  %2494 = vmatmul.bf16.vlgmr.msrb.gmra.mxu1 %v9522_v63  ;;  %v6437_v32 = vld [vmem:[%s9245_s21 + $0x3f8] sm:$0xf0] }
 0x1a1   : > { %11646 = vst [vmem:[#allocation180_spill] sm:$0xff] %v10262_v10  ;;  %v6659_v34 = vld [vmem:[%s9245_s21 + $0x598] sm:$0xf]  ;;  %2521 = vmatpush.bf16.msrb.mxu3 %v10262_v10  ;;  %2542 = vmatpush.bf16.msra.mxu1 %v10266_v20  ;;  %v10289_v52 = vor.u32 %v8253_v28, %v6403_v21 }
 0x1a2   : > { %2656 = vst [vmem:[#allocation2 + $0x30] sm:$0xff] %v2640_v6  ;;  %v8317_v6 = vld [vmem:[%s9245_s21 + $0x5b4] sm:$0xf0] }
 0x1a3   : > { %11649 = vst [vmem:[#allocation183_spill] sm:$0xff] %v10268_v40  ;;  %v10291_v51 = vor.u32 %v8317_v6, %v6659_v34  ;;  %v8245_v59 = vld [vmem:[%s9245_s21 + $0x374] sm:$0xf0]  ;;  %2508 = vmatmul.bf16.vlgmr.msrb.gmra.mxu2 %v9482_v9  ;;  %2529 = vmatpush.bf16.msra.mxu0 %v10285_v0  ;;  %v10308_v34 = vor.u32 %v8181_v41, %v6115_v29 }
 0x1a4   : > { %11651 = vst [vmem:[#allocation185_spill] sm:$0xff] %v10285_v0  ;;  %2556 = vmatpush.bf16.msra.mxu2 %v10268_v40  ;;  %v6627_v47 = vld [vmem:[%s9245_s21 + $0x558] sm:$0xf]  ;;  %2522 = vmatmul.bf16.vlgmr.msrb.gmra.mxu3 %v9492_v25  ;;  %v10313_v6 = vor.u32 %v8245_v59, %v6371_v49 }
 0x1a5   : > { %11652 = vst [vmem:[#allocation186_spill] sm:$0xff] %v10289_v52  ;;  %2570 = vmatpush.bf16.msra.mxu3 %v10274_v11  ;;  %v8309_v46 = vld [vmem:[%s9245_s21 + $0x574] sm:$0xf0]  ;;  %2543 = vmatpush.bf16.msra.mxu1 %v10289_v52  ;;  %v2271_v11 = vpop.f32.mrf.mxu1 }
 0x1a6   : > { %11653 = vst [vmem:[#allocation187_spill] sm:$0xff] %v10291_v51  ;;  %v6883_v21 = vld [vmem:[%s9245_s21 + $0x758] sm:$0xf]  ;;  %v10315_v7 = vor.u32 %v8309_v46, %v6627_v47  ;;  %v2257_v47 = vpop.f32.mrf.mxu0 }
 0x1a7   : > { %11654 = vst [vmem:[#allocation188_spill] sm:$0xff] %v10297_v36  ;;  %v8373_v28 = vld [vmem:[%s9245_s21 + $0x774] sm:$0xf0]  ;;  %2530 = vmatpush.bf16.msra.mxu0 %v10308_v34 }
 0x1a8   : > { %11655 = vst [vmem:[#allocation189_spill] sm:$0xff] %v10308_v34  ;;  %2557 = vmatpush.bf16.msra.mxu2 %v10291_v51  ;;  %v6083_v12 = vld [vmem:[%s9245_s21 + $0x118] sm:$0xf]  ;;  %v10321_v29 = vor.u32 %v8373_v28, %v6883_v21 }
 0x1a9   : > { %2664 = vst [vmem:[#allocation2 + $0x40] sm:$0xff] %v2648_v57  ;;  %v8173_v30 = vld [vmem:[%s9245_s21 + $0x134] sm:$0xf0]  ;;  %2571 = vmatpush.bf16.msra.mxu3 %v10297_v36  ;;  %2544 = vmatpush.bf16.msra.mxu1 %v10313_v6 }
 0x1aa   : > { %11656 = vst [vmem:[#allocation190_spill] sm:$0xff] %v10313_v6  ;;  %v6339_v23 = vld [vmem:[%s9245_s21 + $0x318] sm:$0xf]  ;;  %v10329_v59 = vor.u32 %v8173_v30, %v6083_v12 }
 0x1ab   : > { %11657 = vst [vmem:[#allocation191_spill] sm:$0xff] %v10315_v7  ;;  %v8237_v41 = vld [vmem:[%s9245_s21 + $0x334] sm:$0xf0] }
 0x1ac   : > { %11658 = vst [vmem:[#allocation192_spill] sm:$0xff] %v10321_v29  ;;  %v6595_v57 = vld [vmem:[%s9245_s21 + $0x518] sm:$0xf]  ;;  %2558 = vmatpush.bf16.msra.mxu2 %v10315_v7  ;;  %v10333_v46 = vor.u32 %v8237_v41, %v6339_v23  ;;  %v2272_v7 = vadd.f32 %v2271_v11, %v2257_v47  ;;  %2531 = vmatpush.bf16.msra.mxu0 %v10329_v59 }
 0x1ad   : > { %v8301_v0 = vld [vmem:[%s9245_s21 + $0x534] sm:$0xf0]  ;;  %11659 = vst [vmem:[#allocation193_spill] sm:$0xff] %v10329_v59  ;;  %2572 = vmatpush.bf16.msra.mxu3 %v10321_v29  ;;  %v2285_v29 = vpop.f32.mrf.mxu2 }
 0x1ae   : > { %v6851_v52 = vld [vmem:[%s9245_s21 + $0x718] sm:$0xf]  ;;  %11660 = vst [vmem:[#allocation194_spill] sm:$0xff] %v10333_v46  ;;  %v10335_v21 = vor.u32 %v8301_v0, %v6595_v57  ;;  %2545 = vmatpush.bf16.msra.mxu1 %v10333_v46  ;;  %v2286_v59 = vadd.f32 %v2285_v29, %v2272_v7 }
 0x1af   : > { %v8365_v49 = vld [vmem:[%s9245_s21 + $0x734] sm:$0xf0] }
 0x1b0   : > { %11661 = vst [vmem:[#allocation195_spill] sm:$0xff] %v10335_v21  ;;  %v6051_v28 = vld [vmem:[%s9245_s21 + $0xd8] sm:$0xf]  ;;  %v10341_v12 = vor.u32 %v8365_v49, %v6851_v52  ;;  %2559 = vmatpush.bf16.msra.mxu2 %v10335_v21  ;;  %v2299_v21 = vpop.f32.mrf.mxu3 }
 0x1b1   : > { %v8165_v36 = vld [vmem:[%s9245_s21 + $0xf4] sm:$0xf0] }
 0x1b2   : > { %v6307_v51 = vld [vmem:[%s9245_s21 + $0x2d8] sm:$0xf]  ;;  %11662 = vst [vmem:[#allocation196_spill] sm:$0xff] %v10341_v12  ;;  %v10349_v41 = vor.u32 %v8165_v36, %v6051_v28  ;;  %2573 = vmatpush.bf16.msra.mxu3 %v10341_v12 }
 0x1b3   : > { %v8229_v30 = vld [vmem:[%s9245_s21 + $0x2f4] sm:$0xf0] }
 0x1b4   : > { %v6563_v34 = vld [vmem:[%s9245_s21 + $0x4d8] sm:$0xf]  ;;  %11663 = vst [vmem:[#allocation197_spill] sm:$0xff] %v10349_v41  ;;  %v10353_v52 = vor.u32 %v8229_v30, %v6307_v51  ;;  %2532 = vmatpush.bf16.msra.mxu0 %v10349_v41 }
 0x1b5   : > { %v8293_v6 = vld [vmem:[%s9245_s21 + $0x4f4] sm:$0xf0] }
 0x1b6   : > { %v6819_v23 = vld [vmem:[%s9245_s21 + $0x6d8] sm:$0xf]  ;;  %11664 = vst [vmem:[#allocation198_spill] sm:$0xff] %v10353_v52  ;;  %v10355_v57 = vor.u32 %v8293_v6, %v6563_v34  ;;  %v873_v34 = vld [vmem:[#allocation2] sm:$0xff]  ;;  %2546 = vmatpush.bf16.msra.mxu1 %v10353_v52 }
 0x1b7   : > { %v8357_v0 = vld [vmem:[%s9245_s21 + $0x6f4] sm:$0xf0] }
 0x1b8   : > { %11665 = vst [vmem:[#allocation199_spill] sm:$0xff] %v10355_v57  ;;  %v6019_v49 = vld [vmem:[%s9245_s21 + $0x98] sm:$0xf]  ;;  %v10361_v40 = vor.u32 %v8357_v0, %v6819_v23  ;;  %v2300_v23 = vadd.f32 %v2299_v21, %v2286_v59  ;;  %v2259_v0 = vpop.f32.mrf.mxu0  ;;  %2560 = vmatpush.bf16.msra.mxu2 %v10355_v57 }
 0x1b9   : > { %v8157_v11 = vld [vmem:[%s9245_s21 + $0xb4] sm:$0xf0] }
 0x1ba   : > { %v6275_v47 = vld [vmem:[%s9245_s21 + $0x298] sm:$0xf]  ;;  %11666 = vst [vmem:[#allocation200_spill] sm:$0xff] %v10361_v40  ;;  %v10369_v6 = vor.u32 %v8157_v11, %v6019_v49  ;;  %v2273_v49 = vpop.f32.mrf.mxu1  ;;  %2574 = vmatpush.bf16.msra.mxu3 %v10361_v40  ;;  %v2641_v57 = vadd.f32 %v2300_v23, %v873_v34  ;;  %v8193_v40 = vld [vmem:[%s9245_s21 + $0x1dc] sm:$0xf] }
 0x1bb   : > { %v8221_v36 = vld [vmem:[%s9245_s21 + $0x2b4] sm:$0xf0] }
 0x1bc   : > { %v6531_v28 = vld [vmem:[%s9245_s21 + $0x498] sm:$0xf]  ;;  %11667 = vst [vmem:[#allocation201_spill] sm:$0xff] %v10369_v6  ;;  %v10373_v7 = vor.u32 %v8221_v36, %v6275_v47  ;;  %v2274_v47 = vadd.f32 %v2273_v49, %v2259_v0  ;;  %2533 = vmatpush.bf16.msra.mxu0 %v10369_v6 }
 0x1bd   : > { %v8285_v46 = vld [vmem:[%s9245_s21 + $0x4b4] sm:$0xf0]  ;;  %2657 = vst [vmem:[#allocation2] sm:$0xff] %v2641_v57 }
 0x1be   : > { %v6787_v51 = vld [vmem:[%s9245_s21 + $0x698] sm:$0xf]  ;;  %11668 = vst [vmem:[#allocation202_spill] sm:$0xff] %v10373_v7  ;;  %v10375_v29 = vor.u32 %v8285_v46, %v6531_v28  ;;  %2547 = vmatpush.bf16.msra.mxu1 %v10373_v7 }
 0x1bf   : > { %v8349_v30 = vld [vmem:[%s9245_s21 + $0x6b4] sm:$0xf0] }
 0x1c0   : > { %11669 = vst [vmem:[#allocation203_spill] sm:$0xff] %v10375_v29  ;;  %v5987_v12 = vld [vmem:[%s9245_s21 + $0x58] sm:$0xf]  ;;  %v10381_v59 = vor.u32 %v8349_v30, %v6787_v51  ;;  %2561 = vmatpush.bf16.msra.mxu2 %v10375_v29 }
 0x1c1   : > { %v8149_v20 = vld [vmem:[%s9245_s21 + $0x74] sm:$0xf0] }
 0x1c2   : > { %v6243_v41 = vld [vmem:[%s9245_s21 + $0x258] sm:$0xf]  ;;  %11670 = vst [vmem:[#allocation204_spill] sm:$0xff] %v10381_v59  ;;  %v10390_v58 = vor.u32 %v8149_v20, %v5987_v12  ;;  %v2287_v12 = vpop.f32.mrf.mxu2  ;;  %2575 = vmatpush.bf16.msra.mxu3 %v10381_v59 }
 0x1c3   : > { %v8213_v21 = vld [vmem:[%s9245_s21 + $0x274] sm:$0xf0]  ;;  %v2288_v29 = vadd.f32 %v2287_v12, %v2274_v47 }
 0x1c4   : > { %v6499_v11 = vld [vmem:[%s9245_s21 + $0x458] sm:$0xf]  ;;  %11671 = vst [vmem:[#allocation205_spill] sm:$0xff] %v10390_v58  ;;  %v10396_v34 = vor.u32 %v8213_v21, %v6243_v41  ;;  %v2301_v41 = vpop.f32.mrf.mxu3  ;;  %v8257_v21 = vld [vmem:[%s9245_s21 + $0x3dc] sm:$0xf]  ;;  %2534 = vmatpush.bf16.msra.mxu0 %v10390_v58 }
 0x1c5   : > { %v8277_v52 = vld [vmem:[%s9245_s21 + $0x474] sm:$0xf0]  ;;  %v8385_v58 = vld [vmem:[%s9245_s21 + $0x7dc] sm:$0xf] }
 0x1c6   : > { %v6755_v46 = vld [vmem:[%s9245_s21 + $0x658] sm:$0xf]  ;;  %11672 = vst [vmem:[#allocation206_spill] sm:$0xff] %v10396_v34  ;;  %v10398_v23 = vor.u32 %v8277_v52, %v6499_v11  ;;  %v6181_v52 = vld [vmem:[%s9245_s21 + $0x1f8] sm:$0xf0]  ;;  %2548 = vmatpush.bf16.msra.mxu1 %v10396_v34  ;;  %v10431_v34 = vor.u32 %v8257_v21, %v6437_v32 }
 0x1c7   : > { %v8341_v36 = vld [vmem:[%s9245_s21 + $0x674] sm:$0xf0]  ;;  %v881_v11 = vld [vmem:[#allocation2 + $0x20] sm:$0xff]  ;;  %v10428_v59 = vor.u32 %v8193_v40, %v6181_v52 }
 0x1c8   : > { %v5955_v28 = vld [vmem:[%s9245_s21 + $0x18] sm:$0xf]  ;;  %11673 = vst [vmem:[#allocation207_spill] sm:$0xff] %v10398_v23  ;;  %v10404_v57 = vor.u32 %v8341_v36, %v6755_v46  ;;  %v6693_v46 = vld [vmem:[%s9245_s21 + $0x5f8] sm:$0xf0]  ;;  %v2302_v36 = vadd.f32 %v2301_v41, %v2288_v29  ;;  %2562 = vmatpush.bf16.msra.mxu2 %v10398_v23 }
 0x1c9   : > { %v8141_v51 = vld [vmem:[%s9245_s21 + $0x34] sm:$0xf0]  ;;  %11677 = vst [vmem:[#allocation211_spill] sm:$0xff] %v10428_v59  ;;  %v8185_v29 = vld [vmem:[%s9245_s21 + $0x19c] sm:$0xf] }
 0x1ca   : > { %v6211_v30 = vld [vmem:[%s9245_s21 + $0x218] sm:$0xf]  ;;  %v10412_v10 = vor.u32 %v8141_v51, %v5955_v28  ;;  %v6949_v28 = vld [vmem:[%s9245_s21 + $0x7f8] sm:$0xf0]  ;;  %2576 = vmatpush.bf16.msra.mxu3 %v10404_v57  ;;  %v2649_v41 = vadd.f32 %v2302_v36, %v881_v11  ;;  %11678 = vst [vmem:[#allocation212_spill] sm:$0xff] %v10431_v34 }
 0x1cb   : > { %v8205_v0 = vld [vmem:[%s9245_s21 + $0x234] sm:$0xf0]  ;;  %v10439_v23 = vor.u32 %v8385_v58, %v6949_v28  ;;  %v6661_v40 = vld [vmem:[%s9245_s21 + $0x5b8] sm:$0xf0] }
 0x1cc   : > { %v6467_v49 = vld [vmem:[%s9245_s21 + $0x418] sm:$0xf]  ;;  %v10419_v47 = vor.u32 %v8205_v0, %v6211_v30  ;;  %v10433_v30 = vor.u32 %v8321_v14, %v6693_v46  ;;  %v6149_v0 = vld [vmem:[%s9245_s21 + $0x1b8] sm:$0xf0]  ;;  %2535 = vmatpush.bf16.msra.mxu0 %v10412_v10  ;;  %2665 = vst [vmem:[#allocation2 + $0x20] sm:$0xff] %v2649_v41 }
 0x1cd   : > { %v8269_v20 = vld [vmem:[%s9245_s21 + $0x434] sm:$0xf0]  ;;  %11680 = vst [vmem:[#allocation214_spill] sm:$0xff] %v10439_v23  ;;  %v8377_v14 = vld [vmem:[%s9245_s21 + $0x79c] sm:$0xf]  ;;  %v10449_v58 = vor.u32 %v8185_v29, %v6149_v0 }
 0x1ce   : > { %v6723_v6 = vld [vmem:[%s9245_s21 + $0x618] sm:$0xf]  ;;  %11674 = vst [vmem:[#allocation208_spill] sm:$0xff] %v10419_v47  ;;  %v10421_v12 = vor.u32 %v8269_v20, %v6467_v49  ;;  %v8249_v49 = vld [vmem:[%s9245_s21 + $0x39c] sm:$0xf]  ;;  %2549 = vmatpush.bf16.msra.mxu1 %v10419_v47 }
 0x1cf   : > { %v8333_v7 = vld [vmem:[%s9245_s21 + $0x634] sm:$0xf0]  ;;  %11679 = vst [vmem:[#allocation213_spill] sm:$0xff] %v10433_v30  ;;  %v6405_v20 = vld [vmem:[%s9245_s21 + $0x3b8] sm:$0xf0]  ;;  %2536 = vmatmul.bf16.vlgmr.msra.gmra.mxu0 %v9512_v50 }
 0x1d0   : > { %11675 = vst [vmem:[#allocation209_spill] sm:$0xff] %v10421_v12  ;;  %v10426_v51 = vor.u32 %v8333_v7, %v6723_v6  ;;  %v8313_v6 = vld [vmem:[%s9245_s21 + $0x59c] sm:$0xf]  ;;  %2563 = vmatpush.bf16.msra.mxu2 %v10421_v12  ;;  %2584 = vmatpush.bf16.msrb.mxu0 %v10428_v59  ;;  %v10453_v7 = vor.u32 %v8249_v49, %v6405_v20 }
 0x1d1   : > { %v6917_v32 = vld [vmem:[%s9245_s21 + $0x7b8] sm:$0xf0]  ;;  %11681 = vst [vmem:[#allocation215_spill] sm:$0xff] %v10449_v58  ;;  %v10455_v52 = vor.u32 %v8313_v6, %v6661_v40  ;;  %2550 = vmatmul.bf16.vlgmr.msra.gmra.mxu1 %v9522_v63 }
 0x1d2   : > { %11676 = vst [vmem:[#allocation210_spill] sm:$0xff] %v10426_v51  ;;  %2577 = vmatpush.bf16.msra.mxu3 %v10426_v51  ;;  %2598 = vmatpush.bf16.msrb.mxu1 %v10431_v34  ;;  %v8177_v21 = vld [vmem:[%s9245_s21 + $0x15c] sm:$0xf]  ;;  %v10461_v36 = vor.u32 %v8377_v14, %v6917_v32  ;;  %v2327_v34 = vpop.f32.mrf.mxu1 }
 0x1d3   : > { %11682 = vst [vmem:[#allocation216_spill] sm:$0xff] %v10453_v7  ;;  %v6117_v11 = vld [vmem:[%s9245_s21 + $0x178] sm:$0xf0]  ;;  %2564 = vmatmul.bf16.vlgmr.msra.gmra.mxu2 %v9482_v9 }
 0x1d4   : > { %2612 = vmatpush.bf16.msrb.mxu2 %v10433_v30  ;;  %11683 = vst [vmem:[#allocation217_spill] sm:$0xff] %v10455_v52  ;;  %v8241_v46 = vld [vmem:[%s9245_s21 + $0x35c] sm:$0xf]  ;;  %2585 = vmatpush.bf16.msrb.mxu0 %v10449_v58  ;;  %v10472_v20 = vor.u32 %v8177_v21, %v6117_v11 }
 0x1d5   : > { %11684 = vst [vmem:[#allocation218_spill] sm:$0xff] %v10461_v36  ;;  %v6373_v28 = vld [vmem:[%s9245_s21 + $0x378] sm:$0xf0]  ;;  %2578 = vmatmul.bf16.vlgmr.msra.gmra.mxu3 %v9492_v25 }
 0x1d6   : > { %2626 = vmatpush.bf16.msrb.mxu3 %v10439_v23  ;;  %v8305_v29 = vld [vmem:[%s9245_s21 + $0x55c] sm:$0xf]  ;;  %11685 = vst [vmem:[#allocation219_spill] sm:$0xff] %v10472_v20  ;;  %2599 = vmatpush.bf16.msrb.mxu1 %v10453_v7  ;;  %v10477_v6 = vor.u32 %v8241_v46, %v6373_v28 }
 0x1d7   : > { %v6629_v41 = vld [vmem:[%s9245_s21 + $0x578] sm:$0xf0] }
 0x1d8   : > { %v8369_v0 = vld [vmem:[%s9245_s21 + $0x75c] sm:$0xf]  ;;  %2613 = vmatpush.bf16.msrb.mxu2 %v10455_v52  ;;  %11686 = vst [vmem:[#allocation220_spill] sm:$0xff] %v10477_v6  ;;  %v10479_v40 = vor.u32 %v8305_v29, %v6629_v41  ;;  %2586 = vmatpush.bf16.msrb.mxu0 %v10472_v20  ;;  %v2313_v29 = vpop.f32.mrf.mxu0 }
 0x1d9   : > { %v6885_v49 = vld [vmem:[%s9245_s21 + $0x778] sm:$0xf0] }
 0x1da   : > { %11687 = vst [vmem:[#allocation221_spill] sm:$0xff] %v10479_v40  ;;  %v8169_v14 = vld [vmem:[%s9245_s21 + $0x11c] sm:$0xf]  ;;  %2627 = vmatpush.bf16.msrb.mxu3 %v10461_v36  ;;  %v10485_v21 = vor.u32 %v8369_v0, %v6885_v49  ;;  %2600 = vmatpush.bf16.msrb.mxu1 %v10477_v6  ;;  %v2329_v47 = vpop.f32.mrf.mxu1 }
 0x1db   : > { %v6085_v32 = vld [vmem:[%s9245_s21 + $0x138] sm:$0xf0] }
 0x1dc   : > { %v8233_v23 = vld [vmem:[%s9245_s21 + $0x31c] sm:$0xf]  ;;  %11688 = vst [vmem:[#allocation222_spill] sm:$0xff] %v10485_v21  ;;  %v10493_v28 = vor.u32 %v8169_v14, %v6085_v32  ;;  %2614 = vmatpush.bf16.msrb.mxu2 %v10479_v40  ;;  %v2328_v40 = vadd.f32 %v2327_v34, %v2313_v29 }
 0x1dd   : > { %v6341_v11 = vld [vmem:[%s9245_s21 + $0x338] sm:$0xf0] }
 0x1de   : > { %v8297_v58 = vld [vmem:[%s9245_s21 + $0x51c] sm:$0xf]  ;;  %11689 = vst [vmem:[#allocation223_spill] sm:$0xff] %v10493_v28  ;;  %v10497_v41 = vor.u32 %v8233_v23, %v6341_v11  ;;  %2628 = vmatpush.bf16.msrb.mxu3 %v10485_v21  ;;  %2587 = vmatpush.bf16.msrb.mxu0 %v10493_v28  ;;  %v2341_v21 = vpop.f32.mrf.mxu2 }
 0x1df   : > { %v6597_v30 = vld [vmem:[%s9245_s21 + $0x538] sm:$0xf0]  ;;  %v2342_v28 = vadd.f32 %v2341_v21, %v2328_v40 }
 0x1e0   : > { %v8361_v7 = vld [vmem:[%s9245_s21 + $0x71c] sm:$0xf]  ;;  %11690 = vst [vmem:[#allocation224_spill] sm:$0xff] %v10497_v41  ;;  %v10499_v0 = vor.u32 %v8297_v58, %v6597_v30  ;;  %2601 = vmatpush.bf16.msrb.mxu1 %v10497_v41 }
 0x1e1   : > { %v6853_v46 = vld [vmem:[%s9245_s21 + $0x738] sm:$0xf0] }
 0x1e2   : > { %11691 = vst [vmem:[#allocation225_spill] sm:$0xff] %v10499_v0  ;;  %v8161_v49 = vld [vmem:[%s9245_s21 + $0xdc] sm:$0xf]  ;;  %v10505_v14 = vor.u32 %v8361_v7, %v6853_v46  ;;  %2615 = vmatpush.bf16.msrb.mxu2 %v10499_v0  ;;  %v2355_v0 = vpop.f32.mrf.mxu3 }
 0x1e3   : > { %v6053_v36 = vld [vmem:[%s9245_s21 + $0xf8] sm:$0xf0] }
 0x1e4   : > { %v8225_v52 = vld [vmem:[%s9245_s21 + $0x2dc] sm:$0xf]  ;;  %11692 = vst [vmem:[#allocation226_spill] sm:$0xff] %v10505_v14  ;;  %v10513_v58 = vor.u32 %v8161_v49, %v6053_v36  ;;  %2629 = vmatpush.bf16.msrb.mxu3 %v10505_v14 }
 0x1e5   : > { %v6309_v32 = vld [vmem:[%s9245_s21 + $0x2f8] sm:$0xf0] }
 0x1e6   : > { %v8289_v20 = vld [vmem:[%s9245_s21 + $0x4dc] sm:$0xf]  ;;  %11693 = vst [vmem:[#allocation227_spill] sm:$0xff] %v10513_v58  ;;  %v10517_v7 = vor.u32 %v8225_v52, %v6309_v32  ;;  %2588 = vmatpush.bf16.msrb.mxu0 %v10513_v58 }
 0x1e7   : > { %v6565_v6 = vld [vmem:[%s9245_s21 + $0x4f8] sm:$0xf0] }
 0x1e8   : > { %v8353_v23 = vld [vmem:[%s9245_s21 + $0x6dc] sm:$0xf]  ;;  %11694 = vst [vmem:[#allocation228_spill] sm:$0xff] %v10517_v7  ;;  %v10519_v11 = vor.u32 %v8289_v20, %v6565_v6  ;;  %2602 = vmatpush.bf16.msrb.mxu1 %v10517_v7 }
 0x1e9   : > { %v6821_v30 = vld [vmem:[%s9245_s21 + $0x6f8] sm:$0xf0] }
 0x1ea   : > { %11695 = vst [vmem:[#allocation229_spill] sm:$0xff] %v10519_v11  ;;  %v8153_v46 = vld [vmem:[%s9245_s21 + $0x9c] sm:$0xf]  ;;  %v10525_v59 = vor.u32 %v8353_v23, %v6821_v30  ;;  %v2356_v23 = vadd.f32 %v2355_v0, %v2342_v28  ;;  %v2315_v30 = vpop.f32.mrf.mxu0  ;;  %2616 = vmatpush.bf16.msrb.mxu2 %v10519_v11 }
 0x1eb   : > { %v6021_v34 = vld [vmem:[%s9245_s21 + $0xb8] sm:$0xf0]  ;;  %v2330_v11 = vadd.f32 %v2329_v47, %v2315_v30 }
 0x1ec   : > { %v8217_v29 = vld [vmem:[%s9245_s21 + $0x29c] sm:$0xf]  ;;  %11696 = vst [vmem:[#allocation230_spill] sm:$0xff] %v10525_v59  ;;  %v10533_v6 = vor.u32 %v8153_v46, %v6021_v34  ;;  %2630 = vmatpush.bf16.msrb.mxu3 %v10525_v59 }
 0x1ed   : > { %v6277_v36 = vld [vmem:[%s9245_s21 + $0x2b8] sm:$0xf0] }
 0x1ee   : > { %v8281_v49 = vld [vmem:[%s9245_s21 + $0x49c] sm:$0xf]  ;;  %11697 = vst [vmem:[#allocation231_spill] sm:$0xff] %v10533_v6  ;;  %v10537_v40 = vor.u32 %v8217_v29, %v6277_v36  ;;  %2589 = vmatpush.bf16.msrb.mxu0 %v10533_v6 }
 0x1ef   : > { %v6533_v41 = vld [vmem:[%s9245_s21 + $0x4b8] sm:$0xf0] }
 0x1f0   : > { %v8345_v52 = vld [vmem:[%s9245_s21 + $0x69c] sm:$0xf]  ;;  %11698 = vst [vmem:[#allocation232_spill] sm:$0xff] %v10537_v40  ;;  %v10539_v21 = vor.u32 %v8281_v49, %v6533_v41  ;;  %2603 = vmatpush.bf16.msrb.mxu1 %v10537_v40  ;;  %v2357_v40 = vpop.f32.mrf.mxu3 }
 0x1f1   : > { %v6789_v32 = vld [vmem:[%s9245_s21 + $0x6b8] sm:$0xf0] }
 0x1f2   : > { %v874_v20 = vld [vmem:[#allocation2 + $0x58] sm:$0xff]  ;;  %11699 = vst [vmem:[#allocation233_spill] sm:$0xff] %v10539_v21  ;;  %v10545_v46 = vor.u32 %v8345_v52, %v6789_v32  ;;  %2617 = vmatpush.bf16.msrb.mxu2 %v10539_v21  ;;  %v882_v21 = vld [vmem:[#allocation2 + $0x10] sm:$0xff] }
 0x1f3   : > { %v8145_v14 = vld [vmem:[%s9245_s21 + $0x5c] sm:$0xf]  ;;  %v2642_v7 = vadd.f32 %v2356_v23, %v874_v20  ;;  %v2343_v23 = vpop.f32.mrf.mxu2 }
 0x1f4   : > { %v5989_v51 = vld [vmem:[%s9245_s21 + $0x78] sm:$0xf0]  ;;  %2631 = vmatpush.bf16.msrb.mxu3 %v10545_v46  ;;  %v2344_v6 = vadd.f32 %v2343_v23, %v2330_v11 }
 0x1f5   : > { %v8209_v12 = vld [vmem:[%s9245_s21 + $0x25c] sm:$0xf]  ;;  %v10553_v36 = vor.u32 %v8145_v14, %v5989_v51  ;;  %2658 = vst [vmem:[#allocation2 + $0x58] sm:$0xff] %v2642_v7 }
 0x1f6   : > { %v6245_v28 = vld [vmem:[%s9245_s21 + $0x278] sm:$0xf0] }
 0x1f7   : > { %v8273_v0 = vld [vmem:[%s9245_s21 + $0x45c] sm:$0xf]  ;;  %v10557_v49 = vor.u32 %v8209_v12, %v6245_v28  ;;  %2590 = vmatpush.bf16.msrb.mxu0 %v10553_v36  ;;  %v2358_v28 = vadd.f32 %v2357_v40, %v2344_v6  ;;  %v11708_v6 = vld [vmem:[#allocation31_spill] sm:$0xff] }
 0x1f8   : > { %v6501_v34 = vld [vmem:[%s9245_s21 + $0x478] sm:$0xf0] }
 0x1f9   : > { %v8337_v29 = vld [vmem:[%s9245_s21 + $0x65c] sm:$0xf]  ;;  %v10559_v52 = vor.u32 %v8273_v0, %v6501_v34  ;;  %2604 = vmatpush.bf16.msrb.mxu1 %v10557_v49 }
 0x1fa   : > { %v6757_v41 = vld [vmem:[%s9245_s21 + $0x678] sm:$0xf0] }
 0x1fb   : > { %v8137_v47 = vld [vmem:[%s9245_s21 + $0x1c] sm:$0xf]  ;;  %v10565_v30 = vor.u32 %v8337_v29, %v6757_v41  ;;  %2618 = vmatpush.bf16.msrb.mxu2 %v10559_v52  ;;  %v2650_v29 = vadd.f32 %v2358_v28, %v882_v21  ;;  %v11710_v41 = vld [vmem:[#allocation33_spill] sm:$0xff] }
 0x1fc   : > { %v5957_v32 = vld [vmem:[%s9245_s21 + $0x38] sm:$0xf0] }
 0x1fd   : > { %v8201_v20 = vld [vmem:[%s9245_s21 + $0x21c] sm:$0xf]  ;;  %v10573_v12 = vor.u32 %v8137_v47, %v5957_v32  ;;  %2632 = vmatpush.bf16.msrb.mxu3 %v10565_v30  ;;  %2666 = vst [vmem:[#allocation2 + $0x10] sm:$0xff] %v2650_v29  ;;  %v11711_v32 = vld [vmem:[#allocation34_spill] sm:$0xff] }
 0x1fe   : > { %v6213_v51 = vld [vmem:[%s9245_s21 + $0x238] sm:$0xf0]  ;;  %v876_v29 = vld [vmem:[#allocation2 + $0x50] sm:$0xff] }
 0x1ff   : > { %v8265_v14 = vld [vmem:[%s9245_s21 + $0x41c] sm:$0xf]  ;;  %v10577_v0 = vor.u32 %v8201_v20, %v6213_v51  ;;  %2591 = vmatpush.bf16.msrb.mxu0 %v10573_v12  ;;  %v11712_v20 = vld [vmem:[#allocation35_spill] sm:$0xff] }
 0x200   : > { %v6469_v7 = vld [vmem:[%s9245_s21 + $0x438] sm:$0xf0] }
 0x201   : > { %v8329_v59 = vld [vmem:[%s9245_s21 + $0x61c] sm:$0xf]  ;;  %v10579_v34 = vor.u32 %v8265_v14, %v6469_v7  ;;  %2605 = vmatpush.bf16.msrb.mxu1 %v10577_v0  ;;  %v11714_v14 = vld [vmem:[#allocation37_spill] sm:$0xff] }
 0x202   : > { %v6725_v58 = vld [vmem:[%s9245_s21 + $0x638] sm:$0xf0]  ;;  %2592 = vmatmul.bf16.vlgmr.msrb.gmra.mxu0 %v9512_v50  ;;  %v11702_v50 = vld [vmem:[#allocation25_spill] sm:$0xff] }
 0x203   : > { %v10582_v11 = vor.u32 %v8329_v59, %v6725_v58  ;;  %2619 = vmatpush.bf16.msrb.mxu2 %v10579_v34  ;;  %2712 = vmatpush.bf16.msra.mxu0 %v9267_v13  ;;  %v2369_v13 = vpop.f32.mrf.mxu0  ;;  %v11707_v59 = vld [vmem:[#allocation30_spill] sm:$0xff]  ;;  %v11709_v40 = vld [vmem:[#allocation32_spill] sm:$0xff] }
 0x204   : > { %2606 = vmatmul.bf16.vlgmr.msrb.gmra.mxu1 %v9522_v63  ;;  %v8394_v63 = vld [vmem:[%s9243_s5 + $0x4] sm:$0xf]  ;;  %v11713_v23 = vld [vmem:[#allocation36_spill] sm:$0xff] }
 0x205   : > { %2633 = vmatpush.bf16.msrb.mxu3 %v10582_v11  ;;  %2726 = vmatpush.bf16.msra.mxu1 %v9272_v17  ;;  %v2383_v17 = vpop.f32.mrf.mxu1 }
 0x206   : > { %2620 = vmatmul.bf16.vlgmr.msrb.gmra.mxu2 %v9482_v9  ;;  %v6957_v9 = vld [vmem:[%s9243_s5 + $0x10] sm:$0xf0] }
 0x207   : > { %2740 = vmatpush.bf16.msra.mxu2 %v9274_v18  ;;  %2713 = vmatpush.bf16.msra.mxu0 %v9287_v26  ;;  %v2384_v18 = vadd.f32 %v2383_v17, %v2369_v13  ;;  %v11715_v13 = vld [vmem:[#allocation38_spill] sm:$0xff] }
 0x208   : > { %2634 = vmatmul.bf16.vlgmr.msrb.gmra.mxu3 %v9492_v25  ;;  %v11700_v25 = vld [vmem:[#allocation23_spill] sm:$0xff] }
 0x209   : > { %2754 = vmatpush.bf16.msra.mxu3 %v9280_v22  ;;  %2727 = vmatpush.bf16.msra.mxu1 %v9289_v27  ;;  %v2397_v22 = vpop.f32.mrf.mxu2  ;;  %v2411_v27 = vpop.f32.mrf.mxu3 }
 0x20a   : > { %v2398_v26 = vadd.f32 %v2397_v22, %v2384_v18  ;;  %v11716_v22 = vld [vmem:[#allocation39_spill] sm:$0xff] }
 0x20b   : > { %2741 = vmatpush.bf16.msra.mxu2 %v9295_v31  ;;  %2714 = vmatpush.bf16.msra.mxu0 %v9306_v39  ;;  %v875_v31 = vld [vmem:[#allocation2 + $0x18] sm:$0xff]  ;;  %v2371_v39 = vpop.f32.mrf.mxu0 }
 0x20d   : > { %2755 = vmatpush.bf16.msra.mxu3 %v9300_v35  ;;  %2728 = vmatpush.bf16.msra.mxu1 %v9313_v43  ;;  %v2412_v35 = vadd.f32 %v2411_v27, %v2398_v26  ;;  %v2385_v43 = vpop.f32.mrf.mxu1  ;;  %v11717_v26 = vld [vmem:[#allocation40_spill] sm:$0xff] }
 0x20f   : > { %2742 = vmatpush.bf16.msra.mxu2 %v9315_v44  ;;  %2715 = vmatpush.bf16.msra.mxu0 %v9329_v54  ;;  %v2643_v44 = vadd.f32 %v2412_v35, %v875_v31  ;;  %v11718_v31 = vld [vmem:[#allocation41_spill] sm:$0xff] }
 0x211   : > { %2756 = vmatpush.bf16.msra.mxu3 %v9321_v48  ;;  %2729 = vmatpush.bf16.msra.mxu1 %v9333_v55  ;;  %v2386_v48 = vadd.f32 %v2385_v43, %v2371_v39  ;;  %2659 = vst [vmem:[#allocation2 + $0x18] sm:$0xff] %v2643_v44  ;;  %v2399_v54 = vpop.f32.mrf.mxu2  ;;  %v11719_v43 = vld [vmem:[#allocation42_spill] sm:$0xff]  ;;  %v11720_v44 = vld [vmem:[#allocation43_spill] sm:$0xff] }
 0x213   : > { %2743 = vmatpush.bf16.msra.mxu2 %v9335_v56  ;;  %2716 = vmatpush.bf16.msra.mxu0 %v9349_v2  ;;  %v2400_v55 = vadd.f32 %v2399_v54, %v2386_v48  ;;  %v2413_v56 = vpop.f32.mrf.mxu3  ;;  %v2425_v58 = vpop.f32.mrf.mxu0  ;;  %v11721_v48 = vld [vmem:[#allocation44_spill] sm:$0xff] }
 0x215   : > { %2757 = vmatpush.bf16.msra.mxu3 %v9341_v60  ;;  %2730 = vmatpush.bf16.msra.mxu1 %v9353_v3  ;;  %v883_v60 = vld [vmem:[#allocation2 + $0x38] sm:$0xff]  ;;  %v2414_v2 = vadd.f32 %v2413_v56, %v2400_v55  ;;  %v6963_v3 = vld [vmem:[%s9243_s5 + $0x8] sm:$0xf]  ;;  %v2439_v21 = vpop.f32.mrf.mxu1  ;;  %v11722_v55 = vld [vmem:[#allocation45_spill] sm:$0xff] }
 0x216   : > { %v2440_v47 = vadd.f32 %v2439_v21, %v2425_v58  ;;  %v11738_v58 = vld [vmem:[#allocation61_spill] sm:$0xff]  ;;  %v11740_v21 = vld [vmem:[#allocation63_spill] sm:$0xff] }
 0x217   : > { %2744 = vmatpush.bf16.msra.mxu2 %v9355_v4  ;;  %2717 = vmatpush.bf16.msra.mxu0 %v9369_v15  ;;  %v8397_v4 = vld [vmem:[%s9243_s5 + $0x14] sm:$0xf0]  ;;  %v2651_v15 = vadd.f32 %v2414_v2, %v883_v60  ;;  %v884_v2 = vld [vmem:[#allocation2 + $0x60] sm:$0xff] }
 0x219   : > { %2758 = vmatpush.bf16.msra.mxu3 %v9361_v8  ;;  %2731 = vmatpush.bf16.msra.mxu1 %v9373_v16  ;;  %v8395_v8 = vld [vmem:[%s9243_s5 + $0xc] sm:$0xf]  ;;  %v6965_v16 = vld [vmem:[%s9243_s5 + $0x18] sm:$0xf0]  ;;  %2667 = vst [vmem:[#allocation2 + $0x38] sm:$0xff] %v2651_v15  ;;  %v2453_v51 = vpop.f32.mrf.mxu2 }
 0x21a   : > { %v2454_v7 = vadd.f32 %v2453_v51, %v2440_v47  ;;  %v11725_v15 = vld [vmem:[#allocation48_spill] sm:$0xff]  ;;  %v11744_v51 = vld [vmem:[#allocation67_spill] sm:$0xff] }
 0x21b   : > { %2745 = vmatpush.bf16.msra.mxu2 %v9375_v19  ;;  %2718 = vmatpush.bf16.msra.mxu0 %v9389_v33  ;;  %v6955_v19 = vld [vmem:[%s9243_s5] sm:$0xf]  ;;  %v10629_v33 = vor.u32 %v8397_v4, %v6963_v3  ;;  %v2467_v28 = vpop.f32.mrf.mxu3  ;;  %v2427_v18 = vpop.f32.mrf.mxu0  ;;  %v11723_v3 = vld [vmem:[#allocation46_spill] sm:$0xff] }
 0x21c   : > { %v2468_v17 = vadd.f32 %v2467_v28, %v2454_v7  ;;  %v11746_v28 = vld [vmem:[#allocation69_spill] sm:$0xff] }
 0x21d   : > { %2759 = vmatpush.bf16.msra.mxu3 %v9381_v24  ;;  %2732 = vmatpush.bf16.msra.mxu1 %v9395_v37  ;;  %v8396_v24 = vld [vmem:[%s9243_s5 + $0xc] sm:$0xf0]  ;;  %v10633_v37 = vor.u32 %v8395_v8, %v6965_v16  ;;  %v2441_v27 = vpop.f32.mrf.mxu1  ;;  %v11726_v16 = vld [vmem:[#allocation49_spill] sm:$0xff] }
 0x21e   : > { %v2644_v35 = vadd.f32 %v2468_v17, %v876_v29  ;;  %v2442_v39 = vadd.f32 %v2441_v27, %v2427_v18  ;;  %v11724_v8 = vld [vmem:[#allocation47_spill] sm:$0xff]  ;;  %v877_v17 = vld [vmem:[#allocation2 + $0x68] sm:$0xff] }
 0x21f   : > { %2746 = vmatpush.bf16.msra.mxu2 %v9397_v38  ;;  %2719 = vmatpush.bf16.msra.mxu0 %v9412_v53  ;;  %v10635_v38 = vor.u32 %v8396_v24, %v6955_v19  ;;  %v11701_v53 = vld [vmem:[#allocation24_spill] sm:$0xff]  ;;  %v11727_v24 = vld [vmem:[#allocation50_spill] sm:$0xff]  ;;  %v11748_v27 = vld [vmem:[#allocation71_spill] sm:$0xff] }
 0x220   : > { %2660 = vst [vmem:[#allocation2 + $0x50] sm:$0xff] %v2644_v35  ;;  %v11747_v18 = vld [vmem:[#allocation70_spill] sm:$0xff] }
 0x221   : > { %2760 = vmatpush.bf16.msra.mxu3 %v9403_v45  ;;  %2733 = vmatpush.bf16.msra.mxu1 %v9419_v61  ;;  %v10639_v45 = vor.u32 %v8394_v63, %v6957_v9  ;;  %v11703_v61 = vld [vmem:[#allocation26_spill] sm:$0xff]  ;;  %v2455_v54 = vpop.f32.mrf.mxu2  ;;  %v11728_v63 = vld [vmem:[#allocation51_spill] sm:$0xff]  ;;  %v11729_v9 = vld [vmem:[#allocation52_spill] sm:$0xff] }
 0x222   : > { %2720 = vmatmul.bf16.vlgmr.msra.gmra.mxu0 %v10635_v38  ;;  %v2456_v56 = vadd.f32 %v2455_v54, %v2442_v39  ;;  %v11750_v39 = vld [vmem:[#allocation73_spill] sm:$0xff]  ;;  %v11752_v54 = vld [vmem:[#allocation75_spill] sm:$0xff] }
 0x223   : > { %2747 = vmatpush.bf16.msra.mxu2 %v9421_v62  ;;  %2768 = vmatpush.bf16.msrb.mxu0 %v9428_v5  ;;  %v11704_v62 = vld [vmem:[#allocation27_spill] sm:$0xff]  ;;  %v11706_v5 = vld [vmem:[#allocation29_spill] sm:$0xff]  ;;  %v2469_v60 = vpop.f32.mrf.mxu3 }
 0x224   : > { %2734 = vmatmul.bf16.vlgmr.msra.gmra.mxu1 %v10639_v45  ;;  %v2470_v4 = vadd.f32 %v2469_v60, %v2456_v56  ;;  %v11754_v60 = vld [vmem:[#allocation77_spill] sm:$0xff] }
 0x225   : > { %2761 = vmatpush.bf16.msra.mxu3 %v9426_v1  ;;  %2782 = vmatpush.bf16.msrb.mxu1 %v11700_v25  ;;  %v11705_v1 = vld [vmem:[#allocation28_spill] sm:$0xff]  ;;  %v11730_v25 = vld [vmem:[#allocation53_spill] sm:$0xff]  ;;  %v2495_v47 = vpop.f32.mrf.mxu1 }
 0x226   : > { %2748 = vmatmul.bf16.vlgmr.msra.gmra.mxu2 %v10629_v33  ;;  %v2652_v19 = vadd.f32 %v2470_v4, %v884_v2  ;;  %v885_v4 = vld [vmem:[#allocation2 + $0x70] sm:$0xff] }
 0x227   : > { %2796 = vmatpush.bf16.msrb.mxu2 %v11701_v53  ;;  %2769 = vmatpush.bf16.msrb.mxu0 %v11703_v61  ;;  %v11731_v53 = vld [vmem:[#allocation54_spill] sm:$0xff]  ;;  %v11733_v61 = vld [vmem:[#allocation56_spill] sm:$0xff] }
 0x228   : > { %2762 = vmatmul.bf16.vlgmr.msra.gmra.mxu3 %v10633_v37  ;;  %2668 = vst [vmem:[#allocation2 + $0x60] sm:$0xff] %v2652_v19  ;;  %v11757_v19 = vld [vmem:[#allocation80_spill] sm:$0xff] }
 0x229   : > { %2810 = vmatpush.bf16.msrb.mxu3 %v11702_v50  ;;  %2783 = vmatpush.bf16.msrb.mxu1 %v11704_v62  ;;  %v11732_v50 = vld [vmem:[#allocation55_spill] sm:$0xff]  ;;  %v11734_v62 = vld [vmem:[#allocation57_spill] sm:$0xff]  ;;  %v2509_v7 = vpop.f32.mrf.mxu2 }
 0x22b   : > { %2797 = vmatpush.bf16.msrb.mxu2 %v11705_v1  ;;  %2770 = vmatpush.bf16.msrb.mxu0 %v11707_v59  ;;  %v11735_v1 = vld [vmem:[#allocation58_spill] sm:$0xff]  ;;  %v11737_v59 = vld [vmem:[#allocation60_spill] sm:$0xff] }
 0x22d   : > { %2811 = vmatpush.bf16.msrb.mxu3 %v11706_v5  ;;  %2784 = vmatpush.bf16.msrb.mxu1 %v11708_v6  ;;  %v11736_v5 = vld [vmem:[#allocation59_spill] sm:$0xff]  ;;  %v11739_v6 = vld [vmem:[#allocation62_spill] sm:$0xff]  ;;  %v2497_v35 = vpop.f32.mrf.mxu1 }
 0x22f   : > { %2798 = vmatpush.bf16.msrb.mxu2 %v11709_v40  ;;  %2771 = vmatpush.bf16.msrb.mxu0 %v11711_v32  ;;  %v2481_v40 = vpop.f32.mrf.mxu0  ;;  %v11742_v32 = vld [vmem:[#allocation65_spill] sm:$0xff] }
 0x231   : > { %2812 = vmatpush.bf16.msrb.mxu3 %v11710_v41  ;;  %2785 = vmatpush.bf16.msrb.mxu1 %v11712_v20  ;;  %v11741_v41 = vld [vmem:[#allocation64_spill] sm:$0xff]  ;;  %v2496_v20 = vadd.f32 %v2495_v47, %v2481_v40  ;;  %v2511_v56 = vpop.f32.mrf.mxu2  ;;  %v11770_v40 = vld [vmem:[#allocation93_spill] sm:$0xff]  ;;  %v11772_v47 = vld [vmem:[#allocation95_spill] sm:$0xff] }
 0x233   : > { %2799 = vmatpush.bf16.msrb.mxu2 %v11713_v23  ;;  %2772 = vmatpush.bf16.msrb.mxu0 %v11715_v13  ;;  %v11743_v23 = vld [vmem:[#allocation66_spill] sm:$0xff]  ;;  %v2510_v29 = vadd.f32 %v2509_v7, %v2496_v20  ;;  %v2523_v13 = vpop.f32.mrf.mxu3  ;;  %v11776_v7 = vld [vmem:[#allocation99_spill] sm:$0xff] }
 0x235   : > { %2813 = vmatpush.bf16.msrb.mxu3 %v11714_v14  ;;  %2786 = vmatpush.bf16.msrb.mxu1 %v11716_v22  ;;  %v11745_v14 = vld [vmem:[#allocation68_spill] sm:$0xff]  ;;  %v2524_v22 = vadd.f32 %v2523_v13, %v2510_v29  ;;  %v11778_v13 = vld [vmem:[#allocation101_spill] sm:$0xff] }
 0x237   : > { %2800 = vmatpush.bf16.msrb.mxu2 %v11717_v26  ;;  %2773 = vmatpush.bf16.msrb.mxu0 %v11719_v43  ;;  %v2483_v26 = vpop.f32.mrf.mxu0  ;;  %v2645_v43 = vadd.f32 %v2524_v22, %v877_v17  ;;  %v878_v22 = vld [vmem:[#allocation2 + $0x8] sm:$0xff] }
 0x239   : > { %2814 = vmatpush.bf16.msrb.mxu3 %v11718_v31  ;;  %2787 = vmatpush.bf16.msrb.mxu1 %v11720_v44  ;;  %v11749_v31 = vld [vmem:[#allocation72_spill] sm:$0xff]  ;;  %v2498_v44 = vadd.f32 %v2497_v35, %v2483_v26  ;;  %2661 = vst [vmem:[#allocation2 + $0x68] sm:$0xff] %v2645_v43  ;;  %v11779_v26 = vld [vmem:[#allocation102_spill] sm:$0xff]  ;;  %v11780_v35 = vld [vmem:[#allocation103_spill] sm:$0xff] }
 0x23b   : > { %2801 = vmatpush.bf16.msrb.mxu2 %v11721_v48  ;;  %2774 = vmatpush.bf16.msrb.mxu0 %v11723_v3  ;;  %v11751_v48 = vld [vmem:[#allocation74_spill] sm:$0xff]  ;;  %v2512_v2 = vadd.f32 %v2511_v56, %v2498_v44  ;;  %v2525_v3 = vpop.f32.mrf.mxu3  ;;  %v11782_v44 = vld [vmem:[#allocation105_spill] sm:$0xff]  ;;  %v11784_v56 = vld [vmem:[#allocation107_spill] sm:$0xff] }
 0x23d   : > { %2815 = vmatpush.bf16.msrb.mxu3 %v11722_v55  ;;  %2788 = vmatpush.bf16.msrb.mxu1 %v11724_v8  ;;  %v11753_v55 = vld [vmem:[#allocation76_spill] sm:$0xff]  ;;  %v11755_v8 = vld [vmem:[#allocation78_spill] sm:$0xff] }
 0x23f   : > { %2802 = vmatpush.bf16.msrb.mxu2 %v11725_v15  ;;  %2775 = vmatpush.bf16.msrb.mxu0 %v11727_v24  ;;  %v2526_v15 = vadd.f32 %v2525_v3, %v2512_v2  ;;  %v11758_v24 = vld [vmem:[#allocation81_spill] sm:$0xff] }
 0x240   : > { %v11786_v3 = vld [vmem:[#allocation109_spill] sm:$0xff] }
 0x241   : > { %2816 = vmatpush.bf16.msrb.mxu3 %v11726_v16  ;;  %2789 = vmatpush.bf16.msrb.mxu1 %v11728_v63  ;;  %v11756_v16 = vld [vmem:[#allocation79_spill] sm:$0xff]  ;;  %v2653_v63 = vadd.f32 %v2526_v15, %v885_v4 }
 0x242   : > { %2776 = vmatmul.bf16.vlgmr.msrb.gmra.mxu0 %v10635_v38  ;;  %v886_v15 = vld [vmem:[#allocation2 + $0x78] sm:$0xff] }
 0x243   : > { %2803 = vmatpush.bf16.msrb.mxu2 %v11729_v9  ;;  %2824 = vmatpush.bf16.msra.mxu0 %v11731_v53  ;;  %v11759_v9 = vld [vmem:[#allocation82_spill] sm:$0xff]  ;;  %2669 = vst [vmem:[#allocation2 + $0x70] sm:$0xff] %v2653_v63  ;;  %v11761_v53 = vld [vmem:[#allocation84_spill] sm:$0xff] }
 0x244   : > { %2790 = vmatmul.bf16.vlgmr.msrb.gmra.mxu1 %v10639_v45  ;;  %v11789_v63 = vld [vmem:[#allocation112_spill] sm:$0xff] }
 0x245   : > { %2817 = vmatpush.bf16.msrb.mxu3 %v11730_v25  ;;  %2838 = vmatpush.bf16.msra.mxu1 %v11732_v50  ;;  %v11760_v25 = vld [vmem:[#allocation83_spill] sm:$0xff]  ;;  %v11762_v50 = vld [vmem:[#allocation85_spill] sm:$0xff] }
 0x246   : > { %2804 = vmatmul.bf16.vlgmr.msrb.gmra.mxu2 %v10629_v33 }
 0x247   : > { %2852 = vmatpush.bf16.msra.mxu2 %v11733_v61  ;;  %2825 = vmatpush.bf16.msra.mxu0 %v11735_v1  ;;  %v11763_v61 = vld [vmem:[#allocation86_spill] sm:$0xff]  ;;  %v11765_v1 = vld [vmem:[#allocation88_spill] sm:$0xff] }
 0x248   : > { %2818 = vmatmul.bf16.vlgmr.msrb.gmra.mxu3 %v10633_v37 }
 0x249   : > { %2866 = vmatpush.bf16.msra.mxu3 %v11734_v62  ;;  %2839 = vmatpush.bf16.msra.mxu1 %v11736_v5  ;;  %v11764_v62 = vld [vmem:[#allocation87_spill] sm:$0xff]  ;;  %v11766_v5 = vld [vmem:[#allocation89_spill] sm:$0xff] }
 0x24b   : > { %2853 = vmatpush.bf16.msra.mxu2 %v11737_v59  ;;  %2826 = vmatpush.bf16.msra.mxu0 %v11739_v6  ;;  %v11767_v59 = vld [vmem:[#allocation90_spill] sm:$0xff]  ;;  %v11769_v6 = vld [vmem:[#allocation92_spill] sm:$0xff] }
 0x24d   : > { %2867 = vmatpush.bf16.msra.mxu3 %v11738_v58  ;;  %2840 = vmatpush.bf16.msra.mxu1 %v11740_v21  ;;  %v11768_v58 = vld [vmem:[#allocation91_spill] sm:$0xff]  ;;  %v11771_v21 = vld [vmem:[#allocation94_spill] sm:$0xff] }
 0x24e   : > { %v2551_v20 = vpop.f32.mrf.mxu1 }
 0x24f   : > { %2854 = vmatpush.bf16.msra.mxu2 %v11741_v41  ;;  %2827 = vmatpush.bf16.msra.mxu0 %v11743_v23  ;;  %v2537_v41 = vpop.f32.mrf.mxu0  ;;  %v11774_v23 = vld [vmem:[#allocation97_spill] sm:$0xff] }
 0x251   : > { %2868 = vmatpush.bf16.msra.mxu3 %v11742_v32  ;;  %2841 = vmatpush.bf16.msra.mxu1 %v11744_v51  ;;  %v11773_v32 = vld [vmem:[#allocation96_spill] sm:$0xff]  ;;  %v2552_v51 = vadd.f32 %v2551_v20, %v2537_v41  ;;  %v11802_v41 = vld [vmem:[#allocation125_spill] sm:$0xff]  ;;  %v11804_v20 = vld [vmem:[#allocation127_spill] sm:$0xff] }
 0x253   : > { %2855 = vmatpush.bf16.msra.mxu2 %v11745_v14  ;;  %2828 = vmatpush.bf16.msra.mxu0 %v11747_v18  ;;  %v11775_v14 = vld [vmem:[#allocation98_spill] sm:$0xff] }
 0x255   : > { %2869 = vmatpush.bf16.msra.mxu3 %v11746_v28  ;;  %2842 = vmatpush.bf16.msra.mxu1 %v11748_v27  ;;  %v11777_v28 = vld [vmem:[#allocation100_spill] sm:$0xff] }
 0x256   : > { %v2565_v29 = vpop.f32.mrf.mxu2  ;;  %v2553_v43 = vpop.f32.mrf.mxu1 }
 0x257   : > { %2856 = vmatpush.bf16.msra.mxu2 %v11749_v31  ;;  %2829 = vmatpush.bf16.msra.mxu0 %v11751_v48  ;;  %v2566_v17 = vadd.f32 %v2565_v29, %v2552_v51  ;;  %v2539_v31 = vpop.f32.mrf.mxu0  ;;  %v11808_v29 = vld [vmem:[#allocation131_spill] sm:$0xff] }
 0x258   : > { %v2579_v18 = vpop.f32.mrf.mxu3 }
 0x259   : > { %2870 = vmatpush.bf16.msra.mxu3 %v11750_v39  ;;  %2843 = vmatpush.bf16.msra.mxu1 %v11752_v54  ;;  %v2580_v27 = vadd.f32 %v2579_v18, %v2566_v17  ;;  %v11781_v39 = vld [vmem:[#allocation104_spill] sm:$0xff]  ;;  %v2554_v54 = vadd.f32 %v2553_v43, %v2539_v31  ;;  %v11810_v18 = vld [vmem:[#allocation133_spill] sm:$0xff]  ;;  %v11811_v31 = vld [vmem:[#allocation134_spill] sm:$0xff] }
 0x25a   : > { %v11812_v43 = vld [vmem:[#allocation135_spill] sm:$0xff] }
 0x25b   : > { %2857 = vmatpush.bf16.msra.mxu2 %v11753_v55  ;;  %2830 = vmatpush.bf16.msra.mxu0 %v11755_v8  ;;  %v2646_v48 = vadd.f32 %v2580_v27, %v878_v22  ;;  %v11783_v55 = vld [vmem:[#allocation106_spill] sm:$0xff] }
 0x25c   : > { %v879_v27 = vld [vmem:[#allocation2 + $0x48] sm:$0xff] }
 0x25d   : > { %2871 = vmatpush.bf16.msra.mxu3 %v11754_v60  ;;  %2844 = vmatpush.bf16.msra.mxu1 %v11756_v16  ;;  %2662 = vst [vmem:[#allocation2 + $0x8] sm:$0xff] %v2646_v48  ;;  %v11785_v60 = vld [vmem:[#allocation108_spill] sm:$0xff]  ;;  %v11787_v16 = vld [vmem:[#allocation110_spill] sm:$0xff] }
 0x25e   : > { %v2567_v2 = vpop.f32.mrf.mxu2 }
 0x25f   : > { %2858 = vmatpush.bf16.msra.mxu2 %v11757_v19  ;;  %2831 = vmatpush.bf16.msra.mxu0 %v11759_v9  ;;  %v2568_v4 = vadd.f32 %v2567_v2, %v2554_v54  ;;  %v11790_v9 = vld [vmem:[#allocation113_spill] sm:$0xff]  ;;  %v11816_v2 = vld [vmem:[#allocation139_spill] sm:$0xff] }
 0x260   : > { %v2581_v8 = vpop.f32.mrf.mxu3  ;;  %v11814_v54 = vld [vmem:[#allocation137_spill] sm:$0xff] }
 0x261   : > { %2872 = vmatpush.bf16.msra.mxu3 %v11758_v24  ;;  %2845 = vmatpush.bf16.msra.mxu1 %v11760_v25  ;;  %v2582_v19 = vadd.f32 %v2581_v8, %v2568_v4  ;;  %v11788_v24 = vld [vmem:[#allocation111_spill] sm:$0xff]  ;;  %v11818_v8 = vld [vmem:[#allocation141_spill] sm:$0xff] }
 0x262   : > { %2832 = vmatmul.bf16.vlgmr.msra.gmra.mxu0 %v10635_v38 }
 0x263   : > { %2859 = vmatpush.bf16.msra.mxu2 %v11761_v53  ;;  %2880 = vmatpush.bf16.msrb.mxu0 %v11763_v61  ;;  %v2654_v25 = vadd.f32 %v2582_v19, %v886_v15  ;;  %v11791_v53 = vld [vmem:[#allocation114_spill] sm:$0xff]  ;;  %v11793_v61 = vld [vmem:[#allocation116_spill] sm:$0xff] }
 0x264   : > { %2846 = vmatmul.bf16.vlgmr.msra.gmra.mxu1 %v10639_v45  ;;  %v887_v19 = vld [vmem:[#allocation2 + $0x28] sm:$0xff] }
 0x265   : > { %2873 = vmatpush.bf16.msra.mxu3 %v11762_v50  ;;  %2894 = vmatpush.bf16.msrb.mxu1 %v11764_v62  ;;  %2670 = vst [vmem:[#allocation2 + $0x78] sm:$0xff] %v2654_v25  ;;  %v11792_v50 = vld [vmem:[#allocation115_spill] sm:$0xff]  ;;  %v11794_v62 = vld [vmem:[#allocation117_spill] sm:$0xff]  ;;  %v11821_v25 = vld [vmem:[#allocation144_spill] sm:$0xff] }
 0x266   : > { %2860 = vmatmul.bf16.vlgmr.msra.gmra.mxu2 %v10629_v33 }
 0x267   : > { %2908 = vmatpush.bf16.msrb.mxu2 %v11765_v1  ;;  %2881 = vmatpush.bf16.msrb.mxu0 %v11767_v59  ;;  %v11795_v1 = vld [vmem:[#allocation118_spill] sm:$0xff]  ;;  %v11797_v59 = vld [vmem:[#allocation120_spill] sm:$0xff] }
 0x268   : > { %2874 = vmatmul.bf16.vlgmr.msra.gmra.mxu3 %v10633_v37 }
 0x269   : > { %2922 = vmatpush.bf16.msrb.mxu3 %v11766_v5  ;;  %2895 = vmatpush.bf16.msrb.mxu1 %v11768_v58  ;;  %v11796_v5 = vld [vmem:[#allocation119_spill] sm:$0xff]  ;;  %v11798_v58 = vld [vmem:[#allocation121_spill] sm:$0xff] }
 0x26b   : > { %2909 = vmatpush.bf16.msrb.mxu2 %v11769_v6  ;;  %2882 = vmatpush.bf16.msrb.mxu0 %v11771_v21  ;;  %v11799_v6 = vld [vmem:[#allocation122_spill] sm:$0xff]  ;;  %v11801_v21 = vld [vmem:[#allocation124_spill] sm:$0xff] }
 0x26d   : > { %2923 = vmatpush.bf16.msrb.mxu3 %v11770_v40  ;;  %2896 = vmatpush.bf16.msrb.mxu1 %v11772_v47  ;;  %v11800_v40 = vld [vmem:[#allocation123_spill] sm:$0xff]  ;;  %v11803_v47 = vld [vmem:[#allocation126_spill] sm:$0xff] }
 0x26f   : > { %2910 = vmatpush.bf16.msrb.mxu2 %v11773_v32  ;;  %2883 = vmatpush.bf16.msrb.mxu0 %v11775_v14  ;;  %v11806_v14 = vld [vmem:[#allocation129_spill] sm:$0xff] }
 0x271   : > { %2924 = vmatpush.bf16.msrb.mxu3 %v11774_v23  ;;  %2897 = vmatpush.bf16.msrb.mxu1 %v11776_v7  ;;  %v11805_v23 = vld [vmem:[#allocation128_spill] sm:$0xff] }
 0x273   : > { %2911 = vmatpush.bf16.msrb.mxu2 %v11777_v28  ;;  %2884 = vmatpush.bf16.msrb.mxu0 %v11779_v26  ;;  %v11807_v28 = vld [vmem:[#allocation130_spill] sm:$0xff] }
 0x275   : > { %2925 = vmatpush.bf16.msrb.mxu3 %v11778_v13  ;;  %2898 = vmatpush.bf16.msrb.mxu1 %v11780_v35  ;;  %v11809_v13 = vld [vmem:[#allocation132_spill] sm:$0xff] }
 0x277   : > { %2912 = vmatpush.bf16.msrb.mxu2 %v11781_v39  ;;  %2885 = vmatpush.bf16.msrb.mxu0 %v11783_v55 }
 0x279   : > { %2926 = vmatpush.bf16.msrb.mxu3 %v11782_v44  ;;  %2899 = vmatpush.bf16.msrb.mxu1 %v11784_v56  ;;  %v11813_v44 = vld [vmem:[#allocation136_spill] sm:$0xff] }
 0x27b   : > { %2913 = vmatpush.bf16.msrb.mxu2 %v11785_v60  ;;  %2886 = vmatpush.bf16.msrb.mxu0 %v11787_v16  ;;  %v11815_v60 = vld [vmem:[#allocation138_spill] sm:$0xff] }
 0x27d   : > { %2927 = vmatpush.bf16.msrb.mxu3 %v11786_v3  ;;  %2900 = vmatpush.bf16.msrb.mxu1 %v11788_v24  ;;  %v11817_v3 = vld [vmem:[#allocation140_spill] sm:$0xff]  ;;  %v11819_v24 = vld [vmem:[#allocation142_spill] sm:$0xff] }
 0x27f   : > { %2914 = vmatpush.bf16.msrb.mxu2 %v11789_v63  ;;  %2887 = vmatpush.bf16.msrb.mxu0 %v11791_v53  ;;  %v2593_v32 = vpop.f32.mrf.mxu0  ;;  %v11822_v53 = vld [vmem:[#allocation145_spill] sm:$0xff] }
 0x281   : > { %2928 = vmatpush.bf16.msrb.mxu3 %v11790_v9  ;;  %2901 = vmatpush.bf16.msrb.mxu1 %v11792_v50  ;;  %v2607_v51 = vpop.f32.mrf.mxu1  ;;  %v11820_v9 = vld [vmem:[#allocation143_spill] sm:$0xff] }
 0x282   : > { %2888 = vmatmul.bf16.vlgmr.msrb.gmra.mxu0 %v10635_v38  ;;  %v2608_v7 = vadd.f32 %v2607_v51, %v2593_v32  ;;  %v11834_v32 = vld [vmem:[#allocation157_spill] sm:$0xff]  ;;  %v11836_v51 = vld [vmem:[#allocation159_spill] sm:$0xff] }
 0x283   : > { %2915 = vmatpush.bf16.msrb.mxu2 %v11793_v61  ;;  %2936 = vmatpush.bf16.msra.mxu0 %v11795_v1  ;;  %v11823_v61 = vld [vmem:[#allocation146_spill] sm:$0xff]  ;;  %v11825_v1 = vld [vmem:[#allocation148_spill] sm:$0xff] }
 0x284   : > { %2902 = vmatmul.bf16.vlgmr.msrb.gmra.mxu1 %v10639_v45 }
 0x285   : > { %2929 = vmatpush.bf16.msrb.mxu3 %v11794_v62  ;;  %2950 = vmatpush.bf16.msra.mxu1 %v11796_v5  ;;  %v11824_v62 = vld [vmem:[#allocation147_spill] sm:$0xff]  ;;  %v11826_v5 = vld [vmem:[#allocation149_spill] sm:$0xff] }
 0x286   : > { %2916 = vmatmul.bf16.vlgmr.msrb.gmra.mxu2 %v10629_v33 }
 0x287   : > { %2964 = vmatpush.bf16.msra.mxu2 %v11797_v59  ;;  %2937 = vmatpush.bf16.msra.mxu0 %v11799_v6  ;;  %v2595_v39 = vpop.f32.mrf.mxu0  ;;  %v11827_v59 = vld [vmem:[#allocation150_spill] sm:$0xff]  ;;  %v11829_v6 = vld [vmem:[#allocation152_spill] sm:$0xff] }
 0x288   : > { %2930 = vmatmul.bf16.vlgmr.msrb.gmra.mxu3 %v10633_v37 }
 0x289   : > { %2978 = vmatpush.bf16.msra.mxu3 %v11798_v58  ;;  %2951 = vmatpush.bf16.msra.mxu1 %v11800_v40  ;;  %v2621_v17 = vpop.f32.mrf.mxu2  ;;  %v2609_v48 = vpop.f32.mrf.mxu1  ;;  %v11828_v58 = vld [vmem:[#allocation151_spill] sm:$0xff]  ;;  %v11830_v40 = vld [vmem:[#allocation153_spill] sm:$0xff] }
 0x28a   : > { %v2622_v22 = vadd.f32 %v2621_v17, %v2608_v7  ;;  %v2610_v56 = vadd.f32 %v2609_v48, %v2595_v39  ;;  %v11840_v17 = vld [vmem:[#allocation163_spill] sm:$0xff]  ;;  %v11843_v39 = vld [vmem:[#allocation166_spill] sm:$0xff] }
 0x28b   : > { %2965 = vmatpush.bf16.msra.mxu2 %v11801_v21  ;;  %2938 = vmatpush.bf16.msra.mxu0 %v11803_v47  ;;  %v2635_v26 = vpop.f32.mrf.mxu3  ;;  %v11831_v21 = vld [vmem:[#allocation154_spill] sm:$0xff]  ;;  %v11833_v47 = vld [vmem:[#allocation156_spill] sm:$0xff]  ;;  %v11844_v48 = vld [vmem:[#allocation167_spill] sm:$0xff] }
 0x28c   : > { %v2636_v35 = vadd.f32 %v2635_v26, %v2622_v22  ;;  %v11842_v26 = vld [vmem:[#allocation165_spill] sm:$0xff] }
 0x28d   : > { %2979 = vmatpush.bf16.msra.mxu3 %v11802_v41  ;;  %2952 = vmatpush.bf16.msra.mxu1 %v11804_v20  ;;  %v11832_v41 = vld [vmem:[#allocation155_spill] sm:$0xff]  ;;  %v11835_v20 = vld [vmem:[#allocation158_spill] sm:$0xff] }
 0x28e   : > { %v2647_v55 = vadd.f32 %v2636_v35, %v879_v27  ;;  %v2672_v35 = vld [vmem:[#allocation3 + $0x28] sm:$0xff] }
 0x28f   : > { %2966 = vmatpush.bf16.msra.mxu2 %v11805_v23  ;;  %2939 = vmatpush.bf16.msra.mxu0 %v11807_v28  ;;  %v11838_v28 = vld [vmem:[#allocation161_spill] sm:$0xff] }
 0x290   : > { %2663 = vst [vmem:[#allocation2 + $0x48] sm:$0xff] %v2647_v55 }
 0x291   : > { %2980 = vmatpush.bf16.msra.mxu3 %v11806_v14  ;;  %2953 = vmatpush.bf16.msra.mxu1 %v11808_v29  ;;  %v2623_v4 = vpop.f32.mrf.mxu2  ;;  %v11837_v14 = vld [vmem:[#allocation160_spill] sm:$0xff] }
 0x292   : > { %v2624_v15 = vadd.f32 %v2623_v4, %v2610_v56  ;;  %v11846_v56 = vld [vmem:[#allocation169_spill] sm:$0xff]  ;;  %v11848_v4 = vld [vmem:[#allocation171_spill] sm:$0xff] }
 0x293   : > { %2967 = vmatpush.bf16.msra.mxu2 %v11809_v13  ;;  %2940 = vmatpush.bf16.msra.mxu0 %v11811_v31  ;;  %v2637_v16 = vpop.f32.mrf.mxu3  ;;  %v11839_v13 = vld [vmem:[#allocation162_spill] sm:$0xff] }
 0x294   : > { %v2638_v63 = vadd.f32 %v2637_v16, %v2624_v15  ;;  %v11850_v16 = vld [vmem:[#allocation173_spill] sm:$0xff] }
 0x295   : > { %2981 = vmatpush.bf16.msra.mxu3 %v11810_v18  ;;  %2954 = vmatpush.bf16.msra.mxu1 %v11812_v43  ;;  %v11841_v18 = vld [vmem:[#allocation164_spill] sm:$0xff] }
 0x296   : > { %v2655_v50 = vadd.f32 %v2638_v63, %v887_v19  ;;  %v2680_v63 = vld [vmem:[#allocation3 + $0x20] sm:$0xff] }
 0x297   : > { %2968 = vmatpush.bf16.msra.mxu2 %v11813_v44  ;;  %2941 = vmatpush.bf16.msra.mxu0 %v11815_v60 }
 0x298   : > { %2671 = vst [vmem:[#allocation2 + $0x28] sm:$0xff] %v2655_v50  ;;  %v11853_v50 = vld [vmem:[#allocation176_spill] sm:$0xff] }
 0x299   : > { %2982 = vmatpush.bf16.msra.mxu3 %v11814_v54  ;;  %2955 = vmatpush.bf16.msra.mxu1 %v11816_v2  ;;  %v11845_v54 = vld [vmem:[#allocation168_spill] sm:$0xff] }
 0x29b   : > { %2969 = vmatpush.bf16.msra.mxu2 %v11817_v3  ;;  %2942 = vmatpush.bf16.msra.mxu0 %v11819_v24  ;;  %v11847_v3 = vld [vmem:[#allocation170_spill] sm:$0xff] }
 0x29d   : > { %2983 = vmatpush.bf16.msra.mxu3 %v11818_v8  ;;  %2956 = vmatpush.bf16.msra.mxu1 %v11820_v9  ;;  %v11849_v8 = vld [vmem:[#allocation172_spill] sm:$0xff]  ;;  %v11851_v9 = vld [vmem:[#allocation174_spill] sm:$0xff] }
 0x29f   : > { %2970 = vmatpush.bf16.msra.mxu2 %v11821_v25  ;;  %2943 = vmatpush.bf16.msra.mxu0 %v11823_v61  ;;  %v2721_v23 = vpop.f32.mrf.mxu0  ;;  %v11854_v61 = vld [vmem:[#allocation177_spill] sm:$0xff] }
 0x2a1   : > { %2984 = vmatpush.bf16.msra.mxu3 %v11822_v53  ;;  %2957 = vmatpush.bf16.msra.mxu1 %v11824_v62  ;;  %v2735_v7 = vpop.f32.mrf.mxu1  ;;  %v11852_v53 = vld [vmem:[#allocation175_spill] sm:$0xff] }
 0x2a2   : > { %2944 = vmatmul.bf16.vlgmr.msra.gmra.mxu0 %v10635_v38  ;;  %v2736_v29 = vadd.f32 %v2735_v7, %v2721_v23 }
 0x2a3   : > { %2971 = vmatpush.bf16.msra.mxu2 %v11825_v1  ;;  %2992 = vmatpush.bf16.msrb.mxu0 %v11827_v59  ;;  %v11855_v1 = vld [vmem:[#allocation178_spill] sm:$0xff]  ;;  %v11857_v59 = vld [vmem:[#allocation180_spill] sm:$0xff] }
 0x2a4   : > { %2958 = vmatmul.bf16.vlgmr.msra.gmra.mxu1 %v10639_v45 }
 0x2a5   : > { %2985 = vmatpush.bf16.msra.mxu3 %v11826_v5  ;;  %3006 = vmatpush.bf16.msrb.mxu1 %v11828_v58  ;;  %v11856_v5 = vld [vmem:[#allocation179_spill] sm:$0xff]  ;;  %v11858_v58 = vld [vmem:[#allocation181_spill] sm:$0xff] }
 0x2a6   : > { %2972 = vmatmul.bf16.vlgmr.msra.gmra.mxu2 %v10629_v33 }
 0x2a7   : > { %3020 = vmatpush.bf16.msrb.mxu2 %v11829_v6  ;;  %2993 = vmatpush.bf16.msrb.mxu0 %v11831_v21  ;;  %v2723_v44 = vpop.f32.mrf.mxu0  ;;  %v11859_v6 = vld [vmem:[#allocation182_spill] sm:$0xff]  ;;  %v11861_v21 = vld [vmem:[#allocation184_spill] sm:$0xff] }
 0x2a8   : > { %2986 = vmatmul.bf16.vlgmr.msra.gmra.mxu3 %v10633_v37 }
 0x2a9   : > { %3034 = vmatpush.bf16.msrb.mxu3 %v11830_v40  ;;  %3007 = vmatpush.bf16.msrb.mxu1 %v11832_v41  ;;  %v2749_v22 = vpop.f32.mrf.mxu2  ;;  %v2737_v55 = vpop.f32.mrf.mxu1  ;;  %v11860_v40 = vld [vmem:[#allocation183_spill] sm:$0xff]  ;;  %v11863_v41 = vld [vmem:[#allocation186_spill] sm:$0xff] }
 0x2aa   : > { %v2750_v27 = vadd.f32 %v2749_v22, %v2736_v29  ;;  %v2738_v2 = vadd.f32 %v2737_v55, %v2723_v44 }
 0x2ab   : > { %3021 = vmatpush.bf16.msrb.mxu2 %v11833_v47  ;;  %2994 = vmatpush.bf16.msrb.mxu0 %v11835_v20  ;;  %v2763_v31 = vpop.f32.mrf.mxu3  ;;  %v11864_v47 = vld [vmem:[#allocation187_spill] sm:$0xff]  ;;  %v11866_v20 = vld [vmem:[#allocation189_spill] sm:$0xff] }
 0x2ac   : > { %v2764_v43 = vadd.f32 %v2763_v31, %v2750_v27 }
 0x2ad   : > { %3035 = vmatpush.bf16.msrb.mxu3 %v11834_v32  ;;  %3008 = vmatpush.bf16.msrb.mxu1 %v11836_v51  ;;  %v11865_v32 = vld [vmem:[#allocation188_spill] sm:$0xff]  ;;  %v11867_v51 = vld [vmem:[#allocation190_spill] sm:$0xff] }
 0x2ae   : > { %v3160_v60 = vadd.f32 %v2764_v43, %v2672_v35  ;;  %v2673_v35 = vld [vmem:[#allocation3 + $0x68] sm:$0xff] }
 0x2af   : > { %3022 = vmatpush.bf16.msrb.mxu2 %v11837_v14  ;;  %2995 = vmatpush.bf16.msrb.mxu0 %v11839_v13  ;;  %v11868_v14 = vld [vmem:[#allocation191_spill] sm:$0xff]  ;;  %v11870_v13 = vld [vmem:[#allocation193_spill] sm:$0xff] }
 0x2b0   : > { %3176 = vst [vmem:[#allocation3 + $0x28] sm:$0xff] %v3160_v60 }
 0x2b1   : > { %3036 = vmatpush.bf16.msrb.mxu3 %v11838_v28  ;;  %3009 = vmatpush.bf16.msrb.mxu1 %v11840_v17  ;;  %v2751_v15 = vpop.f32.mrf.mxu2  ;;  %v11869_v28 = vld [vmem:[#allocation192_spill] sm:$0xff]  ;;  %v11871_v17 = vld [vmem:[#allocation194_spill] sm:$0xff] }
 0x2b2   : > { %v2752_v19 = vadd.f32 %v2751_v15, %v2738_v2 }
 0x2b3   : > { %3023 = vmatpush.bf16.msrb.mxu2 %v11841_v18  ;;  %2996 = vmatpush.bf16.msrb.mxu0 %v11843_v39  ;;  %v2765_v24 = vpop.f32.mrf.mxu3  ;;  %v11872_v18 = vld [vmem:[#allocation195_spill] sm:$0xff]  ;;  %v11874_v39 = vld [vmem:[#allocation197_spill] sm:$0xff] }
 0x2b4   : > { %v2766_v25 = vadd.f32 %v2765_v24, %v2752_v19 }
 0x2b5   : > { %3037 = vmatpush.bf16.msrb.mxu3 %v11842_v26  ;;  %3010 = vmatpush.bf16.msrb.mxu1 %v11844_v48  ;;  %v11873_v26 = vld [vmem:[#allocation196_spill] sm:$0xff]  ;;  %v11875_v48 = vld [vmem:[#allocation198_spill] sm:$0xff] }
 0x2b6   : > { %v3168_v62 = vadd.f32 %v2766_v25, %v2680_v63  ;;  %v2681_v63 = vld [vmem:[#allocation3 + $0x78] sm:$0xff] }
 0x2b7   : > { %3024 = vmatpush.bf16.msrb.mxu2 %v11845_v54  ;;  %2997 = vmatpush.bf16.msrb.mxu0 %v11847_v3  ;;  %v11876_v54 = vld [vmem:[#allocation199_spill] sm:$0xff]  ;;  %v11878_v3 = vld [vmem:[#allocation201_spill] sm:$0xff] }
 0x2b8   : > { %3184 = vst [vmem:[#allocation3 + $0x20] sm:$0xff] %v3168_v62  ;;  %v11885_v62 = vld [vmem:[#allocation208_spill] sm:$0xff] }
 0x2b9   : > { %3038 = vmatpush.bf16.msrb.mxu3 %v11846_v56  ;;  %3011 = vmatpush.bf16.msrb.mxu1 %v11848_v4  ;;  %v11877_v56 = vld [vmem:[#allocation200_spill] sm:$0xff]  ;;  %v11879_v4 = vld [vmem:[#allocation202_spill] sm:$0xff] }
 0x2bb   : > { %3025 = vmatpush.bf16.msrb.mxu2 %v11849_v8  ;;  %2998 = vmatpush.bf16.msrb.mxu0 %v11851_v9  ;;  %v11880_v8 = vld [vmem:[#allocation203_spill] sm:$0xff]  ;;  %v11882_v9 = vld [vmem:[#allocation205_spill] sm:$0xff] }
 0x2bd   : > { %3039 = vmatpush.bf16.msrb.mxu3 %v11850_v16  ;;  %3012 = vmatpush.bf16.msrb.mxu1 %v11852_v53  ;;  %v11881_v16 = vld [vmem:[#allocation204_spill] sm:$0xff]  ;;  %v11883_v53 = vld [vmem:[#allocation206_spill] sm:$0xff] }
 0x2bf   : > { %3026 = vmatpush.bf16.msrb.mxu2 %v11853_v50  ;;  %2999 = vmatpush.bf16.msrb.mxu0 %v10248_v42  ;;  %v11862_v42 = vld [vmem:[#allocation185_spill] sm:$0xff]  ;;  %v2777_v23 = vpop.f32.mrf.mxu0  ;;  %v11884_v50 = vld [vmem:[#allocation207_spill] sm:$0xff] }
 0x2c1   : > { %3040 = vmatpush.bf16.msrb.mxu3 %v11854_v61  ;;  %3013 = vmatpush.bf16.msrb.mxu1 %v11855_v1  ;;  %v2791_v7 = vpop.f32.mrf.mxu1  ;;  %v11886_v1 = vld [vmem:[#allocation209_spill] sm:$0xff] }
 0x2c2   : > { %3000 = vmatmul.bf16.vlgmr.msrb.gmra.mxu0 %v10635_v38  ;;  %v2792_v29 = vadd.f32 %v2791_v7, %v2777_v23  ;;  %v11900_v7 = vld [vmem:[#allocation223_spill] sm:$0xff] }
 0x2c3   : > { %3027 = vmatpush.bf16.msrb.mxu2 %v11856_v5  ;;  %3048 = vmatpush.bf16.msra.mxu0 %v11858_v58  ;;  %v11887_v5 = vld [vmem:[#allocation210_spill] sm:$0xff]  ;;  %v11889_v58 = vld [vmem:[#allocation212_spill] sm:$0xff] }
 0x2c4   : > { %3014 = vmatmul.bf16.vlgmr.msrb.gmra.mxu1 %v10639_v45 }
 0x2c5   : > { %3041 = vmatpush.bf16.msrb.mxu3 %v11857_v59  ;;  %3062 = vmatpush.bf16.msra.mxu1 %v11859_v6  ;;  %v11888_v59 = vld [vmem:[#allocation211_spill] sm:$0xff]  ;;  %v11890_v6 = vld [vmem:[#allocation213_spill] sm:$0xff] }
 0x2c6   : > { %3028 = vmatmul.bf16.vlgmr.msrb.gmra.mxu2 %v10629_v33 }
 0x2c7   : > { %3076 = vmatpush.bf16.msra.mxu2 %v11860_v40  ;;  %3049 = vmatpush.bf16.msra.mxu0 %v11862_v42  ;;  %v2779_v44 = vpop.f32.mrf.mxu0  ;;  %v11891_v40 = vld [vmem:[#allocation214_spill] sm:$0xff] }
 0x2c8   : > { %3042 = vmatmul.bf16.vlgmr.msrb.gmra.mxu3 %v10633_v37  ;;  %v11895_v42 = vld [vmem:[#allocation218_spill] sm:$0xff] }
 0x2c9   : > { %3090 = vmatpush.bf16.msra.mxu3 %v11861_v21  ;;  %3063 = vmatpush.bf16.msra.mxu1 %v11863_v41  ;;  %v2805_v22 = vpop.f32.mrf.mxu2  ;;  %v2793_v55 = vpop.f32.mrf.mxu1  ;;  %v11894_v21 = vld [vmem:[#allocation217_spill] sm:$0xff]  ;;  %v11896_v41 = vld [vmem:[#allocation219_spill] sm:$0xff] }
 0x2ca   : > { %v2806_v27 = vadd.f32 %v2805_v22, %v2792_v29  ;;  %v2794_v2 = vadd.f32 %v2793_v55, %v2779_v44  ;;  %v11902_v29 = vld [vmem:[#allocation225_spill] sm:$0xff] }
 0x2cb   : > { %3077 = vmatpush.bf16.msra.mxu2 %v11864_v47  ;;  %3050 = vmatpush.bf16.msra.mxu0 %v11866_v20  ;;  %v2819_v31 = vpop.f32.mrf.mxu3  ;;  %v11898_v20 = vld [vmem:[#allocation221_spill] sm:$0xff] }
 0x2cc   : > { %v2820_v43 = vadd.f32 %v2819_v31, %v2806_v27  ;;  %v11904_v27 = vld [vmem:[#allocation227_spill] sm:$0xff] }
 0x2cd   : > { %3091 = vmatpush.bf16.msra.mxu3 %v11865_v32  ;;  %3064 = vmatpush.bf16.msra.mxu1 %v11867_v51  ;;  %v11897_v32 = vld [vmem:[#allocation220_spill] sm:$0xff]  ;;  %v11899_v51 = vld [vmem:[#allocation222_spill] sm:$0xff] }
 0x2ce   : > { %v3161_v60 = vadd.f32 %v2820_v43, %v2673_v35  ;;  %v11906_v43 = vld [vmem:[#allocation229_spill] sm:$0xff] }
 0x2cf   : > { %3078 = vmatpush.bf16.msra.mxu2 %v11868_v14  ;;  %3051 = vmatpush.bf16.msra.mxu0 %v11870_v13 }
 0x2d0   : > { %3177 = vst [vmem:[#allocation3 + $0x68] sm:$0xff] %v3161_v60  ;;  %v11909_v60 = vld [vmem:[#allocation232_spill] sm:$0xff] }
 0x2d1   : > { %3092 = vmatpush.bf16.msra.mxu3 %v11869_v28  ;;  %3065 = vmatpush.bf16.msra.mxu1 %v11871_v17  ;;  %v2807_v15 = vpop.f32.mrf.mxu2  ;;  %v11901_v28 = vld [vmem:[#allocation224_spill] sm:$0xff]  ;;  %v11903_v17 = vld [vmem:[#allocation226_spill] sm:$0xff] }
 0x2d2   : > { %v2808_v19 = vadd.f32 %v2807_v15, %v2794_v2  ;;  %v11910_v2 = vld [vmem:[#allocation233_spill] sm:$0xff]  ;;  %v2682_v15 = vld [vmem:[#allocation3 + $0x18] sm:$0xff] }
 0x2d3   : > { %3079 = vmatpush.bf16.msra.mxu2 %v11872_v18  ;;  %3052 = vmatpush.bf16.msra.mxu0 %v11874_v39  ;;  %v2821_v24 = vpop.f32.mrf.mxu3  ;;  %v11905_v39 = vld [vmem:[#allocation228_spill] sm:$0xff] }
 0x2d4   : > { %v2822_v25 = vadd.f32 %v2821_v24, %v2808_v19  ;;  %v2675_v24 = vld [vmem:[#allocation3 + $0x40] sm:$0xff] }
 0x2d5   : > { %3093 = vmatpush.bf16.msra.mxu3 %v11873_v26  ;;  %3066 = vmatpush.bf16.msra.mxu1 %v11875_v48  ;;  %v2674_v26 = vld [vmem:[#allocation3 + $0x10] sm:$0xff] }
 0x2d6   : > { %v3169_v61 = vadd.f32 %v2822_v25, %v2681_v63  ;;  %v11907_v48 = vld [vmem:[#allocation230_spill] sm:$0xff] }
 0x2d7   : > { %3080 = vmatpush.bf16.msra.mxu2 %v11876_v54  ;;  %3053 = vmatpush.bf16.msra.mxu0 %v11878_v3 }
 0x2d8   : > { %3185 = vst [vmem:[#allocation3 + $0x78] sm:$0xff] %v3169_v61 }
 0x2d9   : > { %3094 = vmatpush.bf16.msra.mxu3 %v11877_v56  ;;  %3067 = vmatpush.bf16.msra.mxu1 %v11879_v4  ;;  %v11908_v56 = vld [vmem:[#allocation231_spill] sm:$0xff] }
 0x2db   : > { %3081 = vmatpush.bf16.msra.mxu2 %v11880_v8  ;;  %3054 = vmatpush.bf16.msra.mxu0 %v11882_v9 }
 0x2dd   : > { %3095 = vmatpush.bf16.msra.mxu3 %v11881_v16  ;;  %3068 = vmatpush.bf16.msra.mxu1 %v11883_v53  ;;  %v2683_v53 = vld [vmem:[#allocation3 + $0x58] sm:$0xff] }
 0x2df   : > { %3082 = vmatpush.bf16.msra.mxu2 %v11884_v50  ;;  %3055 = vmatpush.bf16.msra.mxu0 %v10412_v10  ;;  %v11892_v10 = vld [vmem:[#allocation215_spill] sm:$0xff]  ;;  %v2833_v47 = vpop.f32.mrf.mxu0 }
 0x2e1   : > { %3096 = vmatpush.bf16.msra.mxu3 %v10404_v57  ;;  %3069 = vmatpush.bf16.msra.mxu1 %v11885_v62  ;;  %v11893_v57 = vld [vmem:[#allocation216_spill] sm:$0xff]  ;;  %v2847_v23 = vpop.f32.mrf.mxu1 }
 0x2e2   : > { %3056 = vmatmul.bf16.vlgmr.msra.gmra.mxu0 %v10635_v38  ;;  %v2848_v14 = vadd.f32 %v2847_v23, %v2833_v47 }
 0x2e3   : > { %3083 = vmatpush.bf16.msra.mxu2 %v11886_v1  ;;  %3104 = vmatpush.bf16.msrb.mxu0 %v11888_v59 }
 0x2e4   : > { %3070 = vmatmul.bf16.vlgmr.msra.gmra.mxu1 %v10639_v45 }
 0x2e5   : > { %3097 = vmatpush.bf16.msra.mxu3 %v11887_v5  ;;  %3118 = vmatpush.bf16.msrb.mxu1 %v11889_v58  ;;  %v2676_v58 = vld [vmem:[#allocation3 + $0x48] sm:$0xff] }
 0x2e6   : > { %3084 = vmatmul.bf16.vlgmr.msra.gmra.mxu2 %v10629_v33 }
 0x2e7   : > { %3132 = vmatpush.bf16.msrb.mxu2 %v11890_v6  ;;  %3105 = vmatpush.bf16.msrb.mxu0 %v11892_v10  ;;  %v2835_v35 = vpop.f32.mrf.mxu0 }
 0x2e8   : > { %3098 = vmatmul.bf16.vlgmr.msra.gmra.mxu3 %v10633_v37 }
 0x2e9   : > { %3146 = vmatpush.bf16.msrb.mxu3 %v11891_v40  ;;  %3119 = vmatpush.bf16.msrb.mxu1 %v11893_v57  ;;  %v2861_v13 = vpop.f32.mrf.mxu2  ;;  %v2849_v44 = vpop.f32.mrf.mxu1 }
 0x2ea   : > { %v2862_v18 = vadd.f32 %v2861_v13, %v2848_v14  ;;  %v2850_v55 = vadd.f32 %v2849_v44, %v2835_v35  ;;  %v2685_v44 = vld [vmem:[#allocation3 + $0x8] sm:$0xff] }
 0x2eb   : > { %3133 = vmatpush.bf16.msrb.mxu2 %v11894_v21  ;;  %3106 = vmatpush.bf16.msrb.mxu0 %v11896_v41  ;;  %v2875_v22 = vpop.f32.mrf.mxu3 }
 0x2ec   : > { %v2876_v31 = vadd.f32 %v2875_v22, %v2862_v18 }
 0x2ed   : > { %3147 = vmatpush.bf16.msrb.mxu3 %v11895_v42  ;;  %3120 = vmatpush.bf16.msrb.mxu1 %v11897_v32  ;;  %v2684_v32 = vld [vmem:[#allocation3] sm:$0xff] }
 0x2ee   : > { %v3162_v54 = vadd.f32 %v2876_v31, %v2674_v26 }
 0x2ef   : > { %3134 = vmatpush.bf16.msrb.mxu2 %v11898_v20  ;;  %3107 = vmatpush.bf16.msrb.mxu0 %v11900_v7 }
 0x2f0   : > { %3178 = vst [vmem:[#allocation3 + $0x10] sm:$0xff] %v3162_v54 }
 0x2f1   : > { %3148 = vmatpush.bf16.msrb.mxu3 %v11899_v51  ;;  %3121 = vmatpush.bf16.msrb.mxu1 %v11901_v28  ;;  %v2863_v3 = vpop.f32.mrf.mxu2 }
 0x2f2   : > { %v2864_v4 = vadd.f32 %v2863_v3, %v2850_v55 }
 0x2f3   : > { %3135 = vmatpush.bf16.msrb.mxu2 %v11902_v29  ;;  %3108 = vmatpush.bf16.msrb.mxu0 %v11904_v27  ;;  %v2877_v8 = vpop.f32.mrf.mxu3 }
 0x2f4   : > { %v2878_v16 = vadd.f32 %v2877_v8, %v2864_v4  ;;  %v2678_v8 = vld [vmem:[#allocation3 + $0x70] sm:$0xff] }
 0x2f5   : > { %3149 = vmatpush.bf16.msrb.mxu3 %v11903_v17  ;;  %3122 = vmatpush.bf16.msrb.mxu1 %v11905_v39  ;;  %v2677_v17 = vld [vmem:[#allocation3 + $0x30] sm:$0xff] }
 0x2f6   : > { %v3170_v19 = vadd.f32 %v2878_v16, %v2682_v15 }
 0x2f7   : > { %3136 = vmatpush.bf16.msrb.mxu2 %v11906_v43  ;;  %3109 = vmatpush.bf16.msrb.mxu0 %v11908_v56 }
 0x2f8   : > { %3186 = vst [vmem:[#allocation3 + $0x18] sm:$0xff] %v3170_v19 }
 0x2f9   : > { %3150 = vmatpush.bf16.msrb.mxu3 %v11907_v48  ;;  %3123 = vmatpush.bf16.msrb.mxu1 %v11909_v60 }
 0x2fb   : > { %3137 = vmatpush.bf16.msrb.mxu2 %v11910_v2  ;;  %3110 = vmatpush.bf16.msrb.mxu0 %v10553_v36 }
 0x2fd   : > { %3151 = vmatpush.bf16.msrb.mxu3 %v10545_v46  ;;  %3124 = vmatpush.bf16.msrb.mxu1 %v10557_v49 }
 0x2ff   : > { %3138 = vmatpush.bf16.msrb.mxu2 %v10559_v52  ;;  %3111 = vmatpush.bf16.msrb.mxu0 %v10573_v12  ;;  %v2889_v46 = vpop.f32.mrf.mxu0 }
 0x301   : > { %3152 = vmatpush.bf16.msrb.mxu3 %v10565_v30  ;;  %3125 = vmatpush.bf16.msrb.mxu1 %v10577_v0  ;;  %v2903_v36 = vpop.f32.mrf.mxu1 }
 0x302   : > { %3112 = vmatmul.bf16.vlgmr.msrb.gmra.mxu0 %v10635_v38  ;;  %v2904_v49 = vadd.f32 %v2903_v36, %v2889_v46 }
 0x303   : > { %3139 = vmatpush.bf16.msrb.mxu2 %v10579_v34 }
 0x304   : > { %3126 = vmatmul.bf16.vlgmr.msrb.gmra.mxu1 %v10639_v45 }
 0x305   : > { %3153 = vmatpush.bf16.msrb.mxu3 %v10582_v11 }
 0x306   : > { %3140 = vmatmul.bf16.vlgmr.msrb.gmra.mxu2 %v10629_v33 }
 0x307   : > { %v2891_v63 = vpop.f32.mrf.mxu0 }
 0x308   : > { %3154 = vmatmul.bf16.vlgmr.msrb.gmra.mxu3 %v10633_v37 }
 0x309   : > { %v2917_v52 = vpop.f32.mrf.mxu2  ;;  %v2905_v34 = vpop.f32.mrf.mxu1 }
 0x30a   : > { %v2918_v30 = vadd.f32 %v2917_v52, %v2904_v49  ;;  %v2906_v11 = vadd.f32 %v2905_v34, %v2891_v63 }
 0x30b   : > { %v2931_v12 = vpop.f32.mrf.mxu3 }
 0x30c   : > { %v2932_v0 = vadd.f32 %v2931_v12, %v2918_v30  ;;  %v2686_v12 = vld [vmem:[#allocation3 + $0x60] sm:$0xff] }
 0x30e   : > { %v3163_v9 = vadd.f32 %v2932_v0, %v2675_v24 }
 0x310   : > { %3179 = vst [vmem:[#allocation3 + $0x40] sm:$0xff] %v3163_v9 }
 0x311   : > { %v2919_v38 = vpop.f32.mrf.mxu2 }
 0x312   : > { %v2920_v25 = vadd.f32 %v2919_v38, %v2906_v11 }
 0x313   : > { %v2933_v45 = vpop.f32.mrf.mxu3 }
 0x314   : > { %v2934_v33 = vadd.f32 %v2933_v45, %v2920_v25  ;;  %v2679_v45 = vld [vmem:[#allocation3 + $0x38] sm:$0xff] }
 0x316   : > { %v3171_v50 = vadd.f32 %v2934_v33, %v2683_v53 }
 0x318   : > { %3187 = vst [vmem:[#allocation3 + $0x58] sm:$0xff] %v3171_v50 }
 0x31f   : > { %v2945_v37 = vpop.f32.mrf.mxu0 }
 0x321   : > { %v2959_v61 = vpop.f32.mrf.mxu1 }
 0x322   : > { %v2960_v62 = vadd.f32 %v2959_v61, %v2945_v37 }
 0x327   : > { %v2947_v40 = vpop.f32.mrf.mxu0 }
 0x329   : > { %v2973_v1 = vpop.f32.mrf.mxu2  ;;  %v2961_v10 = vpop.f32.mrf.mxu1 }
 0x32a   : > { %v2974_v5 = vadd.f32 %v2973_v1, %v2960_v62  ;;  %v2962_v21 = vadd.f32 %v2961_v10, %v2947_v40 }
 0x32b   : > { %v2987_v59 = vpop.f32.mrf.mxu3 }
 0x32c   : > { %v2988_v6 = vadd.f32 %v2987_v59, %v2974_v5  ;;  %v2687_v5 = vld [vmem:[#allocation3 + $0x50] sm:$0xff] }
 0x32e   : > { %v3164_v57 = vadd.f32 %v2988_v6, %v2676_v58 }
 0x330   : > { %3180 = vst [vmem:[#allocation3 + $0x48] sm:$0xff] %v3164_v57 }
 0x331   : > { %v2975_v42 = vpop.f32.mrf.mxu2 }
 0x332   : > { %v2976_v41 = vadd.f32 %v2975_v42, %v2962_v21 }
 0x333   : > { %v2989_v47 = vpop.f32.mrf.mxu3 }
 0x334   : > { %v2990_v20 = vadd.f32 %v2989_v47, %v2976_v41 }
 0x336   : > { %v3172_v23 = vadd.f32 %v2990_v20, %v2684_v32 }
 0x338   : > { %3188 = vst [vmem:[#allocation3] sm:$0xff] %v3172_v23 }
 0x33f   : > { %v3001_v51 = vpop.f32.mrf.mxu0 }
 0x341   : > { %v3015_v14 = vpop.f32.mrf.mxu1 }
 0x342   : > { %v3016_v7 = vadd.f32 %v3015_v14, %v3001_v51 }
 0x347   : > { %v3003_v22 = vpop.f32.mrf.mxu0 }
 0x349   : > { %v3029_v28 = vpop.f32.mrf.mxu2  ;;  %v3017_v26 = vpop.f32.mrf.mxu1 }
 0x34a   : > { %v3030_v29 = vadd.f32 %v3029_v28, %v3016_v7  ;;  %v3018_v31 = vadd.f32 %v3017_v26, %v3003_v22 }
 0x34b   : > { %v3043_v13 = vpop.f32.mrf.mxu3 }
 0x34c   : > { %v3044_v18 = vadd.f32 %v3043_v13, %v3030_v29 }
 0x34e   : > { %v3165_v27 = vadd.f32 %v3044_v18, %v2677_v17 }
 0x350   : > { %3181 = vst [vmem:[#allocation3 + $0x30] sm:$0xff] %v3165_v27 }
 0x351   : > { %v3031_v35 = vpop.f32.mrf.mxu2 }
 0x352   : > { %v3032_v39 = vadd.f32 %v3031_v35, %v3018_v31 }
 0x353   : > { %v3045_v43 = vpop.f32.mrf.mxu3 }
 0x354   : > { %v3046_v48 = vadd.f32 %v3045_v43, %v3032_v39 }
 0x356   : > { %v3173_v54 = vadd.f32 %v3046_v48, %v2685_v44 }
 0x358   : > { %3189 = vst [vmem:[#allocation3 + $0x8] sm:$0xff] %v3173_v54 }
 0x35f   : > { %v3057_v55 = vpop.f32.mrf.mxu0 }
 0x361   : > { %v3071_v56 = vpop.f32.mrf.mxu1 }
 0x362   : > { %v3072_v60 = vadd.f32 %v3071_v56, %v3057_v55 }
 0x367   : > { %v3059_v16 = vpop.f32.mrf.mxu0 }
 0x369   : > { %v3085_v2 = vpop.f32.mrf.mxu2  ;;  %v3073_v19 = vpop.f32.mrf.mxu1 }
 0x36a   : > { %v3086_v3 = vadd.f32 %v3085_v2, %v3072_v60  ;;  %v3074_v36 = vadd.f32 %v3073_v19, %v3059_v16 }
 0x36b   : > { %v3099_v4 = vpop.f32.mrf.mxu3 }
 0x36c   : > { %v3100_v15 = vadd.f32 %v3099_v4, %v3086_v3 }
 0x36e   : > { %v3166_v46 = vadd.f32 %v3100_v15, %v2678_v8 }
 0x370   : > { %3182 = vst [vmem:[#allocation3 + $0x70] sm:$0xff] %v3166_v46 }
 0x371   : > { %v3087_v49 = vpop.f32.mrf.mxu2 }
 0x372   : > { %v3088_v52 = vadd.f32 %v3087_v49, %v3074_v36 }
 0x373   : > { %v3101_v30 = vpop.f32.mrf.mxu3 }
 0x374   : > { %v3102_v24 = vadd.f32 %v3101_v30, %v3088_v52 }
 0x376   : > { %v3174_v0 = vadd.f32 %v3102_v24, %v2686_v12 }
 0x378   : > { %3190 = vst [vmem:[#allocation3 + $0x60] sm:$0xff] %v3174_v0 }
 0x37f   : > { %v3113_v63 = vpop.f32.mrf.mxu0 }
 0x381   : > { %v3127_v34 = vpop.f32.mrf.mxu1 }
 0x382   : > { %v3128_v9 = vadd.f32 %v3127_v34, %v3113_v63 }
 0x387   : > { %v3115_v33 = vpop.f32.mrf.mxu0 }
 0x389   : > { %v3141_v11 = vpop.f32.mrf.mxu2  ;;  %v3129_v50 = vpop.f32.mrf.mxu1 }
 0x38a   : > { %v3142_v38 = vadd.f32 %v3141_v11, %v3128_v9  ;;  %v3130_v61 = vadd.f32 %v3129_v50, %v3115_v33 }
 0x38b   : > { %v3155_v25 = vpop.f32.mrf.mxu3 }
 0x38c   : > { %v3156_v53 = vadd.f32 %v3155_v25, %v3142_v38 }
 0x38e   : > { %v3167_v37 = vadd.f32 %v3156_v53, %v2679_v45 }
 0x390   : > { %3183 = vst [vmem:[#allocation3 + $0x38] sm:$0xff] %v3167_v37 }
 0x391   : > { %v3143_v62 = vpop.f32.mrf.mxu2 }
 0x392   : > { %v3144_v1 = vadd.f32 %v3143_v62, %v3130_v61 }
 0x393   : > { %v3157_v59 = vpop.f32.mrf.mxu3 }
 0x394   : > { %v3158_v58 = vadd.f32 %v3157_v59, %v3144_v1  ;;  %3195 = sbr.rel (%p6969_p1) target bundleno = 1656 (0x678), region = 138 }
 0x396   : > { %v3175_v6 = vadd.f32 %v3158_v58, %v2687_v5 }
 0x398   : > { %3191 = vst [vmem:[#allocation3 + $0x50] sm:$0xff] %v3175_v6 }
 0x399   : > { %v7084_v40 = vld [vmem:[#allocation11 + $0xe0] sm:$0xf]  ;;  %v8428_v10 = vld [vmem:[#allocation11 + $0xec] sm:$0xf0]  ;;  %vm5668_vm4 = vcmask 523264   ;;  %vm5719_vm11 = vcmask 7168  }
 0x39a   : > { %v7212_v57 = vld [vmem:[#allocation11 + $0x1e0] sm:$0xf]  ;;  %v7085_v21 = vor.u32 %v8428_v10, %v7084_v40  ;;  %v8460_v42 = vld [vmem:[#allocation11 + $0x1ec] sm:$0xf0] }
 0x39b   : > { %v7340_v41 = vld [vmem:[#allocation11 + $0x2e0] sm:$0xf]  ;;  %v8492_v47 = vld [vmem:[#allocation11 + $0x2ec] sm:$0xf0]  ;;  %v7213_v32 = vor.u32 %v8460_v42, %v7212_v57 }
 0x39c   : > { %v7341_v20 = vor.u32 %v8492_v47, %v7340_v41  ;;  %v7468_v23 = vld [vmem:[#allocation11 + $0x3e0] sm:$0xf]  ;;  %v8524_v51 = vld [vmem:[#allocation11 + $0x3ec] sm:$0xf0]  ;;  %4848 = vmatpush.bf16.msra.mxu0 %v7085_v21 }
 0x39d   : > { %v7068_v14 = vld [vmem:[#allocation11 + $0xc0] sm:$0xf]  ;;  %v7469_v7 = vor.u32 %v8524_v51, %v7468_v23  ;;  %v8424_v28 = vld [vmem:[#allocation11 + $0xcc] sm:$0xf0]  ;;  %4862 = vmatpush.bf16.msra.mxu1 %v7213_v32 }
 0x39e   : > { %v7196_v29 = vld [vmem:[#allocation11 + $0x1c0] sm:$0xf]  ;;  %v8456_v13 = vld [vmem:[#allocation11 + $0x1cc] sm:$0xf0]  ;;  %4876 = vmatpush.bf16.msra.mxu2 %v7341_v20  ;;  %v7069_v17 = vor.u32 %v8424_v28, %v7068_v14 }
 0x39f   : > { %v7197_v18 = vor.u32 %v8456_v13, %v7196_v29  ;;  %v7324_v22 = vld [vmem:[#allocation11 + $0x2c0] sm:$0xf]  ;;  %v8488_v26 = vld [vmem:[#allocation11 + $0x2cc] sm:$0xf0]  ;;  %4890 = vmatpush.bf16.msra.mxu3 %v7469_v7 }
 0x3a0   : > { %v7452_v27 = vld [vmem:[#allocation11 + $0x3c0] sm:$0xf]  ;;  %v7325_v31 = vor.u32 %v8488_v26, %v7324_v22  ;;  %v8520_v35 = vld [vmem:[#allocation11 + $0x3cc] sm:$0xf0]  ;;  %4849 = vmatpush.bf16.msra.mxu0 %v7069_v17 }
 0x3a1   : > { %v7052_v39 = vld [vmem:[#allocation11 + $0xa0] sm:$0xf]  ;;  %v8420_v43 = vld [vmem:[#allocation11 + $0xac] sm:$0xf0]  ;;  %v7453_v44 = vor.u32 %v8520_v35, %v7452_v27  ;;  %4863 = vmatpush.bf16.msra.mxu1 %v7197_v18 }
 0x3a2   : > { %v7180_v48 = vld [vmem:[#allocation11 + $0x1a0] sm:$0xf]  ;;  %v8452_v54 = vld [vmem:[#allocation11 + $0x1ac] sm:$0xf0]  ;;  %v7053_v56 = vor.u32 %v8420_v43, %v7052_v39  ;;  %4877 = vmatpush.bf16.msra.mxu2 %v7325_v31 }
 0x3a3   : > { %v7308_v55 = vld [vmem:[#allocation11 + $0x2a0] sm:$0xf]  ;;  %v8484_v60 = vld [vmem:[#allocation11 + $0x2ac] sm:$0xf0]  ;;  %v7181_v4 = vor.u32 %v8452_v54, %v7180_v48  ;;  %4891 = vmatpush.bf16.msra.mxu3 %v7453_v44 }
 0x3a4   : > { %v7436_v2 = vld [vmem:[#allocation11 + $0x3a0] sm:$0xf]  ;;  %v8516_v3 = vld [vmem:[#allocation11 + $0x3ac] sm:$0xf0]  ;;  %v7309_v8 = vor.u32 %v8484_v60, %v7308_v55  ;;  %4850 = vmatpush.bf16.msra.mxu0 %v7053_v56 }
 0x3a5   : > { %v7036_v15 = vld [vmem:[#allocation11 + $0x80] sm:$0xf]  ;;  %v8416_v16 = vld [vmem:[#allocation11 + $0x8c] sm:$0xf0]  ;;  %v7437_v46 = vor.u32 %v8516_v3, %v7436_v2  ;;  %4864 = vmatpush.bf16.msra.mxu1 %v7181_v4 }
 0x3a6   : > { %v7164_v19 = vld [vmem:[#allocation11 + $0x180] sm:$0xf]  ;;  %v8448_v36 = vld [vmem:[#allocation11 + $0x18c] sm:$0xf0]  ;;  %v7037_v24 = vor.u32 %v8416_v16, %v7036_v15  ;;  %4878 = vmatpush.bf16.msra.mxu2 %v7309_v8 }
 0x3a7   : > { %v7292_v49 = vld [vmem:[#allocation11 + $0x280] sm:$0xf]  ;;  %v8480_v52 = vld [vmem:[#allocation11 + $0x28c] sm:$0xf0]  ;;  %v7165_v0 = vor.u32 %v8448_v36, %v7164_v19  ;;  %4892 = vmatpush.bf16.msra.mxu3 %v7437_v46 }
 0x3a8   : > { %v7420_v30 = vld [vmem:[#allocation11 + $0x380] sm:$0xf]  ;;  %v8512_v12 = vld [vmem:[#allocation11 + $0x38c] sm:$0xf0]  ;;  %v7293_v63 = vor.u32 %v8480_v52, %v7292_v49  ;;  %4851 = vmatpush.bf16.msra.mxu0 %v7037_v24 }
 0x3a9   : > { %v7020_v34 = vld [vmem:[#allocation11 + $0x60] sm:$0xf]  ;;  %v8412_v9 = vld [vmem:[#allocation11 + $0x6c] sm:$0xf0]  ;;  %v7421_v38 = vor.u32 %v8512_v12, %v7420_v30  ;;  %4865 = vmatpush.bf16.msra.mxu1 %v7165_v0 }
 0x3aa   : > { %v7148_v11 = vld [vmem:[#allocation11 + $0x160] sm:$0xf]  ;;  %v8444_v25 = vld [vmem:[#allocation11 + $0x16c] sm:$0xf0]  ;;  %v7021_v37 = vor.u32 %v8412_v9, %v7020_v34  ;;  %4879 = vmatpush.bf16.msra.mxu2 %v7293_v63 }
 0x3ab   : > { %v7276_v45 = vld [vmem:[#allocation11 + $0x260] sm:$0xf]  ;;  %v8476_v53 = vld [vmem:[#allocation11 + $0x26c] sm:$0xf0]  ;;  %v7149_v61 = vor.u32 %v8444_v25, %v7148_v11  ;;  %4893 = vmatpush.bf16.msra.mxu3 %v7421_v38 }
 0x3ac   : > { %v7404_v33 = vld [vmem:[#allocation11 + $0x360] sm:$0xf]  ;;  %v8508_v50 = vld [vmem:[#allocation11 + $0x36c] sm:$0xf0]  ;;  %v7277_v62 = vor.u32 %v8476_v53, %v7276_v45  ;;  %4852 = vmatpush.bf16.msra.mxu0 %v7021_v37 }
 0x3ad   : > { %v7004_v1 = vld [vmem:[#allocation11 + $0x40] sm:$0xf]  ;;  %v8408_v5 = vld [vmem:[#allocation11 + $0x4c] sm:$0xf0]  ;;  %v7405_v58 = vor.u32 %v8508_v50, %v7404_v33  ;;  %4866 = vmatpush.bf16.msra.mxu1 %v7149_v61 }
 0x3ae   : > { %v7132_v59 = vld [vmem:[#allocation11 + $0x140] sm:$0xf]  ;;  %v8440_v6 = vld [vmem:[#allocation11 + $0x14c] sm:$0xf0]  ;;  %v7005_v42 = vor.u32 %v8408_v5, %v7004_v1  ;;  %4880 = vmatpush.bf16.msra.mxu2 %v7277_v62 }
 0x3af   : > { %v7260_v40 = vld [vmem:[#allocation11 + $0x240] sm:$0xf]  ;;  %v8472_v10 = vld [vmem:[#allocation11 + $0x24c] sm:$0xf0]  ;;  %v7133_v41 = vor.u32 %v8440_v6, %v7132_v59  ;;  %4894 = vmatpush.bf16.msra.mxu3 %v7405_v58  ;;  %v3196_v58 = vld [vmem:[#allocation2 + $0x30] sm:$0xff] }
 0x3b0   : > { %v7388_v57 = vld [vmem:[#allocation11 + $0x340] sm:$0xf]  ;;  %v8504_v21 = vld [vmem:[#allocation11 + $0x34c] sm:$0xf0]  ;;  %v7261_v47 = vor.u32 %v8472_v10, %v7260_v40  ;;  %4853 = vmatpush.bf16.msra.mxu0 %v7005_v42  ;;  %v3204_v6 = vld [vmem:[#allocation2 + $0x40] sm:$0xff] }
 0x3b1   : > { %v6988_v32 = vld [vmem:[#allocation11 + $0x20] sm:$0xf]  ;;  %v8404_v20 = vld [vmem:[#allocation11 + $0x2c] sm:$0xf0]  ;;  %v7389_v51 = vor.u32 %v8504_v21, %v7388_v57  ;;  %4867 = vmatpush.bf16.msra.mxu1 %v7133_v41  ;;  %v10925_v40 = vld [vmem:[#allocation9] sm:$0xff] }
 0x3b2   : > { %v7116_v23 = vld [vmem:[#allocation11 + $0x120] sm:$0xf]  ;;  %v8436_v14 = vld [vmem:[#allocation11 + $0x12c] sm:$0xf0]  ;;  %v6989_v18 = vor.u32 %v8404_v20, %v6988_v32  ;;  %4881 = vmatpush.bf16.msra.mxu2 %v7261_v47  ;;  %v3214_v21 = vperm.slane %v10925_v40, 0  ;;  %v3254_v41 = vld [vmem:[#allocation3 + $0x20] sm:$0xff] }
 0x3b3   : > { %v7244_v7 = vld [vmem:[#allocation11 + $0x220] sm:$0xf]  ;;  %v8468_v28 = vld [vmem:[#allocation11 + $0x22c] sm:$0xf0]  ;;  %v7117_v31 = vor.u32 %v8436_v14, %v7116_v23  ;;  %4895 = vmatpush.bf16.msra.mxu3 %v7389_v51  ;;  %v3216_v32 = vperm.slane %v10925_v40, 2  ;;  %v3206_v51 = vld [vmem:[#allocation2 + $0x10] sm:$0xff] }
 0x3b4   : > { %v7372_v29 = vld [vmem:[#allocation11 + $0x320] sm:$0xf]  ;;  %v8500_v13 = vld [vmem:[#allocation11 + $0x32c] sm:$0xf0]  ;;  %v7245_v35 = vor.u32 %v8468_v28, %v7244_v7  ;;  %4854 = vmatpush.bf16.msra.mxu0 %v6989_v18  ;;  %v3248_v14 = vld [vmem:[#allocation3 + $0x10] sm:$0xff]  ;;  %v3215_v28 = vperm.slane %v10925_v40, 1  ;;  %v3230_v18 = vadd.f32 %v3214_v21, %v3196_v58 }
 0x3b5   : > { %v6972_v17 = vld [vmem:[#allocation11] sm:$0xf]  ;;  %v8400_v22 = vld [vmem:[#allocation11 + $0xc] sm:$0xf0]  ;;  %v7373_v48 = vor.u32 %v8500_v13, %v7372_v29  ;;  %4868 = vmatpush.bf16.msra.mxu1 %v7117_v31  ;;  %v3217_v29 = vperm.slane %v10925_v40, 3 }
 0x3b6   : > { %v7100_v26 = vld [vmem:[#allocation11 + $0x100] sm:$0xf]  ;;  %v8432_v27 = vld [vmem:[#allocation11 + $0x10c] sm:$0xf0]  ;;  %v6973_v4 = vor.u32 %v8400_v22, %v6972_v17  ;;  %4882 = vmatpush.bf16.msra.mxu2 %v7245_v35  ;;  %v3238_v22 = vadd.f32 %v3214_v21, %v3204_v6 }
 0x3b7   : > { %v7228_v39 = vld [vmem:[#allocation11 + $0x200] sm:$0xf]  ;;  %v8464_v43 = vld [vmem:[#allocation11 + $0x20c] sm:$0xf0]  ;;  %v7101_v19 = vor.u32 %v8432_v27, %v7100_v26  ;;  %4896 = vmatpush.bf16.msra.mxu3 %v7373_v48  ;;  %v3270_v27 = vadd.f32 %v3254_v41, %v3214_v21 }
 0x3b8   : > { %v7356_v44 = vld [vmem:[#allocation11 + $0x300] sm:$0xf]  ;;  %v8496_v54 = vld [vmem:[#allocation11 + $0x30c] sm:$0xf0]  ;;  %v7229_v46 = vor.u32 %v8464_v43, %v7228_v39  ;;  %4855 = vmatpush.bf16.msra.mxu0 %v6973_v4  ;;  %v3240_v43 = vadd.f32 %v3216_v32, %v3206_v51  ;;  %v3197_v4 = vld [vmem:[#allocation2] sm:$0xff] }
 0x3b9   : > { %v7596_v55 = vld [vmem:[#allocation11 + $0x4e0] sm:$0xf]  ;;  %v8556_v56 = vld [vmem:[#allocation11 + $0x4ec] sm:$0xf0]  ;;  %v7357_v30 = vor.u32 %v8496_v54, %v7356_v44  ;;  %4869 = vmatpush.bf16.msra.mxu1 %v7101_v19  ;;  %v3264_v44 = vadd.f32 %v3248_v14, %v3216_v32  ;;  %v3205_v19 = vld [vmem:[#allocation2 + $0x20] sm:$0xff] }
 0x3ba   : > { %v7724_v60 = vld [vmem:[#allocation11 + $0x5e0] sm:$0xf]  ;;  %v8588_v2 = vld [vmem:[#allocation11 + $0x5ec] sm:$0xf0]  ;;  %v7597_v12 = vor.u32 %v8556_v56, %v7596_v55  ;;  %4883 = vmatpush.bf16.msra.mxu2 %v7229_v46 }
 0x3bb   : > { %v7852_v3 = vld [vmem:[#allocation11 + $0x6e0] sm:$0xf]  ;;  %v8620_v8 = vld [vmem:[#allocation11 + $0x6ec] sm:$0xf0]  ;;  %v7725_v34 = vor.u32 %v8588_v2, %v7724_v60  ;;  %4897 = vmatpush.bf16.msra.mxu3 %v7357_v30  ;;  %v3231_v30 = vadd.f32 %v3215_v28, %v3197_v4 }
 0x3bc   : > { %v7980_v15 = vld [vmem:[#allocation11 + $0x7e0] sm:$0xf]  ;;  %v8652_v16 = vld [vmem:[#allocation11 + $0x7ec] sm:$0xf0]  ;;  %v7853_v9 = vor.u32 %v8620_v8, %v7852_v3  ;;  %4904 = vmatpush.bf16.msrb.mxu0 %v7597_v12  ;;  %v3286_v3 = vmul.f32 %v3270_v27, %v3238_v22  ;;  %v3239_v12 = vadd.f32 %v3215_v28, %v3205_v19 }
 0x3bd   : > { %v7580_v36 = vld [vmem:[#allocation11 + $0x4c0] sm:$0xf]  ;;  %v8552_v49 = vld [vmem:[#allocation11 + $0x4cc] sm:$0xf0]  ;;  %v7981_v45 = vor.u32 %v8652_v16, %v7980_v15  ;;  %4918 = vmatpush.bf16.msrb.mxu1 %v7725_v34 }
 0x3be   : > { %v10897_v52 = vld [vmem:[#allocation11 + $0x5c0] sm:$0xf]  ;;  %v10899_v24 = vld [vmem:[#allocation11 + $0x5cc] sm:$0xf0]  ;;  %v7581_v37 = vor.u32 %v8552_v49, %v7580_v36  ;;  %4932 = vmatpush.bf16.msrb.mxu2 %v7853_v9 }
 0x3bf   : > { %v10901_v0 = vld [vmem:[#allocation11 + $0x6c0] sm:$0xf]  ;;  %v8616_v63 = vld [vmem:[#allocation11 + $0x6cc] sm:$0xf0]  ;;  %v7709_v61 = vor.u32 %v10899_v24, %v10897_v52  ;;  %4946 = vmatpush.bf16.msrb.mxu3 %v7981_v45 }
 0x3c0   : > { %v10903_v11 = vld [vmem:[#allocation11 + $0x7c0] sm:$0xf]  ;;  %v10905_v38 = vld [vmem:[#allocation11 + $0x7cc] sm:$0xf0]  ;;  %v7837_v10 = vor.u32 %v8616_v63, %v10901_v0  ;;  %4905 = vmatpush.bf16.msrb.mxu0 %v7581_v37  ;;  %v3249_v63 = vld [vmem:[#allocation3 + $0x40] sm:$0xff] }
 0x3c1   : > { %v10907_v25 = vld [vmem:[#allocation11 + $0x4a0] sm:$0xf]  ;;  %v10909_v53 = vld [vmem:[#allocation11 + $0x4ac] sm:$0xf0]  ;;  %v7965_v57 = vor.u32 %v10905_v38, %v10903_v11  ;;  %4919 = vmatpush.bf16.msrb.mxu1 %v7709_v61  ;;  %v3265_v61 = vadd.f32 %v3249_v63, %v3217_v29 }
 0x3c2   : > { %v10911_v33 = vld [vmem:[#allocation11 + $0x5a0] sm:$0xf]  ;;  %v10913_v50 = vld [vmem:[#allocation11 + $0x5ac] sm:$0xf0]  ;;  %v7565_v20 = vor.u32 %v10909_v53, %v10907_v25  ;;  %4933 = vmatpush.bf16.msrb.mxu2 %v7837_v10 }
 0x3c3   : > { %v10917_v62 = vld [vmem:[#allocation11 + $0x6a0] sm:$0xf]  ;;  %v10919_v1 = vld [vmem:[#allocation11 + $0x6ac] sm:$0xf0]  ;;  %v7693_v23 = vor.u32 %v10913_v50, %v10911_v33  ;;  %4947 = vmatpush.bf16.msrb.mxu3 %v7965_v57 }
 0x3c4   : > { %v10921_v5 = vld [vmem:[#allocation11 + $0x7a0] sm:$0xf]  ;;  %v10923_v59 = vld [vmem:[#allocation11 + $0x7ac] sm:$0xf0]  ;;  %v7821_v54 = vor.u32 %v10919_v1, %v10917_v62  ;;  %4906 = vmatpush.bf16.msrb.mxu0 %v7565_v20  ;;  %v10963_v1 = vperm.slane %v10925_v40, 4 }
 0x3c5   : > { %v3246_v42 = vld [vmem:[#allocation3 + $0x28] sm:$0xff]  ;;  %v3198_v47 = vld [vmem:[#allocation2 + $0x58] sm:$0xff]  ;;  %v7949_v55 = vor.u32 %v10923_v59, %v10921_v5  ;;  %4920 = vmatpush.bf16.msrb.mxu1 %v7693_v23 }
 0x3c6   : > { %v3256_v7 = vld [vmem:[#allocation3 + $0x18] sm:$0xff]  ;;  %v10938_v13 = vld [vmem:[#allocation11 + $0x480] sm:$0xf]  ;;  %v3262_v26 = vadd.f32 %v3246_v42, %v3214_v21  ;;  %v3232_v39 = vadd.f32 %v3216_v32, %v3198_v47  ;;  %4934 = vmatpush.bf16.msrb.mxu2 %v7821_v54 }
 0x3c7   : > { %v10940_v17 = vld [vmem:[#allocation11 + $0x48c] sm:$0xf0]  ;;  %v10942_v31 = vld [vmem:[#allocation11 + $0x580] sm:$0xf]  ;;  %v3272_v48 = vadd.f32 %v3256_v7, %v3216_v32  ;;  %4948 = vmatpush.bf16.msrb.mxu3 %v7949_v55  ;;  %v10972_v7 = vperm.slane %v10925_v40, 6 }
 0x3c8   : > { %v10944_v35 = vld [vmem:[#allocation11 + $0x58c] sm:$0xf0]  ;;  %v10950_v56 = vld [vmem:[#allocation11 + $0x680] sm:$0xf]  ;;  %v3278_v2 = vmul.f32 %v3262_v26, %v3230_v18  ;;  %v7549_v8 = vor.u32 %v10940_v17, %v10938_v13  ;;  %v3280_v15 = vmul.f32 %v3264_v44, %v3232_v39 }
 0x3c9   : > { %v10952_v60 = vld [vmem:[#allocation11 + $0x68c] sm:$0xf0]  ;;  %v3288_v16 = vmul.f32 %v3272_v48, %v3240_v43  ;;  %v3247_v46 = vld [vmem:[#allocation3 + $0x68] sm:$0xff]  ;;  %v7677_v49 = vor.u32 %v10944_v35, %v10942_v31 }
 0x3ca   : > { %v3255_v36 = vld [vmem:[#allocation3 + $0x78] sm:$0xff]  ;;  %v10958_v52 = vpack.c.bf16 %v3286_v3, %v3278_v2  ;;  %v7932_v34 = vld [vmem:[#allocation11 + $0x780] sm:$0xf]  ;;  %v3263_v38 = vadd.f32 %v3247_v46, %v3215_v28  ;;  %v7805_v5 = vor.u32 %v10952_v60, %v10950_v56  ;;  %4907 = vmatpush.bf16.msrb.mxu0 %v7549_v8 }
 0x3cb   : > { %v3199_v24 = vld [vmem:[#allocation2 + $0x18] sm:$0xff]  ;;  %v10960_v11 = vpack.c.bf16 %v3288_v16, %v3280_v15  ;;  %v3271_v25 = vadd.f32 %v3255_v36, %v3215_v28  ;;  %v7532_v33 = vld [vmem:[#allocation11 + $0x460] sm:$0xf]  ;;  %v10975_v28 = vperm.slane %v10925_v40, 5  ;;  %4921 = vmatpush.bf16.msrb.mxu1 %v7677_v49 }
 0x3cc   : > { %v3207_v0 = vld [vmem:[#allocation2 + $0x38] sm:$0xff]  ;;  %v3233_v45 = vadd.f32 %v3217_v29, %v3199_v24  ;;  %v7660_v59 = vld [vmem:[#allocation11 + $0x560] sm:$0xf]  ;;  %v3279_v10 = vmul.f32 %v3263_v38, %v3231_v30  ;;  %4856 = vmatmul.bf16.vlgmr.msra.gmra.mxu0 %v10958_v52  ;;  %4935 = vmatpush.bf16.msrb.mxu2 %v7805_v5  ;;  %v3208_v38 = vld [vmem:[#allocation2 + $0x60] sm:$0xff] }
 0x3cd   : > { %v8640_v9 = vld [vmem:[#allocation11 + $0x78c] sm:$0xf0]  ;;  %v3241_v37 = vadd.f32 %v3217_v29, %v3207_v0  ;;  %v7788_v6 = vld [vmem:[#allocation11 + $0x660] sm:$0xf]  ;;  %v3287_v57 = vmul.f32 %v3271_v25, %v3239_v12  ;;  %4884 = vmatmul.bf16.vlgmr.msra.gmra.mxu2 %v10960_v11 }
 0x3ce   : > { %v3257_v53 = vld [vmem:[#allocation3 + $0x58] sm:$0xff]  ;;  %v7933_v21 = vor.u32 %v8640_v9, %v7932_v34  ;;  %v7916_v41 = vld [vmem:[#allocation11 + $0x760] sm:$0xf]  ;;  %v3281_v32 = vmul.f32 %v3265_v61, %v3233_v45  ;;  %v3200_v9 = vld [vmem:[#allocation2 + $0x50] sm:$0xff] }
 0x3cf   : > { %v8540_v50 = vld [vmem:[#allocation11 + $0x46c] sm:$0xf0]  ;;  %v3273_v62 = vadd.f32 %v3257_v53, %v3217_v29  ;;  %v10969_v23 = vpack.c.bf16 %v3287_v57, %v3279_v10  ;;  %v7516_v51 = vld [vmem:[#allocation11 + $0x440] sm:$0xf]  ;;  %v3234_v45 = vadd.f32 %v10963_v1, %v3200_v9  ;;  %v3242_v53 = vadd.f32 %v10963_v1, %v3208_v38  ;;  %v3252_v10 = vld [vmem:[#allocation3 + $0x70] sm:$0xff] }
 0x3d0   : > { %v8572_v58 = vld [vmem:[#allocation11 + $0x56c] sm:$0xf0]  ;;  %v7533_v29 = vor.u32 %v8540_v50, %v7532_v33  ;;  %v7644_v17 = vld [vmem:[#allocation11 + $0x540] sm:$0xf]  ;;  %4949 = vmatpush.bf16.msrb.mxu3 %v7933_v21  ;;  %v3258_v33 = vld [vmem:[#allocation3] sm:$0xff] }
 0x3d1   : > { %v8604_v42 = vld [vmem:[#allocation11 + $0x66c] sm:$0xf0]  ;;  %v3289_v20 = vmul.f32 %v3273_v62, %v3241_v37  ;;  %v7772_v22 = vld [vmem:[#allocation11 + $0x640] sm:$0xf]  ;;  %v7661_v31 = vor.u32 %v8572_v58, %v7660_v59  ;;  %4870 = vmatmul.bf16.vlgmr.msra.gmra.mxu1 %v10969_v23  ;;  %v3221_v62 = vperm.slane %v10925_v40, 7  ;;  %v3274_v59 = vadd.f32 %v3258_v33, %v10963_v1  ;;  %v3260_v57 = vld [vmem:[#allocation3 + $0x60] sm:$0xff] }
 0x3d2   : > { %v8636_v47 = vld [vmem:[#allocation11 + $0x76c] sm:$0xf0]  ;;  %v10979_v27 = vld [vmem:[#allocation11 + $0x740] sm:$0xf]  ;;  %v7789_v35 = vor.u32 %v8604_v42, %v7788_v6  ;;  %4908 = vmatpush.bf16.msrb.mxu0 %v7533_v29  ;;  %v8422_v38 = vld [vmem:[#allocation11 + $0xc4] sm:$0xf] }
 0x3d3   : > { %v8536_v14 = vld [vmem:[#allocation11 + $0x44c] sm:$0xf0]  ;;  %v10977_v13 = vpack.c.bf16 %v3289_v20, %v3281_v32  ;;  %v10981_v43 = vld [vmem:[#allocation11 + $0x420] sm:$0xf]  ;;  %v7917_v48 = vor.u32 %v8636_v47, %v7916_v41  ;;  %4922 = vmatpush.bf16.msrb.mxu1 %v7661_v31  ;;  %v8426_v47 = vld [vmem:[#allocation11 + $0xe4] sm:$0xf]  ;;  %v3268_v32 = vadd.f32 %v3252_v10, %v10972_v7  ;;  %v3276_v20 = vadd.f32 %v3260_v57, %v10972_v7 }
 0x3d4   : > { %v8568_v18 = vld [vmem:[#allocation11 + $0x54c] sm:$0xf0]  ;;  %v10986_v54 = vld [vmem:[#allocation11 + $0x520] sm:$0xf]  ;;  %v7517_v4 = vor.u32 %v8536_v14, %v7516_v51  ;;  %4936 = vmatpush.bf16.msrb.mxu2 %v7789_v35  ;;  %v3251_v51 = vld [vmem:[#allocation3 + $0x30] sm:$0xff] }
 0x3d5   : > { %v8600_v26 = vld [vmem:[#allocation11 + $0x64c] sm:$0xf0]  ;;  %v10990_v56 = vld [vmem:[#allocation11 + $0x620] sm:$0xf]  ;;  %4898 = vmatmul.bf16.vlgmr.msra.gmra.mxu3 %v10977_v13  ;;  %v7645_v19 = vor.u32 %v8568_v18, %v7644_v17  ;;  %v7086_v35 = vld [vmem:[#allocation11 + $0xf0] sm:$0xf0] }
 0x3d6   : > { %v8632_v39 = vld [vmem:[#allocation11 + $0x74c] sm:$0xf0]  ;;  %v10995_v2 = vld [vmem:[#allocation11 + $0x720] sm:$0xf]  ;;  %v7773_v46 = vor.u32 %v8600_v26, %v7772_v22  ;;  %4950 = vmatpush.bf16.msrb.mxu3 %v7917_v48  ;;  %4909 = vmatpush.bf16.msrb.mxu0 %v7517_v4  ;;  %v3267_v22 = vadd.f32 %v3251_v51, %v10975_v28  ;;  %v8418_v10 = vld [vmem:[#allocation11 + $0xa4] sm:$0xf] }
 0x3d7   : > { %v10983_v44 = vld [vmem:[#allocation11 + $0x42c] sm:$0xf0]  ;;  %v10999_v8 = vld [vmem:[#allocation11 + $0x400] sm:$0xf]  ;;  %v7901_v36 = vor.u32 %v8632_v39, %v10979_v27  ;;  %4923 = vmatpush.bf16.msrb.mxu1 %v7645_v19  ;;  %v8458_v39 = vld [vmem:[#allocation11 + $0x1e4] sm:$0xf] }
 0x3d8   : > { %v10988_v55 = vld [vmem:[#allocation11 + $0x52c] sm:$0xf0]  ;;  %v11003_v16 = vld [vmem:[#allocation11 + $0x500] sm:$0xf]  ;;  %v7501_v24 = vor.u32 %v10983_v44, %v10981_v43  ;;  %4937 = vmatpush.bf16.msrb.mxu2 %v7773_v46  ;;  %v7054_v57 = vld [vmem:[#allocation11 + $0xb0] sm:$0xf0] }
 0x3d9   : > { %v10993_v60 = vld [vmem:[#allocation11 + $0x62c] sm:$0xf0]  ;;  %v11008_v30 = vld [vmem:[#allocation11 + $0x600] sm:$0xf]  ;;  %v7629_v0 = vor.u32 %v10988_v55, %v10986_v54  ;;  %v3261_v54 = vld [vmem:[#allocation3 + $0x50] sm:$0xff] }
 0x3da   : > { %v10997_v3 = vld [vmem:[#allocation11 + $0x72c] sm:$0xf0]  ;;  %v7757_v63 = vor.u32 %v10993_v60, %v10990_v56  ;;  %v3250_v25 = vld [vmem:[#allocation3 + $0x48] sm:$0xff]  ;;  %4951 = vmatpush.bf16.msrb.mxu3 %v7901_v36  ;;  %4910 = vmatpush.bf16.msrb.mxu0 %v7501_v24  ;;  %v7214_v55 = vld [vmem:[#allocation11 + $0x1f0] sm:$0xf0]  ;;  %v3277_v36 = vadd.f32 %v3261_v54, %v3221_v62 }
 0x3db   : > { %v11001_v15 = vld [vmem:[#allocation11 + $0x40c] sm:$0xf0]  ;;  %v7885_v34 = vor.u32 %v10997_v3, %v10995_v2  ;;  %v3266_v50 = vadd.f32 %v3250_v25, %v10963_v1  ;;  %v3202_v37 = vld [vmem:[#allocation2 + $0x8] sm:$0xff]  ;;  %v3209_v1 = vld [vmem:[#allocation2 + $0x70] sm:$0xff]  ;;  %4924 = vmatpush.bf16.msrb.mxu1 %v7629_v0 }
 0x3dc   : > { %v11006_v49 = vld [vmem:[#allocation11 + $0x50c] sm:$0xf0]  ;;  %v7485_v5 = vor.u32 %v11001_v15, %v10999_v8  ;;  %v3236_v58 = vadd.f32 %v10972_v7, %v3202_v37  ;;  %v3201_v21 = vld [vmem:[#allocation2 + $0x68] sm:$0xff]  ;;  %v3243_v18 = vadd.f32 %v10975_v28, %v3209_v1  ;;  %v7342_v60 = vld [vmem:[#allocation11 + $0x2f0] sm:$0xf0]  ;;  %4938 = vmatpush.bf16.msrb.mxu2 %v7757_v63  ;;  %v7057_v1 = vor.u32 %v8418_v10, %v7054_v57 }
 0x3dd   : > { %v11010_v12 = vld [vmem:[#allocation11 + $0x60c] sm:$0xf0]  ;;  %v7613_v42 = vor.u32 %v11006_v49, %v11003_v16  ;;  %v7868_v41 = vld [vmem:[#allocation11 + $0x700] sm:$0xf]  ;;  %v3235_v17 = vadd.f32 %v10975_v28, %v3201_v21  ;;  %v3282_v43 = vmul.f32 %v3266_v50, %v3234_v45  ;;  %v8490_v56 = vld [vmem:[#allocation11 + $0x2e4] sm:$0xf] }
 0x3de   : > { %v3210_v61 = vld [vmem:[#allocation2 + $0x78] sm:$0xff]  ;;  %v3259_v14 = vld [vmem:[#allocation3 + $0x8] sm:$0xff]  ;;  %v7741_v29 = vor.u32 %v11010_v12, %v11008_v30  ;;  %v3284_v2 = vmul.f32 %v3268_v32, %v3236_v58  ;;  %4952 = vmatpush.bf16.msrb.mxu3 %v7885_v34  ;;  %v7217_v12 = vor.u32 %v8458_v39, %v7214_v55  ;;  %v7345_v24 = vor.u32 %v8490_v56, %v7342_v60 }
 0x3df   : > { %v3244_v6 = vadd.f32 %v10972_v7, %v3210_v61  ;;  %v8624_v40 = vld [vmem:[#allocation11 + $0x70c] sm:$0xf0]  ;;  %v3203_v26 = vld [vmem:[#allocation2 + $0x48] sm:$0xff]  ;;  %v3290_v7 = vmul.f32 %v3274_v59, %v3242_v53  ;;  %v3275_v44 = vadd.f32 %v3259_v14, %v10975_v28  ;;  %v7470_v16 = vld [vmem:[#allocation11 + $0x3f0] sm:$0xf0]  ;;  %v3283_v19 = vmul.f32 %v3267_v22, %v3235_v17  ;;  %4911 = vmatpush.bf16.msrb.mxu0 %v7485_v5 }
 0x3e0   : > { %v3211_v27 = vld [vmem:[#allocation2 + $0x28] sm:$0xff]  ;;  %v3253_v31 = vld [vmem:[#allocation3 + $0x38] sm:$0xff]  ;;  %v3237_v48 = vadd.f32 %v3221_v62, %v3203_v26  ;;  %v7869_v49 = vor.u32 %v8624_v40, %v7868_v41  ;;  %v7089_v28 = vor.u32 %v8426_v47, %v7086_v35  ;;  %4925 = vmatpush.bf16.msrb.mxu1 %v7613_v42  ;;  %4939 = vmatpush.bf16.msrb.mxu2 %v7741_v29 }
 0x3e1   : > { %v3292_v3 = vmul.f32 %v3276_v20, %v3244_v6  ;;  %v3245_v4 = vadd.f32 %v3221_v62, %v3211_v27  ;;  %v3269_v8 = vadd.f32 %v3253_v31, %v3221_v62  ;;  %v8522_v15 = vld [vmem:[#allocation11 + $0x3e4] sm:$0xf]  ;;  %v3291_v46 = vmul.f32 %v3275_v44, %v3243_v18  ;;  %v7070_v25 = vld [vmem:[#allocation11 + $0xd0] sm:$0xf0] }
 0x3e2   : > { %v8454_v45 = vld [vmem:[#allocation11 + $0x1c4] sm:$0xf]  ;;  %v7473_v53 = vor.u32 %v8522_v15, %v7470_v16  ;;  %v11039_v33 = vpack.c.bf16 %v3290_v7, %v3282_v43  ;;  %v7198_v0 = vld [vmem:[#allocation11 + $0x1d0] sm:$0xf0]  ;;  %4953 = vmatpush.bf16.msrb.mxu3 %v7869_v49  ;;  %v7073_v58 = vor.u32 %v8422_v38, %v7070_v25 }
 0x3e3   : > { %v3285_v30 = vmul.f32 %v3269_v8, %v3237_v48  ;;  %v3293_v9 = vmul.f32 %v3277_v36, %v3245_v4  ;;  %v8486_v63 = vld [vmem:[#allocation11 + $0x2c4] sm:$0xf]  ;;  %v7326_v50 = vld [vmem:[#allocation11 + $0x2d0] sm:$0xf0]  ;;  %v11041_v37 = vpack.c.bf16 %v3292_v3, %v3284_v2  ;;  %v11043_v34 = vpack.c.bf16 %v3291_v46, %v3283_v19  ;;  %4960 = vmatpush.bf16.msra.mxu0 %v7089_v28 }
 0x3e4   : > { %v8518_v61 = vld [vmem:[#allocation11 + $0x3c4] sm:$0xf]  ;;  %v7454_v62 = vld [vmem:[#allocation11 + $0x3d0] sm:$0xf0]  ;;  %4974 = vmatpush.bf16.msra.mxu1 %v7217_v12  ;;  %4988 = vmatpush.bf16.msra.mxu2 %v7345_v24  ;;  %v7201_v5 = vor.u32 %v8454_v45, %v7198_v0  ;;  %v7329_v6 = vor.u32 %v8486_v63, %v7326_v50 }
 0x3e5   : > { %v11045_v59 = vpack.c.bf16 %v3293_v9, %v3285_v30  ;;  %v8450_v21 = vld [vmem:[#allocation11 + $0x1a4] sm:$0xf]  ;;  %4912 = vmatmul.bf16.vlgmr.msrb.gmra.mxu0 %v11039_v33  ;;  %v7457_v42 = vor.u32 %v8518_v61, %v7454_v62  ;;  %v7182_v41 = vld [vmem:[#allocation11 + $0x1b0] sm:$0xf0]  ;;  %4940 = vmatmul.bf16.vlgmr.msrb.gmra.mxu2 %v11041_v37 }
 0x3e6   : > { %5002 = vmatpush.bf16.msra.mxu3 %v7473_v53  ;;  %v8482_v40 = vld [vmem:[#allocation11 + $0x2a4] sm:$0xf]  ;;  %v7310_v47 = vld [vmem:[#allocation11 + $0x2b0] sm:$0xf0]  ;;  %4926 = vmatmul.bf16.vlgmr.msrb.gmra.mxu1 %v11043_v34  ;;  %v7185_v51 = vor.u32 %v8450_v21, %v7182_v41 }
 0x3e7   : > { %v8514_v32 = vld [vmem:[#allocation11 + $0x3a4] sm:$0xf]  ;;  %v7438_v20 = vld [vmem:[#allocation11 + $0x3b0] sm:$0xf0]  ;;  %4954 = vmatmul.bf16.vlgmr.msrb.gmra.mxu3 %v11045_v59  ;;  %4961 = vmatpush.bf16.msra.mxu0 %v7073_v58  ;;  %v7313_v14 = vor.u32 %v8482_v40, %v7310_v47 }
 0x3e8   : > { %4975 = vmatpush.bf16.msra.mxu1 %v7201_v5  ;;  %4989 = vmatpush.bf16.msra.mxu2 %v7329_v6  ;;  %v8414_v29 = vld [vmem:[#allocation11 + $0x84] sm:$0xf]  ;;  %v7038_v17 = vld [vmem:[#allocation11 + $0x90] sm:$0xf0]  ;;  %v7441_v22 = vor.u32 %v8514_v32, %v7438_v20 }
 0x3e9   : > { %v8446_v18 = vld [vmem:[#allocation11 + $0x184] sm:$0xf]  ;;  %v7166_v26 = vld [vmem:[#allocation11 + $0x190] sm:$0xf0]  ;;  %v7041_v43 = vor.u32 %v8414_v29, %v7038_v17 }
 0x3ea   : > { %5003 = vmatpush.bf16.msra.mxu3 %v7457_v42  ;;  %v8478_v27 = vld [vmem:[#allocation11 + $0x284] sm:$0xf]  ;;  %v7294_v31 = vld [vmem:[#allocation11 + $0x290] sm:$0xf0]  ;;  %v7169_v7 = vor.u32 %v8446_v18, %v7166_v26 }
 0x3eb   : > { %v8510_v35 = vld [vmem:[#allocation11 + $0x384] sm:$0xf]  ;;  %v7422_v39 = vld [vmem:[#allocation11 + $0x390] sm:$0xf0]  ;;  %4962 = vmatpush.bf16.msra.mxu0 %v7057_v1  ;;  %v7297_v44 = vor.u32 %v8478_v27, %v7294_v31 }
 0x3ec   : > { %4976 = vmatpush.bf16.msra.mxu1 %v7185_v51  ;;  %4990 = vmatpush.bf16.msra.mxu2 %v7313_v14  ;;  %v8410_v48 = vld [vmem:[#allocation11 + $0x64] sm:$0xf]  ;;  %v7022_v54 = vld [vmem:[#allocation11 + $0x70] sm:$0xf0]  ;;  %v7425_v56 = vor.u32 %v8510_v35, %v7422_v39 }
 0x3ed   : > { %v8442_v55 = vld [vmem:[#allocation11 + $0x164] sm:$0xf]  ;;  %v7150_v60 = vld [vmem:[#allocation11 + $0x170] sm:$0xf0]  ;;  %v7025_v15 = vor.u32 %v8410_v48, %v7022_v54 }
 0x3ee   : > { %5004 = vmatpush.bf16.msra.mxu3 %v7441_v22  ;;  %v8474_v2 = vld [vmem:[#allocation11 + $0x264] sm:$0xf]  ;;  %v7278_v3 = vld [vmem:[#allocation11 + $0x270] sm:$0xf0]  ;;  %v7153_v16 = vor.u32 %v8442_v55, %v7150_v60 }
 0x3ef   : > { %v8506_v4 = vld [vmem:[#allocation11 + $0x364] sm:$0xf]  ;;  %v7406_v8 = vld [vmem:[#allocation11 + $0x370] sm:$0xf0]  ;;  %4963 = vmatpush.bf16.msra.mxu0 %v7041_v43  ;;  %v7281_v19 = vor.u32 %v8474_v2, %v7278_v3 }
 0x3f0   : > { %4977 = vmatpush.bf16.msra.mxu1 %v7169_v7  ;;  %4991 = vmatpush.bf16.msra.mxu2 %v7297_v44  ;;  %v8406_v46 = vld [vmem:[#allocation11 + $0x44] sm:$0xf]  ;;  %v7006_v36 = vld [vmem:[#allocation11 + $0x50] sm:$0xf0]  ;;  %v7409_v28 = vor.u32 %v8506_v4, %v7406_v8 }
 0x3f1   : > { %v8438_v49 = vld [vmem:[#allocation11 + $0x144] sm:$0xf]  ;;  %v7134_v30 = vld [vmem:[#allocation11 + $0x150] sm:$0xf0]  ;;  %v7009_v25 = vor.u32 %v8406_v46, %v7006_v36 }
 0x3f2   : > { %5005 = vmatpush.bf16.msra.mxu3 %v7425_v56  ;;  %v8470_v12 = vld [vmem:[#allocation11 + $0x244] sm:$0xf]  ;;  %v7262_v24 = vld [vmem:[#allocation11 + $0x250] sm:$0xf0]  ;;  %v7137_v45 = vor.u32 %v8438_v49, %v7134_v30 }
 0x3f3   : > { %v8502_v9 = vld [vmem:[#allocation11 + $0x344] sm:$0xf]  ;;  %v7390_v38 = vld [vmem:[#allocation11 + $0x350] sm:$0xf0]  ;;  %4964 = vmatpush.bf16.msra.mxu0 %v7025_v15  ;;  %v7265_v53 = vor.u32 %v8470_v12, %v7262_v24 }
 0x3f4   : > { %4978 = vmatpush.bf16.msra.mxu1 %v7153_v16  ;;  %4992 = vmatpush.bf16.msra.mxu2 %v7281_v19  ;;  %v8402_v0 = vld [vmem:[#allocation11 + $0x24] sm:$0xf]  ;;  %v6990_v63 = vld [vmem:[#allocation11 + $0x30] sm:$0xf0]  ;;  %v7393_v61 = vor.u32 %v8502_v9, %v7390_v38 }
 0x3f5   : > { %v8434_v50 = vld [vmem:[#allocation11 + $0x124] sm:$0xf]  ;;  %v7118_v62 = vld [vmem:[#allocation11 + $0x130] sm:$0xf0]  ;;  %v6993_v57 = vor.u32 %v8402_v0, %v6990_v63 }
 0x3f6   : > { %5006 = vmatpush.bf16.msra.mxu3 %v7409_v28  ;;  %v8466_v58 = vld [vmem:[#allocation11 + $0x224] sm:$0xf]  ;;  %v7246_v5 = vld [vmem:[#allocation11 + $0x230] sm:$0xf0]  ;;  %v7121_v41 = vor.u32 %v8434_v50, %v7118_v62 }
 0x3f7   : > { %v8498_v6 = vld [vmem:[#allocation11 + $0x324] sm:$0xf]  ;;  %v7374_v10 = vld [vmem:[#allocation11 + $0x330] sm:$0xf0]  ;;  %4965 = vmatpush.bf16.msra.mxu0 %v7009_v25  ;;  %v7249_v40 = vor.u32 %v8466_v58, %v7246_v5 }
 0x3f8   : > { %v8398_v21 = vld [vmem:[#allocation11 + $0x4] sm:$0xf]  ;;  %v6974_v42 = vld [vmem:[#allocation11 + $0x10] sm:$0xf0]  ;;  %4979 = vmatpush.bf16.msra.mxu1 %v7137_v45  ;;  %4993 = vmatpush.bf16.msra.mxu2 %v7265_v53  ;;  %v7377_v1 = vor.u32 %v8498_v6, %v7374_v10 }
 0x3f9   : > { %v8430_v47 = vld [vmem:[#allocation11 + $0x104] sm:$0xf]  ;;  %v7102_v32 = vld [vmem:[#allocation11 + $0x110] sm:$0xf0]  ;;  %v6977_v26 = vor.u32 %v8398_v21, %v6974_v42 }
 0x3fa   : > { %v8462_v20 = vld [vmem:[#allocation11 + $0x204] sm:$0xf]  ;;  %5007 = vmatpush.bf16.msra.mxu3 %v7393_v61  ;;  %v7230_v51 = vld [vmem:[#allocation11 + $0x210] sm:$0xf0]  ;;  %v7105_v39 = vor.u32 %v8430_v47, %v7102_v32 }
 0x3fb   : > { %v8494_v14 = vld [vmem:[#allocation11 + $0x304] sm:$0xf]  ;;  %v7358_v29 = vld [vmem:[#allocation11 + $0x310] sm:$0xf0]  ;;  %4966 = vmatpush.bf16.msra.mxu0 %v6993_v57  ;;  %v7233_v43 = vor.u32 %v8462_v20, %v7230_v51 }
 0x3fc   : > { %v8554_v17 = vld [vmem:[#allocation11 + $0x4e4] sm:$0xf]  ;;  %v7598_v18 = vld [vmem:[#allocation11 + $0x4f0] sm:$0xf0]  ;;  %4980 = vmatpush.bf16.msra.mxu1 %v7121_v41  ;;  %4994 = vmatpush.bf16.msra.mxu2 %v7249_v40  ;;  %v7361_v48 = vor.u32 %v8494_v14, %v7358_v29 }
 0x3fd   : > { %v8586_v22 = vld [vmem:[#allocation11 + $0x5e4] sm:$0xf]  ;;  %v7726_v27 = vld [vmem:[#allocation11 + $0x5f0] sm:$0xf0]  ;;  %v7601_v54 = vor.u32 %v8554_v17, %v7598_v18 }
 0x3fe   : > { %v8618_v31 = vld [vmem:[#allocation11 + $0x6e4] sm:$0xf]  ;;  %v7854_v35 = vld [vmem:[#allocation11 + $0x6f0] sm:$0xf0]  ;;  %5008 = vmatpush.bf16.msra.mxu3 %v7377_v1  ;;  %v7729_v55 = vor.u32 %v8586_v22, %v7726_v27 }
 0x3ff   : > { %v8650_v7 = vld [vmem:[#allocation11 + $0x7e4] sm:$0xf]  ;;  %v7982_v44 = vld [vmem:[#allocation11 + $0x7f0] sm:$0xf0]  ;;  %v7857_v56 = vor.u32 %v8618_v31, %v7854_v35  ;;  %4967 = vmatpush.bf16.msra.mxu0 %v6977_v26 }
 0x400   : > { %v8550_v60 = vld [vmem:[#allocation11 + $0x4c4] sm:$0xf]  ;;  %v7582_v2 = vld [vmem:[#allocation11 + $0x4d0] sm:$0xf0]  ;;  %v7985_v4 = vor.u32 %v8650_v7, %v7982_v44  ;;  %4981 = vmatpush.bf16.msra.mxu1 %v7105_v39  ;;  %4995 = vmatpush.bf16.msra.mxu2 %v7233_v43 }
 0x401   : > { %v8582_v3 = vld [vmem:[#allocation11 + $0x5c4] sm:$0xf]  ;;  %v7710_v8 = vld [vmem:[#allocation11 + $0x5d0] sm:$0xf0]  ;;  %v7585_v36 = vor.u32 %v8550_v60, %v7582_v2 }
 0x402   : > { %v8614_v15 = vld [vmem:[#allocation11 + $0x6c4] sm:$0xf]  ;;  %v7838_v16 = vld [vmem:[#allocation11 + $0x6d0] sm:$0xf0]  ;;  %5009 = vmatpush.bf16.msra.mxu3 %v7361_v48  ;;  %v7713_v49 = vor.u32 %v8582_v3, %v7710_v8  ;;  %4968 = vmatmul.bf16.vlgmr.msra.gmra.mxu0 %v10958_v52 }
 0x403   : > { %v8646_v19 = vld [vmem:[#allocation11 + $0x7c4] sm:$0xf]  ;;  %v7966_v46 = vld [vmem:[#allocation11 + $0x7d0] sm:$0xf0]  ;;  %5016 = vmatpush.bf16.msrb.mxu0 %v7601_v54  ;;  %v7841_v28 = vor.u32 %v8614_v15, %v7838_v16  ;;  %4996 = vmatmul.bf16.vlgmr.msra.gmra.mxu2 %v10960_v11 }
 0x404   : > { %5030 = vmatpush.bf16.msrb.mxu1 %v7729_v55  ;;  %5044 = vmatpush.bf16.msrb.mxu2 %v7857_v56  ;;  %v8546_v30 = vld [vmem:[#allocation11 + $0x4a4] sm:$0xf]  ;;  %v7566_v12 = vld [vmem:[#allocation11 + $0x4b0] sm:$0xf0]  ;;  %v7969_v9 = vor.u32 %v8646_v19, %v7966_v46 }
 0x405   : > { %v8578_v24 = vld [vmem:[#allocation11 + $0x5a4] sm:$0xf]  ;;  %v7694_v38 = vld [vmem:[#allocation11 + $0x5b0] sm:$0xf0]  ;;  %4982 = vmatmul.bf16.vlgmr.msra.gmra.mxu1 %v10969_v23  ;;  %v7569_v63 = vor.u32 %v8546_v30, %v7566_v12  ;;  %5010 = vmatmul.bf16.vlgmr.msra.gmra.mxu3 %v10977_v13 }
 0x406   : > { %5058 = vmatpush.bf16.msrb.mxu3 %v7985_v4  ;;  %v8610_v25 = vld [vmem:[#allocation11 + $0x6a4] sm:$0xf]  ;;  %v7822_v45 = vld [vmem:[#allocation11 + $0x6b0] sm:$0xf0]  ;;  %v7697_v50 = vor.u32 %v8578_v24, %v7694_v38 }
 0x407   : > { %v8642_v53 = vld [vmem:[#allocation11 + $0x7a4] sm:$0xf]  ;;  %v7950_v0 = vld [vmem:[#allocation11 + $0x7b0] sm:$0xf0]  ;;  %5017 = vmatpush.bf16.msrb.mxu0 %v7585_v36  ;;  %v7825_v61 = vor.u32 %v8610_v25, %v7822_v45 }
 0x408   : > { %5031 = vmatpush.bf16.msrb.mxu1 %v7713_v49  ;;  %5045 = vmatpush.bf16.msrb.mxu2 %v7841_v28  ;;  %v8542_v62 = vld [vmem:[#allocation11 + $0x484] sm:$0xf]  ;;  %v7550_v58 = vld [vmem:[#allocation11 + $0x490] sm:$0xf0]  ;;  %v7953_v6 = vor.u32 %v8642_v53, %v7950_v0 }
 0x409   : > { %v8574_v5 = vld [vmem:[#allocation11 + $0x584] sm:$0xf]  ;;  %v7678_v10 = vld [vmem:[#allocation11 + $0x590] sm:$0xf0]  ;;  %v7553_v40 = vor.u32 %v8542_v62, %v7550_v58  ;;  %v7092_v58 = vld [vmem:[#allocation11 + $0xe8] sm:$0xf] }
 0x40a   : > { %5059 = vmatpush.bf16.msrb.mxu3 %v7969_v9  ;;  %v8606_v57 = vld [vmem:[#allocation11 + $0x684] sm:$0xf]  ;;  %v7806_v21 = vld [vmem:[#allocation11 + $0x690] sm:$0xf0]  ;;  %v7681_v47 = vor.u32 %v8574_v5, %v7678_v10  ;;  %v8429_v5 = vld [vmem:[#allocation11 + $0xf4] sm:$0xf0] }
 0x40b   : > { %v8638_v42 = vld [vmem:[#allocation11 + $0x784] sm:$0xf]  ;;  %v7934_v41 = vld [vmem:[#allocation11 + $0x790] sm:$0xf0]  ;;  %5018 = vmatpush.bf16.msrb.mxu0 %v7569_v63  ;;  %v7809_v32 = vor.u32 %v8606_v57, %v7806_v21  ;;  %v8461_v57 = vld [vmem:[#allocation11 + $0x1f4] sm:$0xf0] }
 0x40c   : > { %5032 = vmatpush.bf16.msrb.mxu1 %v7697_v50  ;;  %5046 = vmatpush.bf16.msrb.mxu2 %v7825_v61  ;;  %v8538_v20 = vld [vmem:[#allocation11 + $0x464] sm:$0xf]  ;;  %v7534_v1 = vld [vmem:[#allocation11 + $0x470] sm:$0xf0]  ;;  %v7937_v14 = vor.u32 %v8638_v42, %v7934_v41  ;;  %v7348_v21 = vld [vmem:[#allocation11 + $0x2e8] sm:$0xf] }
 0x40d   : > { %v8570_v51 = vld [vmem:[#allocation11 + $0x564] sm:$0xf]  ;;  %v7662_v29 = vld [vmem:[#allocation11 + $0x570] sm:$0xf0]  ;;  %v7537_v27 = vor.u32 %v8538_v20, %v7534_v1  ;;  %v8493_v42 = vld [vmem:[#allocation11 + $0x2f4] sm:$0xf0]  ;;  %v7093_v1 = vor.u32 %v8429_v5, %v7092_v58 }
 0x40e   : > { %5060 = vmatpush.bf16.msrb.mxu3 %v7953_v6  ;;  %v8602_v17 = vld [vmem:[#allocation11 + $0x664] sm:$0xf]  ;;  %v7790_v18 = vld [vmem:[#allocation11 + $0x670] sm:$0xf0]  ;;  %v7665_v31 = vor.u32 %v8570_v51, %v7662_v29  ;;  %v7220_v6 = vld [vmem:[#allocation11 + $0x1e8] sm:$0xf] }
 0x40f   : > { %v8634_v22 = vld [vmem:[#allocation11 + $0x764] sm:$0xf]  ;;  %v7918_v26 = vld [vmem:[#allocation11 + $0x770] sm:$0xf0]  ;;  %5019 = vmatpush.bf16.msrb.mxu0 %v7553_v40  ;;  %v7793_v35 = vor.u32 %v8602_v17, %v7790_v18  ;;  %v7221_v51 = vor.u32 %v8461_v57, %v7220_v6  ;;  %v7076_v29 = vld [vmem:[#allocation11 + $0xc8] sm:$0xf] }
 0x410   : > { %5033 = vmatpush.bf16.msrb.mxu1 %v7681_v47  ;;  %5047 = vmatpush.bf16.msrb.mxu2 %v7809_v32  ;;  %v8534_v39 = vld [vmem:[#allocation11 + $0x444] sm:$0xf]  ;;  %v7518_v43 = vld [vmem:[#allocation11 + $0x450] sm:$0xf0]  ;;  %v7921_v44 = vor.u32 %v8634_v22, %v7918_v26  ;;  %v7476_v47 = vld [vmem:[#allocation11 + $0x3e8] sm:$0xf] }
 0x411   : > { %v8566_v7 = vld [vmem:[#allocation11 + $0x544] sm:$0xf]  ;;  %v7646_v48 = vld [vmem:[#allocation11 + $0x550] sm:$0xf0]  ;;  %v7521_v2 = vor.u32 %v8534_v39, %v7518_v43  ;;  %v8525_v32 = vld [vmem:[#allocation11 + $0x3f4] sm:$0xf0] }
 0x412   : > { %5061 = vmatpush.bf16.msrb.mxu3 %v7937_v14  ;;  %v8598_v54 = vld [vmem:[#allocation11 + $0x644] sm:$0xf]  ;;  %v7774_v55 = vld [vmem:[#allocation11 + $0x650] sm:$0xf0]  ;;  %v7649_v4 = vor.u32 %v8566_v7, %v7646_v48  ;;  %v7349_v14 = vor.u32 %v8493_v42, %v7348_v21  ;;  %v8425_v17 = vld [vmem:[#allocation11 + $0xd4] sm:$0xf0]  ;;  %v7477_v22 = vor.u32 %v8525_v32, %v7476_v47 }
 0x413   : > { %v8630_v56 = vld [vmem:[#allocation11 + $0x744] sm:$0xf]  ;;  %v7902_v60 = vld [vmem:[#allocation11 + $0x750] sm:$0xf0]  ;;  %5020 = vmatpush.bf16.msrb.mxu0 %v7537_v27  ;;  %v7777_v8 = vor.u32 %v8598_v54, %v7774_v55  ;;  %v7204_v18 = vld [vmem:[#allocation11 + $0x1c8] sm:$0xf]  ;;  %v7077_v43 = vor.u32 %v8425_v17, %v7076_v29 }
 0x414   : > { %v8530_v3 = vld [vmem:[#allocation11 + $0x424] sm:$0xf]  ;;  %5034 = vmatpush.bf16.msrb.mxu1 %v7665_v31  ;;  %5048 = vmatpush.bf16.msrb.mxu2 %v7793_v35  ;;  %v7502_v15 = vld [vmem:[#allocation11 + $0x430] sm:$0xf0]  ;;  %v7905_v46 = vor.u32 %v8630_v56, %v7902_v60  ;;  %v8457_v26 = vld [vmem:[#allocation11 + $0x1d4] sm:$0xf0] }
 0x415   : > { %v8562_v16 = vld [vmem:[#allocation11 + $0x524] sm:$0xf]  ;;  %v7630_v19 = vld [vmem:[#allocation11 + $0x530] sm:$0xf0]  ;;  %v7505_v12 = vor.u32 %v8530_v3, %v7502_v15  ;;  %v7332_v27 = vld [vmem:[#allocation11 + $0x2c8] sm:$0xf]  ;;  %v7205_v7 = vor.u32 %v8457_v26, %v7204_v18 }
 0x416   : > { %5062 = vmatpush.bf16.msrb.mxu3 %v7921_v44  ;;  %v8594_v36 = vld [vmem:[#allocation11 + $0x624] sm:$0xf]  ;;  %v7758_v49 = vld [vmem:[#allocation11 + $0x630] sm:$0xf0]  ;;  %v7633_v38 = vor.u32 %v8562_v16, %v7630_v19  ;;  %v8489_v31 = vld [vmem:[#allocation11 + $0x2d4] sm:$0xf0] }
 0x417   : > { %v8626_v28 = vld [vmem:[#allocation11 + $0x724] sm:$0xf]  ;;  %v7886_v30 = vld [vmem:[#allocation11 + $0x730] sm:$0xf0]  ;;  %5021 = vmatpush.bf16.msrb.mxu0 %v7521_v2  ;;  %v7761_v25 = vor.u32 %v8594_v36, %v7758_v49  ;;  %v7460_v35 = vld [vmem:[#allocation11 + $0x3c8] sm:$0xf]  ;;  %v7333_v44 = vor.u32 %v8489_v31, %v7332_v27 }
 0x418   : > { %v8526_v24 = vld [vmem:[#allocation11 + $0x404] sm:$0xf]  ;;  %v7486_v9 = vld [vmem:[#allocation11 + $0x410] sm:$0xf0]  ;;  %5035 = vmatpush.bf16.msrb.mxu1 %v7649_v4  ;;  %5049 = vmatpush.bf16.msrb.mxu2 %v7777_v8  ;;  %v7889_v63 = vor.u32 %v8626_v28, %v7886_v30  ;;  %v8521_v39 = vld [vmem:[#allocation11 + $0x3d4] sm:$0xf0] }
 0x419   : > { %v8558_v45 = vld [vmem:[#allocation11 + $0x504] sm:$0xf]  ;;  %v7614_v53 = vld [vmem:[#allocation11 + $0x510] sm:$0xf0]  ;;  %v7489_v10 = vor.u32 %v8526_v24, %v7486_v9  ;;  %v7060_v48 = vld [vmem:[#allocation11 + $0xa8] sm:$0xf]  ;;  %v7461_v56 = vor.u32 %v8521_v39, %v7460_v35 }
 0x41a   : > { %v8590_v0 = vld [vmem:[#allocation11 + $0x604] sm:$0xf]  ;;  %5063 = vmatpush.bf16.msrb.mxu3 %v7905_v46  ;;  %v7742_v50 = vld [vmem:[#allocation11 + $0x610] sm:$0xf0]  ;;  %v7617_v41 = vor.u32 %v8558_v45, %v7614_v53  ;;  %v8421_v54 = vld [vmem:[#allocation11 + $0xb4] sm:$0xf0] }
 0x41b   : > { %v8622_v61 = vld [vmem:[#allocation11 + $0x704] sm:$0xf]  ;;  %v7870_v62 = vld [vmem:[#allocation11 + $0x710] sm:$0xf0]  ;;  %5022 = vmatpush.bf16.msrb.mxu0 %v7505_v12  ;;  %v7745_v40 = vor.u32 %v8590_v0, %v7742_v50  ;;  %v7188_v55 = vld [vmem:[#allocation11 + $0x1a8] sm:$0xf]  ;;  %v7061_v15 = vor.u32 %v8421_v54, %v7060_v48 }
 0x41c   : > { %5036 = vmatpush.bf16.msrb.mxu1 %v7633_v38  ;;  %5050 = vmatpush.bf16.msrb.mxu2 %v7761_v25  ;;  %v7873_v20 = vor.u32 %v8622_v61, %v7870_v62  ;;  %v8453_v60 = vld [vmem:[#allocation11 + $0x1b4] sm:$0xf0]  ;;  %v7316_v2 = vld [vmem:[#allocation11 + $0x2a8] sm:$0xf] }
 0x41d   : > { %v8485_v3 = vld [vmem:[#allocation11 + $0x2b4] sm:$0xf0]  ;;  %v7444_v4 = vld [vmem:[#allocation11 + $0x3a8] sm:$0xf]  ;;  %v7189_v16 = vor.u32 %v8453_v60, %v7188_v55 }
 0x41e   : > { %5064 = vmatpush.bf16.msrb.mxu3 %v7889_v63  ;;  %v8517_v8 = vld [vmem:[#allocation11 + $0x3b4] sm:$0xf0]  ;;  %v7317_v19 = vor.u32 %v8485_v3, %v7316_v2  ;;  %v7044_v46 = vld [vmem:[#allocation11 + $0x88] sm:$0xf] }
 0x41f   : > { %5023 = vmatpush.bf16.msrb.mxu0 %v7489_v10  ;;  %v8417_v36 = vld [vmem:[#allocation11 + $0x94] sm:$0xf0]  ;;  %v7172_v49 = vld [vmem:[#allocation11 + $0x188] sm:$0xf]  ;;  %v7445_v28 = vor.u32 %v8517_v8, %v7444_v4 }
 0x420   : > { %5037 = vmatpush.bf16.msrb.mxu1 %v7617_v41  ;;  %5051 = vmatpush.bf16.msrb.mxu2 %v7745_v40  ;;  %v8449_v30 = vld [vmem:[#allocation11 + $0x194] sm:$0xf0]  ;;  %v7300_v12 = vld [vmem:[#allocation11 + $0x288] sm:$0xf]  ;;  %v7045_v25 = vor.u32 %v8417_v36, %v7044_v46 }
 0x421   : > { %v8481_v24 = vld [vmem:[#allocation11 + $0x294] sm:$0xf0]  ;;  %v7428_v9 = vld [vmem:[#allocation11 + $0x388] sm:$0xf]  ;;  %v7173_v45 = vor.u32 %v8449_v30, %v7172_v49 }
 0x422   : > { %5065 = vmatpush.bf16.msrb.mxu3 %v7873_v20  ;;  %5024 = vmatmul.bf16.vlgmr.msrb.gmra.mxu0 %v11039_v33  ;;  %v8513_v38 = vld [vmem:[#allocation11 + $0x394] sm:$0xf0]  ;;  %v7301_v53 = vor.u32 %v8481_v24, %v7300_v12  ;;  %v7028_v0 = vld [vmem:[#allocation11 + $0x68] sm:$0xf] }
 0x423   : > { %5072 = vmatpush.bf16.msra.mxu0 %v7093_v1  ;;  %5052 = vmatmul.bf16.vlgmr.msrb.gmra.mxu2 %v11041_v37  ;;  %v8413_v63 = vld [vmem:[#allocation11 + $0x74] sm:$0xf0]  ;;  %v7156_v50 = vld [vmem:[#allocation11 + $0x168] sm:$0xf]  ;;  %v7429_v61 = vor.u32 %v8513_v38, %v7428_v9 }
 0x424   : > { %5086 = vmatpush.bf16.msra.mxu1 %v7221_v51  ;;  %5100 = vmatpush.bf16.msra.mxu2 %v7349_v14  ;;  %v8445_v62 = vld [vmem:[#allocation11 + $0x174] sm:$0xf0]  ;;  %v7284_v58 = vld [vmem:[#allocation11 + $0x268] sm:$0xf]  ;;  %v7029_v57 = vor.u32 %v8413_v63, %v7028_v0 }
 0x425   : > { %5038 = vmatmul.bf16.vlgmr.msrb.gmra.mxu1 %v11043_v34  ;;  %5066 = vmatmul.bf16.vlgmr.msrb.gmra.mxu3 %v11045_v59  ;;  %v8477_v5 = vld [vmem:[#allocation11 + $0x274] sm:$0xf0]  ;;  %v7412_v6 = vld [vmem:[#allocation11 + $0x368] sm:$0xf]  ;;  %v7157_v21 = vor.u32 %v8445_v62, %v7156_v50 }
 0x426   : > { %5114 = vmatpush.bf16.msra.mxu3 %v7477_v22  ;;  %v8509_v10 = vld [vmem:[#allocation11 + $0x374] sm:$0xf0]  ;;  %v7285_v42 = vor.u32 %v8477_v5, %v7284_v58  ;;  %v7012_v41 = vld [vmem:[#allocation11 + $0x48] sm:$0xf] }
 0x427   : > { %5073 = vmatpush.bf16.msra.mxu0 %v7077_v43  ;;  %v8409_v40 = vld [vmem:[#allocation11 + $0x54] sm:$0xf0]  ;;  %v7140_v47 = vld [vmem:[#allocation11 + $0x148] sm:$0xf]  ;;  %v7413_v32 = vor.u32 %v8509_v10, %v7412_v6 }
 0x428   : > { %5087 = vmatpush.bf16.msra.mxu1 %v7205_v7  ;;  %5101 = vmatpush.bf16.msra.mxu2 %v7333_v44  ;;  %v8441_v20 = vld [vmem:[#allocation11 + $0x154] sm:$0xf0]  ;;  %v7268_v1 = vld [vmem:[#allocation11 + $0x248] sm:$0xf]  ;;  %v7013_v17 = vor.u32 %v8409_v40, %v7012_v41 }
 0x429   : > { %v8473_v51 = vld [vmem:[#allocation11 + $0x254] sm:$0xf0]  ;;  %v7396_v14 = vld [vmem:[#allocation11 + $0x348] sm:$0xf]  ;;  %v7141_v18 = vor.u32 %v8441_v20, %v7140_v47 }
 0x42a   : > { %5115 = vmatpush.bf16.msra.mxu3 %v7461_v56  ;;  %v8505_v29 = vld [vmem:[#allocation11 + $0x354] sm:$0xf0]  ;;  %v7269_v22 = vor.u32 %v8473_v51, %v7268_v1  ;;  %v6996_v26 = vld [vmem:[#allocation11 + $0x28] sm:$0xf] }
 0x42b   : > { %5074 = vmatpush.bf16.msra.mxu0 %v7061_v15  ;;  %v8405_v27 = vld [vmem:[#allocation11 + $0x34] sm:$0xf0]  ;;  %v7124_v31 = vld [vmem:[#allocation11 + $0x128] sm:$0xf]  ;;  %v7397_v35 = vor.u32 %v8505_v29, %v7396_v14 }
 0x42c   : > { %5088 = vmatpush.bf16.msra.mxu1 %v7189_v16  ;;  %5102 = vmatpush.bf16.msra.mxu2 %v7317_v19  ;;  %v8437_v39 = vld [vmem:[#allocation11 + $0x134] sm:$0xf0]  ;;  %v7252_v43 = vld [vmem:[#allocation11 + $0x228] sm:$0xf]  ;;  %v6997_v54 = vor.u32 %v8405_v27, %v6996_v26 }
 0x42d   : > { %v8469_v7 = vld [vmem:[#allocation11 + $0x234] sm:$0xf0]  ;;  %v7380_v44 = vld [vmem:[#allocation11 + $0x328] sm:$0xf]  ;;  %v7125_v60 = vor.u32 %v8437_v39, %v7124_v31 }
 0x42e   : > { %5116 = vmatpush.bf16.msra.mxu3 %v7445_v28  ;;  %v8501_v48 = vld [vmem:[#allocation11 + $0x334] sm:$0xf0]  ;;  %v6980_v55 = vld [vmem:[#allocation11 + $0x8] sm:$0xf]  ;;  %v7253_v2 = vor.u32 %v8469_v7, %v7252_v43 }
 0x42f   : > { %5075 = vmatpush.bf16.msra.mxu0 %v7045_v25  ;;  %v8401_v56 = vld [vmem:[#allocation11 + $0x14] sm:$0xf0]  ;;  %v7108_v3 = vld [vmem:[#allocation11 + $0x108] sm:$0xf]  ;;  %v7381_v15 = vor.u32 %v8501_v48, %v7380_v44 }
 0x430   : > { %5089 = vmatpush.bf16.msra.mxu1 %v7173_v45  ;;  %5103 = vmatpush.bf16.msra.mxu2 %v7301_v53  ;;  %v8433_v4 = vld [vmem:[#allocation11 + $0x114] sm:$0xf0]  ;;  %v7236_v8 = vld [vmem:[#allocation11 + $0x208] sm:$0xf]  ;;  %v6981_v30 = vor.u32 %v8401_v56, %v6980_v55 }
 0x431   : > { %v8465_v16 = vld [vmem:[#allocation11 + $0x214] sm:$0xf0]  ;;  %v7364_v19 = vld [vmem:[#allocation11 + $0x308] sm:$0xf]  ;;  %v7109_v38 = vor.u32 %v8433_v4, %v7108_v3 }
 0x432   : > { %5117 = vmatpush.bf16.msra.mxu3 %v7429_v61  ;;  %v8497_v46 = vld [vmem:[#allocation11 + $0x314] sm:$0xf0]  ;;  %v7604_v36 = vld [vmem:[#allocation11 + $0x4e8] sm:$0xf]  ;;  %v7237_v25 = vor.u32 %v8465_v16, %v7236_v8 }
 0x433   : > { %5076 = vmatpush.bf16.msra.mxu0 %v7029_v57  ;;  %v8557_v49 = vld [vmem:[#allocation11 + $0x4f4] sm:$0xf0]  ;;  %v7732_v28 = vld [vmem:[#allocation11 + $0x5e8] sm:$0xf]  ;;  %v7365_v0 = vor.u32 %v8497_v46, %v7364_v19 }
 0x434   : > { %5090 = vmatpush.bf16.msra.mxu1 %v7157_v21  ;;  %5104 = vmatpush.bf16.msra.mxu2 %v7285_v42  ;;  %v8589_v12 = vld [vmem:[#allocation11 + $0x5f4] sm:$0xf0]  ;;  %v7860_v24 = vld [vmem:[#allocation11 + $0x6e8] sm:$0xf]  ;;  %v7605_v63 = vor.u32 %v8557_v49, %v7604_v36 }
 0x435   : > { %v8621_v9 = vld [vmem:[#allocation11 + $0x6f4] sm:$0xf0]  ;;  %v7988_v45 = vld [vmem:[#allocation11 + $0x7e8] sm:$0xf]  ;;  %v7733_v50 = vor.u32 %v8589_v12, %v7732_v28 }
 0x436   : > { %5118 = vmatpush.bf16.msra.mxu3 %v7413_v32  ;;  %v8653_v53 = vld [vmem:[#allocation11 + $0x7f4] sm:$0xf0]  ;;  %v7861_v61 = vor.u32 %v8621_v9, %v7860_v24  ;;  %v7588_v62 = vld [vmem:[#allocation11 + $0x4c8] sm:$0xf] }
 0x437   : > { %5077 = vmatpush.bf16.msra.mxu0 %v7013_v17  ;;  %v8553_v58 = vld [vmem:[#allocation11 + $0x4d4] sm:$0xf0]  ;;  %v7716_v5 = vld [vmem:[#allocation11 + $0x5c8] sm:$0xf]  ;;  %v7989_v6 = vor.u32 %v8653_v53, %v7988_v45 }
 0x438   : > { %5091 = vmatpush.bf16.msra.mxu1 %v7141_v18  ;;  %5105 = vmatpush.bf16.msra.mxu2 %v7269_v22  ;;  %v8585_v10 = vld [vmem:[#allocation11 + $0x5d4] sm:$0xf0]  ;;  %v7844_v57 = vld [vmem:[#allocation11 + $0x6c8] sm:$0xf]  ;;  %v7589_v40 = vor.u32 %v8553_v58, %v7588_v62 }
 0x439   : > { %v8617_v21 = vld [vmem:[#allocation11 + $0x6d4] sm:$0xf0]  ;;  %v7972_v42 = vld [vmem:[#allocation11 + $0x7c8] sm:$0xf]  ;;  %v7717_v47 = vor.u32 %v8585_v10, %v7716_v5 }
 0x43a   : > { %5119 = vmatpush.bf16.msra.mxu3 %v7397_v35  ;;  %v8649_v41 = vld [vmem:[#allocation11 + $0x7d4] sm:$0xf0]  ;;  %v7845_v32 = vor.u32 %v8617_v21, %v7844_v57  ;;  %v7572_v20 = vld [vmem:[#allocation11 + $0x4a8] sm:$0xf] }
 0x43b   : > { %5078 = vmatpush.bf16.msra.mxu0 %v6997_v54  ;;  %v8549_v1 = vld [vmem:[#allocation11 + $0x4b4] sm:$0xf0]  ;;  %v7700_v51 = vld [vmem:[#allocation11 + $0x5a8] sm:$0xf]  ;;  %v7973_v14 = vor.u32 %v8649_v41, %v7972_v42 }
 0x43c   : > { %5092 = vmatpush.bf16.msra.mxu1 %v7125_v60  ;;  %5106 = vmatpush.bf16.msra.mxu2 %v7253_v2  ;;  %v8581_v29 = vld [vmem:[#allocation11 + $0x5b4] sm:$0xf0]  ;;  %v7828_v17 = vld [vmem:[#allocation11 + $0x6a8] sm:$0xf]  ;;  %v7573_v27 = vor.u32 %v8549_v1, %v7572_v20 }
 0x43d   : > { %v8613_v18 = vld [vmem:[#allocation11 + $0x6b4] sm:$0xf0]  ;;  %v7956_v22 = vld [vmem:[#allocation11 + $0x7a8] sm:$0xf]  ;;  %v7701_v31 = vor.u32 %v8581_v29, %v7700_v51 }
 0x43e   : > { %5120 = vmatpush.bf16.msra.mxu3 %v7381_v15  ;;  %v8645_v26 = vld [vmem:[#allocation11 + $0x7b4] sm:$0xf0]  ;;  %v7829_v35 = vor.u32 %v8613_v18, %v7828_v17  ;;  %v7556_v39 = vld [vmem:[#allocation11 + $0x488] sm:$0xf] }
 0x43f   : > { %5079 = vmatpush.bf16.msra.mxu0 %v6981_v30  ;;  %v8545_v43 = vld [vmem:[#allocation11 + $0x494] sm:$0xf0]  ;;  %v7684_v7 = vld [vmem:[#allocation11 + $0x588] sm:$0xf]  ;;  %v7957_v44 = vor.u32 %v8645_v26, %v7956_v22 }
 0x440   : > { %5093 = vmatpush.bf16.msra.mxu1 %v7109_v38  ;;  %5107 = vmatpush.bf16.msra.mxu2 %v7237_v25  ;;  %v8577_v48 = vld [vmem:[#allocation11 + $0x594] sm:$0xf0]  ;;  %v7812_v54 = vld [vmem:[#allocation11 + $0x688] sm:$0xf]  ;;  %v7557_v2 = vor.u32 %v8545_v43, %v7556_v39  ;;  %v8427_v43 = vld [vmem:[#allocation11 + $0xec] sm:$0xf] }
 0x441   : > { %v8609_v55 = vld [vmem:[#allocation11 + $0x694] sm:$0xf0]  ;;  %v7940_v56 = vld [vmem:[#allocation11 + $0x788] sm:$0xf]  ;;  %v7685_v3 = vor.u32 %v8577_v48, %v7684_v7  ;;  %v7094_v7 = vld [vmem:[#allocation11 + $0xf8] sm:$0xf0] }
 0x442   : > { %5121 = vmatpush.bf16.msra.mxu3 %v7365_v0  ;;  %5080 = vmatmul.bf16.vlgmr.msra.gmra.mxu0 %v10958_v52  ;;  %v8641_v60 = vld [vmem:[#allocation11 + $0x794] sm:$0xf0]  ;;  %v7813_v4 = vor.u32 %v8609_v55, %v7812_v54  ;;  %v7540_v8 = vld [vmem:[#allocation11 + $0x468] sm:$0xf]  ;;  %v7222_v54 = vld [vmem:[#allocation11 + $0x1f8] sm:$0xf0] }
 0x443   : > { %5128 = vmatpush.bf16.msrb.mxu0 %v7605_v63  ;;  %5108 = vmatmul.bf16.vlgmr.msra.gmra.mxu2 %v10960_v11  ;;  %v8541_v15 = vld [vmem:[#allocation11 + $0x474] sm:$0xf0]  ;;  %v7668_v16 = vld [vmem:[#allocation11 + $0x568] sm:$0xf]  ;;  %v7941_v19 = vor.u32 %v8641_v60, %v7940_v56  ;;  %v8491_v55 = vld [vmem:[#allocation11 + $0x2ec] sm:$0xf] }
 0x444   : > { %5142 = vmatpush.bf16.msrb.mxu1 %v7733_v50  ;;  %5156 = vmatpush.bf16.msrb.mxu2 %v7861_v61  ;;  %v8573_v46 = vld [vmem:[#allocation11 + $0x574] sm:$0xf0]  ;;  %v7796_v36 = vld [vmem:[#allocation11 + $0x668] sm:$0xf]  ;;  %v7541_v12 = vor.u32 %v8541_v15, %v7540_v8  ;;  %v7350_v56 = vld [vmem:[#allocation11 + $0x2f8] sm:$0xf0]  ;;  %v7097_v15 = vor.u32 %v8427_v43, %v7094_v7 }
 0x445   : > { %5094 = vmatmul.bf16.vlgmr.msra.gmra.mxu1 %v10969_v23  ;;  %5122 = vmatmul.bf16.vlgmr.msra.gmra.mxu3 %v10977_v13  ;;  %v8605_v49 = vld [vmem:[#allocation11 + $0x674] sm:$0xf0]  ;;  %v7924_v28 = vld [vmem:[#allocation11 + $0x768] sm:$0xf]  ;;  %v7669_v24 = vor.u32 %v8573_v46, %v7668_v16  ;;  %v8423_v46 = vld [vmem:[#allocation11 + $0xcc] sm:$0xf] }
 0x446   : > { %5170 = vmatpush.bf16.msrb.mxu3 %v7989_v6  ;;  %v8637_v30 = vld [vmem:[#allocation11 + $0x774] sm:$0xf0]  ;;  %v7797_v9 = vor.u32 %v8605_v49, %v7796_v36  ;;  %v7524_v38 = vld [vmem:[#allocation11 + $0x448] sm:$0xf]  ;;  %v7078_v36 = vld [vmem:[#allocation11 + $0xd8] sm:$0xf0] }
 0x447   : > { %5129 = vmatpush.bf16.msrb.mxu0 %v7589_v40  ;;  %v8537_v25 = vld [vmem:[#allocation11 + $0x454] sm:$0xf0]  ;;  %v7652_v45 = vld [vmem:[#allocation11 + $0x548] sm:$0xf]  ;;  %v7925_v53 = vor.u32 %v8637_v30, %v7924_v28  ;;  %v8455_v49 = vld [vmem:[#allocation11 + $0x1cc] sm:$0xf] }
 0x448   : > { %5143 = vmatpush.bf16.msrb.mxu1 %v7717_v47  ;;  %5157 = vmatpush.bf16.msrb.mxu2 %v7845_v32  ;;  %v8569_v0 = vld [vmem:[#allocation11 + $0x554] sm:$0xf0]  ;;  %v7780_v63 = vld [vmem:[#allocation11 + $0x648] sm:$0xf]  ;;  %v7525_v58 = vor.u32 %v8537_v25, %v7524_v38  ;;  %v7206_v30 = vld [vmem:[#allocation11 + $0x1d8] sm:$0xf0]  ;;  %v7081_v25 = vor.u32 %v8423_v46, %v7078_v36 }
 0x449   : > { %v8601_v50 = vld [vmem:[#allocation11 + $0x654] sm:$0xf0]  ;;  %v7908_v61 = vld [vmem:[#allocation11 + $0x748] sm:$0xf]  ;;  %v7653_v5 = vor.u32 %v8569_v0, %v7652_v45  ;;  %v7462_v38 = vld [vmem:[#allocation11 + $0x3d8] sm:$0xf0]  ;;  %v7209_v45 = vor.u32 %v8455_v49, %v7206_v30 }
 0x44a   : > { %5171 = vmatpush.bf16.msrb.mxu3 %v7973_v14  ;;  %v8633_v62 = vld [vmem:[#allocation11 + $0x754] sm:$0xf0]  ;;  %v7781_v6 = vor.u32 %v8601_v50, %v7780_v63  ;;  %v7508_v10 = vld [vmem:[#allocation11 + $0x428] sm:$0xf]  ;;  %v8419_v0 = vld [vmem:[#allocation11 + $0xac] sm:$0xf] }
 0x44b   : > { %5130 = vmatpush.bf16.msrb.mxu0 %v7573_v27  ;;  %v8533_v57 = vld [vmem:[#allocation11 + $0x434] sm:$0xf0]  ;;  %v7636_v21 = vld [vmem:[#allocation11 + $0x528] sm:$0xf]  ;;  %v7909_v42 = vor.u32 %v8633_v62, %v7908_v61  ;;  %v7062_v63 = vld [vmem:[#allocation11 + $0xb8] sm:$0xf0] }
 0x44c   : > { %5144 = vmatpush.bf16.msrb.mxu1 %v7701_v31  ;;  %5158 = vmatpush.bf16.msrb.mxu2 %v7829_v35  ;;  %v8565_v41 = vld [vmem:[#allocation11 + $0x534] sm:$0xf0]  ;;  %v7764_v40 = vld [vmem:[#allocation11 + $0x628] sm:$0xf]  ;;  %v7509_v1 = vor.u32 %v8533_v57, %v7508_v10  ;;  %v8451_v50 = vld [vmem:[#allocation11 + $0x1ac] sm:$0xf]  ;;  %v7065_v57 = vor.u32 %v8419_v0, %v7062_v63 }
 0x44d   : > { %v8597_v47 = vld [vmem:[#allocation11 + $0x634] sm:$0xf0]  ;;  %v7892_v32 = vld [vmem:[#allocation11 + $0x728] sm:$0xf]  ;;  %v7637_v29 = vor.u32 %v8565_v41, %v7636_v21  ;;  %v7190_v62 = vld [vmem:[#allocation11 + $0x1b8] sm:$0xf0] }
 0x44e   : > { %5172 = vmatpush.bf16.msrb.mxu3 %v7957_v44  ;;  %v8629_v20 = vld [vmem:[#allocation11 + $0x734] sm:$0xf0]  ;;  %v7492_v51 = vld [vmem:[#allocation11 + $0x408] sm:$0xf]  ;;  %v7765_v17 = vor.u32 %v8597_v47, %v7764_v40  ;;  %v8459_v44 = vld [vmem:[#allocation11 + $0x1ec] sm:$0xf]  ;;  %v7193_v21 = vor.u32 %v8451_v50, %v7190_v62 }
 0x44f   : > { %5131 = vmatpush.bf16.msrb.mxu0 %v7557_v2  ;;  %v8529_v14 = vld [vmem:[#allocation11 + $0x414] sm:$0xf0]  ;;  %v7620_v18 = vld [vmem:[#allocation11 + $0x508] sm:$0xf]  ;;  %v7893_v27 = vor.u32 %v8629_v20, %v7892_v32  ;;  %v7225_v16 = vor.u32 %v8459_v44, %v7222_v54  ;;  %v7446_v10 = vld [vmem:[#allocation11 + $0x3b8] sm:$0xf0] }
 0x450   : > { %5145 = vmatpush.bf16.msrb.mxu1 %v7685_v3  ;;  %5159 = vmatpush.bf16.msrb.mxu2 %v7813_v4  ;;  %v8561_v22 = vld [vmem:[#allocation11 + $0x514] sm:$0xf0]  ;;  %v7748_v26 = vld [vmem:[#allocation11 + $0x608] sm:$0xf]  ;;  %v7493_v48 = vor.u32 %v8529_v14, %v7492_v51  ;;  %v8523_v3 = vld [vmem:[#allocation11 + $0x3ec] sm:$0xf] }
 0x451   : > { %v8593_v31 = vld [vmem:[#allocation11 + $0x614] sm:$0xf0]  ;;  %v7876_v35 = vld [vmem:[#allocation11 + $0x708] sm:$0xf]  ;;  %v7621_v60 = vor.u32 %v8561_v22, %v7620_v18  ;;  %v7478_v4 = vld [vmem:[#allocation11 + $0x3f8] sm:$0xf0]  ;;  %v11067_v18 = vpop.f32.mrf.mxu0 }
 0x452   : > { %5173 = vmatpush.bf16.msrb.mxu3 %v7941_v19  ;;  %v8625_v39 = vld [vmem:[#allocation11 + $0x714] sm:$0xf0]  ;;  %v7749_v2 = vor.u32 %v8593_v31, %v7748_v26  ;;  %v7353_v19 = vor.u32 %v8491_v55, %v7350_v56  ;;  %v7481_v28 = vor.u32 %v8523_v3, %v7478_v4  ;;  %v8415_v41 = vld [vmem:[#allocation11 + $0x8c] sm:$0xf]  ;;  %v7046_v40 = vld [vmem:[#allocation11 + $0x98] sm:$0xf0] }
 0x453   : > { %5132 = vmatpush.bf16.msrb.mxu0 %v7541_v12  ;;  %v7877_v8 = vor.u32 %v8625_v39, %v7876_v35  ;;  %v8487_v12 = vld [vmem:[#allocation11 + $0x2cc] sm:$0xf]  ;;  %v7174_v20 = vld [vmem:[#allocation11 + $0x198] sm:$0xf0]  ;;  %v11069_v39 = vpop.f32.mrf.mxu1 }
 0x454   : > { %5146 = vmatpush.bf16.msrb.mxu1 %v7669_v24  ;;  %5160 = vmatpush.bf16.msrb.mxu2 %v7797_v9  ;;  %v7334_v24 = vld [vmem:[#allocation11 + $0x2d8] sm:$0xf0]  ;;  %v8519_v9 = vld [vmem:[#allocation11 + $0x3cc] sm:$0xf] }
 0x455   : > { %v7465_v61 = vor.u32 %v8519_v9, %v7462_v38  ;;  %v8447_v47 = vld [vmem:[#allocation11 + $0x18c] sm:$0xf]  ;;  %v7302_v51 = vld [vmem:[#allocation11 + $0x298] sm:$0xf0] }
 0x456   : > { %5174 = vmatpush.bf16.msrb.mxu3 %v7925_v53  ;;  %v7337_v53 = vor.u32 %v8487_v12, %v7334_v24  ;;  %v8511_v14 = vld [vmem:[#allocation11 + $0x38c] sm:$0xf]  ;;  %v7177_v22 = vor.u32 %v8447_v47, %v7174_v20  ;;  %v7030_v31 = vld [vmem:[#allocation11 + $0x78] sm:$0xf0] }
 0x457   : > { %5133 = vmatpush.bf16.msrb.mxu0 %v7525_v58  ;;  %v8483_v58 = vld [vmem:[#allocation11 + $0x2ac] sm:$0xf]  ;;  %v7158_v7 = vld [vmem:[#allocation11 + $0x178] sm:$0xf0] }
 0x458   : > { %5147 = vmatpush.bf16.msrb.mxu1 %v7653_v5  ;;  %5161 = vmatpush.bf16.msrb.mxu2 %v7781_v6  ;;  %v7318_v5 = vld [vmem:[#allocation11 + $0x2b8] sm:$0xf0]  ;;  %v8515_v6 = vld [vmem:[#allocation11 + $0x3ac] sm:$0xf]  ;;  %v11073_v12 = vpop.f32.mrf.mxu3 }
 0x459   : > { %v7449_v32 = vor.u32 %v8515_v6, %v7446_v10  ;;  %v8443_v35 = vld [vmem:[#allocation11 + $0x16c] sm:$0xf]  ;;  %v7414_v55 = vld [vmem:[#allocation11 + $0x378] sm:$0xf0] }
 0x45a   : > { %5175 = vmatpush.bf16.msrb.mxu3 %v7909_v42  ;;  %v7321_v42 = vor.u32 %v8483_v58, %v7318_v5  ;;  %v8475_v44 = vld [vmem:[#allocation11 + $0x26c] sm:$0xf]  ;;  %v7014_v4 = vld [vmem:[#allocation11 + $0x58] sm:$0xf0] }
 0x45b   : > { %5134 = vmatpush.bf16.msrb.mxu0 %v7509_v1  ;;  %v8479_v1 = vld [vmem:[#allocation11 + $0x28c] sm:$0xf]  ;;  %v7270_v46 = vld [vmem:[#allocation11 + $0x258] sm:$0xf0]  ;;  %v11077_v5 = vpop.f32.mrf.mxu1 }
 0x45c   : > { %5148 = vmatpush.bf16.msrb.mxu1 %v7637_v29  ;;  %5162 = vmatpush.bf16.msrb.mxu2 %v7765_v17  ;;  %v7430_v29 = vld [vmem:[#allocation11 + $0x398] sm:$0xf0]  ;;  %v7049_v17 = vor.u32 %v8415_v41, %v7046_v40  ;;  %v7305_v26 = vor.u32 %v8479_v1, %v7302_v51  ;;  %v8507_v54 = vld [vmem:[#allocation11 + $0x36c] sm:$0xf] }
 0x45d   : > { %v7433_v43 = vor.u32 %v8511_v14, %v7430_v29  ;;  %v8407_v3 = vld [vmem:[#allocation11 + $0x4c] sm:$0xf]  ;;  %v7398_v49 = vld [vmem:[#allocation11 + $0x358] sm:$0xf0] }
 0x45e   : > { %5176 = vmatpush.bf16.msrb.mxu3 %v7893_v27  ;;  %v8411_v27 = vld [vmem:[#allocation11 + $0x6c] sm:$0xf]  ;;  %v7017_v30 = vor.u32 %v8407_v3, %v7014_v4  ;;  %v7126_v0 = vld [vmem:[#allocation11 + $0x138] sm:$0xf0] }
 0x45f   : > { %5135 = vmatpush.bf16.msrb.mxu0 %v7493_v48  ;;  %v7286_v48 = vld [vmem:[#allocation11 + $0x278] sm:$0xf0]  ;;  %v7033_v56 = vor.u32 %v8411_v27, %v7030_v31  ;;  %v8503_v36 = vld [vmem:[#allocation11 + $0x34c] sm:$0xf] }
 0x460   : > { %5149 = vmatpush.bf16.msrb.mxu1 %v7621_v60  ;;  %5163 = vmatpush.bf16.msrb.mxu2 %v7749_v2  ;;  %v7161_v60 = vor.u32 %v8443_v35, %v7158_v7  ;;  %v7289_v2 = vor.u32 %v8475_v44, %v7286_v48  ;;  %v8403_v38 = vld [vmem:[#allocation11 + $0x2c] sm:$0xf]  ;;  %v7254_v50 = vld [vmem:[#allocation11 + $0x238] sm:$0xf0] }
 0x461   : > { %v8467_v63 = vld [vmem:[#allocation11 + $0x22c] sm:$0xf]  ;;  %v7382_v58 = vld [vmem:[#allocation11 + $0x338] sm:$0xf0] }
 0x462   : > { %5177 = vmatpush.bf16.msrb.mxu3 %v7877_v8  ;;  %5136 = vmatmul.bf16.vlgmr.msrb.gmra.mxu0 %v11039_v33  ;;  %v8439_v8 = vld [vmem:[#allocation11 + $0x14c] sm:$0xf]  ;;  %v7110_v40 = vld [vmem:[#allocation11 + $0x118] sm:$0xf0] }
 0x463   : > { %5184 = vmatpush.bf16.msra.mxu0 %v7097_v15  ;;  %5164 = vmatmul.bf16.vlgmr.msrb.gmra.mxu2 %v11041_v37  ;;  %v7417_v15 = vor.u32 %v8507_v54, %v7414_v55  ;;  %v8499_v62 = vld [vmem:[#allocation11 + $0x32c] sm:$0xf]  ;;  %v7238_v20 = vld [vmem:[#allocation11 + $0x218] sm:$0xf0] }
 0x464   : > { %5198 = vmatpush.bf16.msra.mxu1 %v7225_v16  ;;  %5212 = vmatpush.bf16.msra.mxu2 %v7353_v19  ;;  %v7142_v16 = vld [vmem:[#allocation11 + $0x158] sm:$0xf0]  ;;  %v8471_v19 = vld [vmem:[#allocation11 + $0x24c] sm:$0xf] }
 0x465   : > { %5150 = vmatmul.bf16.vlgmr.msrb.gmra.mxu1 %v11043_v34  ;;  %5178 = vmatmul.bf16.vlgmr.msrb.gmra.mxu3 %v11045_v59  ;;  %v7145_v24 = vor.u32 %v8439_v8, %v7142_v16  ;;  %v7273_v9 = vor.u32 %v8471_v19, %v7270_v46  ;;  %v8399_v10 = vld [vmem:[#allocation11 + $0xc] sm:$0xf]  ;;  %v7366_v51 = vld [vmem:[#allocation11 + $0x318] sm:$0xf0] }
 0x466   : > { %5226 = vmatpush.bf16.msra.mxu3 %v7481_v28  ;;  %v11071_v28 = vpop.f32.mrf.mxu2  ;;  %v8431_v41 = vld [vmem:[#allocation11 + $0x10c] sm:$0xf]  ;;  %v7606_v29 = vld [vmem:[#allocation11 + $0x4f8] sm:$0xf0] }
 0x467   : > { %5185 = vmatpush.bf16.msra.mxu0 %v7081_v25  ;;  %v6998_v25 = vld [vmem:[#allocation11 + $0x38] sm:$0xf0]  ;;  %v8463_v47 = vld [vmem:[#allocation11 + $0x20c] sm:$0xf]  ;;  %v7113_v35 = vor.u32 %v8431_v41, %v7110_v40 }
 0x468   : > { %5199 = vmatpush.bf16.msra.mxu1 %v7209_v45  ;;  %5213 = vmatpush.bf16.msra.mxu2 %v7337_v53  ;;  %v8435_v45 = vld [vmem:[#allocation11 + $0x12c] sm:$0xf]  ;;  %v7401_v53 = vor.u32 %v8503_v36, %v7398_v49  ;;  %v7001_v6 = vor.u32 %v8403_v38, %v6998_v25  ;;  %v7862_v31 = vld [vmem:[#allocation11 + $0x6f8] sm:$0xf0] }
 0x469   : > { %v8495_v1 = vld [vmem:[#allocation11 + $0x30c] sm:$0xf]  ;;  %v7990_v44 = vld [vmem:[#allocation11 + $0x7f8] sm:$0xf0] }
 0x46a   : > { %5227 = vmatpush.bf16.msra.mxu3 %v7465_v61  ;;  %v11075_v61 = vpop.f32.mrf.mxu0  ;;  %v8555_v14 = vld [vmem:[#allocation11 + $0x4ec] sm:$0xf]  ;;  %v7369_v54 = vor.u32 %v8495_v1, %v7366_v51  ;;  %v7590_v4 = vld [vmem:[#allocation11 + $0x4d8] sm:$0xf0] }
 0x46b   : > { %5186 = vmatpush.bf16.msra.mxu0 %v7065_v57  ;;  %v6982_v57 = vld [vmem:[#allocation11 + $0x18] sm:$0xf0]  ;;  %v8619_v27 = vld [vmem:[#allocation11 + $0x6ec] sm:$0xf]  ;;  %v7609_v55 = vor.u32 %v8555_v14, %v7606_v29 }
 0x46c   : > { %5200 = vmatpush.bf16.msra.mxu1 %v7193_v21  ;;  %5214 = vmatpush.bf16.msra.mxu2 %v7321_v42  ;;  %v7129_v21 = vor.u32 %v8435_v45, %v7126_v0  ;;  %v7257_v42 = vor.u32 %v8467_v63, %v7254_v50  ;;  %v8651_v7 = vld [vmem:[#allocation11 + $0x7ec] sm:$0xf]  ;;  %v7718_v16 = vld [vmem:[#allocation11 + $0x5d8] sm:$0xf0] }
 0x46d   : > { %v8551_v3 = vld [vmem:[#allocation11 + $0x4cc] sm:$0xf]  ;;  %v7846_v46 = vld [vmem:[#allocation11 + $0x6d8] sm:$0xf0] }
 0x46e   : > { %5228 = vmatpush.bf16.msra.mxu3 %v7449_v32  ;;  %v7385_v32 = vor.u32 %v8499_v62, %v7382_v58  ;;  %v11079_v48 = vpop.f32.mrf.mxu2  ;;  %v8583_v8 = vld [vmem:[#allocation11 + $0x5cc] sm:$0xf]  ;;  %v7702_v50 = vld [vmem:[#allocation11 + $0x5b8] sm:$0xf0] }
 0x46f   : > { %5187 = vmatpush.bf16.msra.mxu0 %v7049_v17  ;;  %v8587_v17 = vld [vmem:[#allocation11 + $0x5ec] sm:$0xf]  ;;  %v7721_v38 = vor.u32 %v8583_v8, %v7718_v16  ;;  %v7830_v58 = vld [vmem:[#allocation11 + $0x6b8] sm:$0xf0] }
 0x470   : > { %5201 = vmatpush.bf16.msra.mxu1 %v7177_v22  ;;  %5215 = vmatpush.bf16.msra.mxu2 %v7305_v26  ;;  %v6985_v22 = vor.u32 %v8399_v10, %v6982_v57  ;;  %v7734_v26 = vld [vmem:[#allocation11 + $0x5f8] sm:$0xf0]  ;;  %v8615_v19 = vld [vmem:[#allocation11 + $0x6cc] sm:$0xf] }
 0x471   : > { %v8647_v49 = vld [vmem:[#allocation11 + $0x7cc] sm:$0xf]  ;;  %v7849_v25 = vor.u32 %v8615_v19, %v7846_v46  ;;  %v7958_v10 = vld [vmem:[#allocation11 + $0x7b8] sm:$0xf0] }
 0x472   : > { %5229 = vmatpush.bf16.msra.mxu3 %v7433_v43  ;;  %v7241_v43 = vor.u32 %v8463_v47, %v7238_v20  ;;  %v11083_v36 = vpop.f32.mrf.mxu0  ;;  %v8547_v45 = vld [vmem:[#allocation11 + $0x4ac] sm:$0xf]  ;;  %v7558_v40 = vld [vmem:[#allocation11 + $0x498] sm:$0xf0] }
 0x473   : > { %5188 = vmatpush.bf16.msra.mxu0 %v7033_v56  ;;  %v11081_v56 = vpop.f32.mrf.mxu3  ;;  %v8579_v0 = vld [vmem:[#allocation11 + $0x5ac] sm:$0xf]  ;;  %v7686_v20 = vld [vmem:[#allocation11 + $0x598] sm:$0xf0] }
 0x474   : > { %5202 = vmatpush.bf16.msra.mxu1 %v7161_v60  ;;  %5216 = vmatpush.bf16.msra.mxu2 %v7289_v2  ;;  %v7737_v60 = vor.u32 %v8587_v17, %v7734_v26  ;;  %v7865_v2 = vor.u32 %v8619_v27, %v7862_v31  ;;  %v8611_v62 = vld [vmem:[#allocation11 + $0x6ac] sm:$0xf]  ;;  %v7942_v14 = vld [vmem:[#allocation11 + $0x798] sm:$0xf0] }
 0x475   : > { %v8543_v41 = vld [vmem:[#allocation11 + $0x48c] sm:$0xf]  ;;  %v7542_v27 = vld [vmem:[#allocation11 + $0x478] sm:$0xf0] }
 0x476   : > { %5230 = vmatpush.bf16.msra.mxu3 %v7417_v15  ;;  %v7993_v15 = vor.u32 %v8651_v7, %v7990_v44  ;;  %v11091_v47 = vpop.f32.mrf.mxu2  ;;  %v8607_v1 = vld [vmem:[#allocation11 + $0x68c] sm:$0xf]  ;;  %v7670_v7 = vld [vmem:[#allocation11 + $0x578] sm:$0xf0] }
 0x477   : > { %5189 = vmatpush.bf16.msra.mxu0 %v7017_v30  ;;  %v7974_v30 = vld [vmem:[#allocation11 + $0x7d8] sm:$0xf0]  ;;  %v8539_v26 = vld [vmem:[#allocation11 + $0x46c] sm:$0xf] }
 0x478   : > { %5203 = vmatpush.bf16.msra.mxu1 %v7145_v24  ;;  %5217 = vmatpush.bf16.msra.mxu2 %v7273_v9  ;;  %v11085_v24 = vpop.f32.mrf.mxu1  ;;  %v7593_v9 = vor.u32 %v8551_v3, %v7590_v4  ;;  %v7977_v63 = vor.u32 %v8647_v49, %v7974_v30  ;;  %v8571_v31 = vld [vmem:[#allocation11 + $0x56c] sm:$0xf]  ;;  %v7654_v46 = vld [vmem:[#allocation11 + $0x558] sm:$0xf0] }
 0x479   : > { %v8603_v44 = vld [vmem:[#allocation11 + $0x66c] sm:$0xf]  ;;  %v7673_v3 = vor.u32 %v8571_v31, %v7670_v7  ;;  %v7782_v30 = vld [vmem:[#allocation11 + $0x658] sm:$0xf0] }
 0x47a   : > { %5231 = vmatpush.bf16.msra.mxu3 %v7401_v53  ;;  %v7574_v53 = vld [vmem:[#allocation11 + $0x4b8] sm:$0xf0]  ;;  %v11095_v29 = vpop.f32.mrf.mxu0  ;;  %v8535_v8 = vld [vmem:[#allocation11 + $0x44c] sm:$0xf] }
 0x47b   : > { %5190 = vmatpush.bf16.msra.mxu0 %v7001_v6  ;;  %v8643_v6 = vld [vmem:[#allocation11 + $0x7ac] sm:$0xf]  ;;  %v7577_v57 = vor.u32 %v8547_v45, %v7574_v53  ;;  %v11093_v51 = vpop.f32.mrf.mxu3 }
 0x47c   : > { %5204 = vmatpush.bf16.msra.mxu1 %v7129_v21  ;;  %5218 = vmatpush.bf16.msra.mxu2 %v7257_v42  ;;  %v7705_v21 = vor.u32 %v8579_v0, %v7702_v50  ;;  %v7833_v42 = vor.u32 %v8611_v62, %v7830_v58  ;;  %v8567_v16 = vld [vmem:[#allocation11 + $0x54c] sm:$0xf] }
 0x47d   : > { %v8599_v49 = vld [vmem:[#allocation11 + $0x64c] sm:$0xf] }
 0x47e   : > { %5232 = vmatpush.bf16.msra.mxu3 %v7385_v32  ;;  %v7961_v32 = vor.u32 %v8643_v6, %v7958_v10  ;;  %v11101_v45 = vpop.f32.mrf.mxu2  ;;  %v7785_v50 = vor.u32 %v8599_v49, %v7782_v30  ;;  %v8531_v58 = vld [vmem:[#allocation11 + $0x42c] sm:$0xf]  ;;  %v7510_v6 = vld [vmem:[#allocation11 + $0x438] sm:$0xf0] }
 0x47f   : > { %5191 = vmatpush.bf16.msra.mxu0 %v6985_v22  ;;  %v8563_v10 = vld [vmem:[#allocation11 + $0x52c] sm:$0xf] }
 0x480   : > { %5205 = vmatpush.bf16.msra.mxu1 %v7113_v35  ;;  %5219 = vmatpush.bf16.msra.mxu2 %v7241_v43  ;;  %v11097_v35 = vpop.f32.mrf.mxu1  ;;  %v8591_v31 = vld [vmem:[#allocation11 + $0x60c] sm:$0xf] }
 0x481   : > { %v8623_v7 = vld [vmem:[#allocation11 + $0x70c] sm:$0xf] }
 0x482   : > { %5233 = vmatpush.bf16.msra.mxu3 %v7369_v54  ;;  %5192 = vmatmul.bf16.vlgmr.msra.gmra.mxu0 %v10958_v52  ;;  %v7814_v52 = vld [vmem:[#allocation11 + $0x698] sm:$0xf0]  ;;  %v4969_v62 = vpop.f32.mrf.mxu0 }
 0x483   : > { %5240 = vmatpush.bf16.msrb.mxu0 %v7609_v55  ;;  %5220 = vmatmul.bf16.vlgmr.msra.gmra.mxu2 %v10960_v11  ;;  %v8575_v11 = vld [vmem:[#allocation11 + $0x58c] sm:$0xf]  ;;  %v7817_v22 = vor.u32 %v8607_v1, %v7814_v52  ;;  %v7798_v54 = vld [vmem:[#allocation11 + $0x678] sm:$0xf0]  ;;  %v11103_v0 = vpop.f32.mrf.mxu3  ;;  %v7513_v52 = vor.u32 %v8531_v58, %v7510_v6 }
 0x484   : > { %5254 = vmatpush.bf16.msrb.mxu1 %v7737_v60  ;;  %5268 = vmatpush.bf16.msrb.mxu2 %v7865_v2  ;;  %v7689_v17 = vor.u32 %v8575_v11, %v7686_v20  ;;  %v8635_v55 = vld [vmem:[#allocation11 + $0x76c] sm:$0xf]  ;;  %v7926_v60 = vld [vmem:[#allocation11 + $0x778] sm:$0xf0]  ;;  %v7545_v2 = vor.u32 %v8539_v26, %v7542_v27  ;;  %v7801_v4 = vor.u32 %v8603_v44, %v7798_v54 }
 0x485   : > { %5234 = vmatmul.bf16.vlgmr.msra.gmra.mxu3 %v10977_v13  ;;  %5206 = vmatmul.bf16.vlgmr.msra.gmra.mxu1 %v10969_v23  ;;  %v8639_v13 = vld [vmem:[#allocation11 + $0x78c] sm:$0xf]  ;;  %v7561_v23 = vor.u32 %v8543_v41, %v7558_v40  ;;  %v7929_v19 = vor.u32 %v8635_v55, %v7926_v60  ;;  %v7766_v41 = vld [vmem:[#allocation11 + $0x638] sm:$0xf0] }
 0x486   : > { %5282 = vmatpush.bf16.msrb.mxu3 %v7993_v15  ;;  %v7945_v43 = vor.u32 %v8639_v13, %v7942_v14  ;;  %v7526_v15 = vld [vmem:[#allocation11 + $0x458] sm:$0xf0]  ;;  %v8627_v11 = vld [vmem:[#allocation11 + $0x72c] sm:$0xf] }
 0x487   : > { %5241 = vmatpush.bf16.msrb.mxu0 %v7593_v9  ;;  %v8631_v9 = vld [vmem:[#allocation11 + $0x74c] sm:$0xf]  ;;  %v7529_v53 = vor.u32 %v8535_v8, %v7526_v15  ;;  %v7622_v27 = vld [vmem:[#allocation11 + $0x518] sm:$0xf0] }
 0x488   : > { %5255 = vmatpush.bf16.msrb.mxu1 %v7721_v38  ;;  %5269 = vmatpush.bf16.msrb.mxu2 %v7849_v25  ;;  %v7910_v38 = vld [vmem:[#allocation11 + $0x758] sm:$0xf0]  ;;  %v11099_v25 = vld [vmem:[#allocation12] sm:$0xf]  ;;  %v4983_v40 = vpop.f32.mrf.mxu1 }
 0x489   : > { %v3560_v20 = vperm.slane %v11099_v25, 0  ;;  %v3561_v1 = vperm.slane %v11099_v25, 1  ;;  %v7878_v44 = vld [vmem:[#allocation11 + $0x718] sm:$0xf0] }
 0x48a   : > { %5283 = vmatpush.bf16.msrb.mxu3 %v7977_v63  ;;  %v7657_v63 = vor.u32 %v8567_v16, %v7654_v46  ;;  %v7881_v16 = vor.u32 %v8623_v7, %v7878_v44  ;;  %v4971_v46 = vpop.f32.mrf.mxu0  ;;  %v8663_v44 = vld [vmem:[%s11259_s6 + $0x48] sm:$0xff] }
 0x48b   : > { %5242 = vmatpush.bf16.msrb.mxu0 %v7577_v57  ;;  %v7913_v57 = vor.u32 %v8631_v9, %v7910_v38  ;;  %v4858_v54 = vadd.f32 %v11067_v18, %v3560_v20  ;;  %v4860_v55 = vadd.f32 %v11075_v61, %v3560_v20  ;;  %v5011_v15 = vpop.f32.mrf.mxu3  ;;  %v8669_v18 = vld [vmem:[%s11259_s6 + $0x78] sm:$0xff]  ;;  %v8660_v38 = vld [vmem:[%s11259_s6 + $0x30] sm:$0xff] }
 0x48c   : > { %5256 = vmatpush.bf16.msrb.mxu1 %v7705_v21  ;;  %5270 = vmatpush.bf16.msrb.mxu2 %v7833_v42  ;;  %v7638_v21 = vld [vmem:[#allocation11 + $0x538] sm:$0xf0]  ;;  %v8595_v42 = vld [vmem:[#allocation11 + $0x62c] sm:$0xf] }
 0x48d   : > { %v7641_v13 = vor.u32 %v8563_v10, %v7638_v21  ;;  %v7769_v14 = vor.u32 %v8595_v42, %v7766_v41  ;;  %v4872_v49 = vadd.f32 %v11069_v39, %v4858_v54  ;;  %v4874_v30 = vadd.f32 %v11077_v5, %v4860_v55  ;;  %v8666_v42 = vld [vmem:[%s11259_s6 + $0x60] sm:$0xff] }
 0x48e   : > { %5284 = vmatpush.bf16.msrb.mxu3 %v7961_v32  ;;  %v7894_v32 = vld [vmem:[#allocation11 + $0x738] sm:$0xf0] }
 0x48f   : > { %5243 = vmatpush.bf16.msrb.mxu0 %v7561_v23  ;;  %v8527_v23 = vld [vmem:[#allocation11 + $0x40c] sm:$0xf]  ;;  %v7897_v26 = vor.u32 %v8627_v11, %v7894_v32  ;;  %v4886_v39 = vadd.f32 %v11071_v28, %v4872_v49  ;;  %v4888_v5 = vadd.f32 %v11079_v48, %v4874_v30 }
 0x490   : > { %5257 = vmatpush.bf16.msrb.mxu1 %v7689_v17  ;;  %5271 = vmatpush.bf16.msrb.mxu2 %v7817_v22  ;;  %v7494_v17 = vld [vmem:[#allocation11 + $0x418] sm:$0xf0]  ;;  %v8559_v22 = vld [vmem:[#allocation11 + $0x50c] sm:$0xf]  ;;  %v4985_v61 = vpop.f32.mrf.mxu1 }
 0x491   : > { %v7497_v60 = vor.u32 %v8527_v23, %v7494_v17  ;;  %v4902_v28 = vadd.f32 %v11081_v56, %v4888_v5  ;;  %v8657_v56 = vld [vmem:[%s11259_s6 + $0x18] sm:$0xff]  ;;  %v8656_v23 = vld [vmem:[%s11259_s6 + $0x10] sm:$0xff] }
 0x492   : > { %5285 = vmatpush.bf16.msrb.mxu3 %v7945_v43  ;;  %v7750_v43 = vld [vmem:[#allocation11 + $0x618] sm:$0xf0]  ;;  %v8665_v32 = vld [vmem:[%s11259_s6 + $0x58] sm:$0xff] }
 0x493   : > { %5244 = vmatpush.bf16.msrb.mxu0 %v7545_v2  ;;  %v4997_v2 = vpop.f32.mrf.mxu2  ;;  %v7753_v8 = vor.u32 %v8591_v31, %v7750_v43  ;;  %v5013_v6 = vpop.f32.mrf.mxu3  ;;  %v8673_v49 = vld [vmem:[%s11259_s6 + $0x98] sm:$0xff] }
 0x494   : > { %5258 = vmatpush.bf16.msrb.mxu1 %v7673_v3  ;;  %5272 = vmatpush.bf16.msrb.mxu2 %v7801_v4  ;;  %v4970_v3 = vadd.f32 %v4969_v62, %v3561_v1  ;;  %v7625_v4 = vor.u32 %v8559_v22, %v7622_v27 }
 0x496   : > { %5286 = vmatpush.bf16.msrb.mxu3 %v7929_v19  ;;  %v8661_v19 = vld [vmem:[%s11259_s6 + $0x38] sm:$0xff]  ;;  %v4984_v9 = vadd.f32 %v4983_v40, %v4970_v3  ;;  %v8654_v3 = vld [vmem:[%s11259_s6] sm:$0xff] }
 0x497   : > { %5245 = vmatpush.bf16.msrb.mxu0 %v7529_v53  ;;  %v4972_v53 = vadd.f32 %v4971_v46, %v3561_v1 }
 0x498   : > { %5259 = vmatpush.bf16.msrb.mxu1 %v7657_v63  ;;  %5273 = vmatpush.bf16.msrb.mxu2 %v7785_v50  ;;  %v8668_v63 = vld [vmem:[%s11259_s6 + $0x70] sm:$0xff]  ;;  %v4998_v50 = vadd.f32 %v4997_v2, %v4984_v9 }
 0x499   : > { %v4986_v58 = vadd.f32 %v4985_v61, %v4972_v53  ;;  %v8674_v61 = vld [vmem:[%s11259_s6 + $0xa0] sm:$0xff]  ;;  %v8672_v9 = vld [vmem:[%s11259_s6 + $0x90] sm:$0xff]  ;;  %v3562_v53 = vperm.slane %v11099_v25, 2 }
 0x49a   : > { %5287 = vmatpush.bf16.msrb.mxu3 %v7913_v57  ;;  %v5012_v48 = vadd.f32 %v5011_v15, %v4998_v50 }
 0x49b   : > { %5246 = vmatpush.bf16.msrb.mxu0 %v7513_v52  ;;  %v4999_v62 = vpop.f32.mrf.mxu2 }
 0x49c   : > { %5260 = vmatpush.bf16.msrb.mxu1 %v7641_v13  ;;  %5274 = vmatpush.bf16.msrb.mxu2 %v7769_v14  ;;  %v5000_v21 = vadd.f32 %v4999_v62, %v4986_v58  ;;  %v8677_v14 = vld [vmem:[%s11259_s6 + $0xb8] sm:$0xff] }
 0x49e   : > { %5288 = vmatpush.bf16.msrb.mxu3 %v7897_v26  ;;  %v5014_v11 = vadd.f32 %v5013_v6, %v5000_v21 }
 0x49f   : > { %5247 = vmatpush.bf16.msrb.mxu0 %v7497_v60  ;;  %v5025_v10 = vpop.f32.mrf.mxu0 }
 0x4a0   : > { %5261 = vmatpush.bf16.msrb.mxu1 %v7625_v4  ;;  %5275 = vmatpush.bf16.msrb.mxu2 %v7753_v8  ;;  %v5026_v40 = vadd.f32 %v5025_v10, %v5012_v48  ;;  %v8662_v8 = vld [vmem:[%s11259_s6 + $0x40] sm:$0xff] }
 0x4a2   : > { %5289 = vmatpush.bf16.msrb.mxu3 %v7881_v16  ;;  %5248 = vmatmul.bf16.vlgmr.msrb.gmra.mxu0 %v11039_v33  ;;  %v8659_v33 = vld [vmem:[%s11259_s6 + $0x28] sm:$0xff]  ;;  %v5039_v57 = vpop.f32.mrf.mxu1 }
 0x4a3   : > { %5568 = vmatpush.bf16.msra.mxu0 %v8661_v19  ;;  %5262 = vmatmul.bf16.vlgmr.msrb.gmra.mxu1 %v11043_v34  ;;  %v4900_v34 = vadd.f32 %v11073_v12, %v4886_v39  ;;  %v4916_v12 = vadd.f32 %v11095_v29, %v4902_v28 }
 0x4a4   : > { %5582 = vmatpush.bf16.msra.mxu1 %v8669_v18  ;;  %5276 = vmatmul.bf16.vlgmr.msrb.gmra.mxu2 %v11041_v37  ;;  %v8667_v37 = vld [vmem:[%s11259_s6 + $0x68] sm:$0xff] }
 0x4a5   : > { %5290 = vmatmul.bf16.vlgmr.msrb.gmra.mxu3 %v11045_v59  ;;  %v8658_v59 = vld [vmem:[%s11259_s6 + $0x20] sm:$0xff]  ;;  %v4914_v41 = vadd.f32 %v11083_v36, %v4900_v34  ;;  %v4930_v52 = vadd.f32 %v11097_v35, %v4916_v12  ;;  %v5040_v36 = vadd.f32 %v5039_v57, %v5026_v40  ;;  %5596 = vmatpush.bf16.msra.mxu2 %v8677_v14  ;;  %v8676_v35 = vld [vmem:[%s11259_s6 + $0xb0] sm:$0xff]  ;;  %v8675_v18 = vld [vmem:[%s11259_s6 + $0xa8] sm:$0xff] }
 0x4a6   : > { %v5053_v20 = vpop.f32.mrf.mxu2 }
 0x4a7   : > { %5569 = vmatpush.bf16.msra.mxu0 %v8660_v38  ;;  %v4928_v1 = vadd.f32 %v11085_v24, %v4914_v41  ;;  %v5027_v13 = vpop.f32.mrf.mxu0  ;;  %v4944_v17 = vadd.f32 %v11101_v45, %v4930_v52  ;;  %v8664_v24 = vld [vmem:[%s11259_s6 + $0x50] sm:$0xff]  ;;  %v5054_v31 = vadd.f32 %v5053_v20, %v5040_v36  ;;  %v8655_v45 = vld [vmem:[%s11259_s6 + $0x8] sm:$0xff] }
 0x4a8   : > { %5583 = vmatpush.bf16.msra.mxu1 %v8668_v63  ;;  %v5067_v29 = vpop.f32.mrf.mxu3  ;;  %v5028_v22 = vadd.f32 %v5027_v13, %v5014_v11  ;;  %v8671_v63 = vld [vmem:[%s11259_s6 + $0x88] sm:$0xff] }
 0x4a9   : > { %v4942_v27 = vadd.f32 %v11091_v47, %v4928_v1  ;;  %v4958_v43 = vadd.f32 %v11103_v0, %v4944_v17  ;;  %5597 = vmatpush.bf16.msra.mxu2 %v8676_v35  ;;  %v5068_v60 = vadd.f32 %v5067_v29, %v5054_v31  ;;  %v8685_v29 = vld [vmem:[%s11259_s6 + $0xf8] sm:$0xff]  ;;  %v8683_v31 = vld [vmem:[%s11259_s6 + $0xe8] sm:$0xff] }
 0x4aa   : > { %v5041_v26 = vpop.f32.mrf.mxu1  ;;  %5610 = vmatpush.bf16.msra.mxu3 %v8685_v29 }
 0x4ab   : > { %5570 = vmatpush.bf16.msra.mxu0 %v8659_v33  ;;  %v5042_v7 = vadd.f32 %v5041_v26, %v5028_v22  ;;  %v4956_v55 = vadd.f32 %v11093_v51, %v4942_v27  ;;  %v5300_v4 = vmax.f32 %v4958_v43, 0.0  ;;  %v5297_v16 = vmax.f32 %v5068_v60, 0.0  ;;  %v8670_v33 = vld [vmem:[%s11259_s6 + $0x80] sm:$0xff]  ;;  %v8684_v22 = vld [vmem:[%s11259_s6 + $0xf0] sm:$0xff]  ;;  %v8681_v43 = vld [vmem:[%s11259_s6 + $0xd8] sm:$0xff] }
 0x4ac   : > { %5584 = vmatpush.bf16.msra.mxu1 %v8667_v37  ;;  %v3563_v60 = vperm.slane %v11099_v25, 3 }
 0x4ad   : > { %v5296_v15 = vmax.f32 %v4956_v55, 0.0  ;;  %5598 = vmatpush.bf16.msra.mxu2 %v8675_v18 }
 0x4ae   : > { %v5055_v54 = vpop.f32.mrf.mxu2  ;;  %5611 = vmatpush.bf16.msra.mxu3 %v8684_v22 }
 0x4af   : > { %5571 = vmatpush.bf16.msra.mxu0 %v8658_v59  ;;  %v5056_v47 = vadd.f32 %v5055_v54, %v5042_v7  ;;  %v5304_v51 = vpack.c.bf16 %v5300_v4, %v5296_v15  ;;  %v8680_v7 = vld [vmem:[%s11259_s6 + $0xd0] sm:$0xff]  ;;  %v8679_v54 = vld [vmem:[%s11259_s6 + $0xc8] sm:$0xff] }
 0x4b0   : > { %5585 = vmatpush.bf16.msra.mxu1 %v8666_v42  ;;  %v5069_v2 = vpop.f32.mrf.mxu3 }
 0x4b1   : > { %v5070_v0 = vadd.f32 %v5069_v2, %v5056_v47  ;;  %5599 = vmatpush.bf16.msra.mxu2 %v8674_v61  ;;  %v8678_v47 = vld [vmem:[%s11259_s6 + $0xc0] sm:$0xff] }
 0x4b2   : > { %5612 = vmatpush.bf16.msra.mxu3 %v8683_v31 }
 0x4b3   : > { %5572 = vmatpush.bf16.msra.mxu0 %v8657_v56  ;;  %v5301_v19 = vmax.f32 %v5070_v0, 0.0 }
 0x4b4   : > { %5586 = vmatpush.bf16.msra.mxu1 %v8665_v32 }
 0x4b5   : > { %v5305_v46 = vpack.c.bf16 %v5301_v19, %v5297_v16  ;;  %5600 = vmatpush.bf16.msra.mxu2 %v8673_v49 }
 0x4b7   : > { %5573 = vmatpush.bf16.msra.mxu0 %v8656_v23 }
 0x4b8   : > { %5587 = vmatpush.bf16.msra.mxu1 %v8664_v24 }
 0x4b9   : > { %5601 = vmatpush.bf16.msra.mxu2 %v8672_v9 }
 0x4bb   : > { %5574 = vmatpush.bf16.msra.mxu0 %v8655_v45  ;;  %v8682_v45 = vld [vmem:[%s11259_s6 + $0xe0] sm:$0xff] }
 0x4bc   : > { %5588 = vmatpush.bf16.msra.mxu1 %v8663_v44  ;;  %5613 = vmatpush.bf16.msra.mxu3 %v8682_v45 }
 0x4bd   : > { %5602 = vmatpush.bf16.msra.mxu2 %v8671_v63 }
 0x4bf   : > { %5575 = vmatpush.bf16.msra.mxu0 %v8654_v3  ;;  %v5081_v30 = vpop.f32.mrf.mxu0 }
 0x4c0   : > { %5589 = vmatpush.bf16.msra.mxu1 %v8662_v8  ;;  %v5082_v5 = vadd.f32 %v5081_v30, %v3562_v53  ;;  %5614 = vmatpush.bf16.msra.mxu3 %v8681_v43 }
 0x4c1   : > { %5603 = vmatpush.bf16.msra.mxu2 %v8670_v33 }
 0x4c2   : > { %5576 = vmatmul.bf16.vlgmr.msra.gmra.mxu0 %v5304_v51  ;;  %v5095_v38 = vpop.f32.mrf.mxu1 }
 0x4c3   : > { %5590 = vmatmul.bf16.vlgmr.msra.gmra.mxu1 %v5305_v46  ;;  %v5096_v6 = vadd.f32 %v5095_v38, %v5082_v5 }
 0x4c4   : > { %5615 = vmatpush.bf16.msra.mxu3 %v8680_v7 }
 0x4c6   : > { %v5109_v39 = vpop.f32.mrf.mxu2 }
 0x4c7   : > { %v5083_v62 = vpop.f32.mrf.mxu0  ;;  %v5110_v34 = vadd.f32 %v5109_v39, %v5096_v6 }
 0x4c8   : > { %v5123_v50 = vpop.f32.mrf.mxu3  ;;  %v5084_v37 = vadd.f32 %v5083_v62, %v3562_v53  ;;  %5616 = vmatpush.bf16.msra.mxu3 %v8679_v54 }
 0x4c9   : > { %v5124_v59 = vadd.f32 %v5123_v50, %v5110_v34 }
 0x4ca   : > { %v5097_v58 = vpop.f32.mrf.mxu1 }
 0x4cb   : > { %v5098_v48 = vadd.f32 %v5097_v58, %v5084_v37 }
 0x4cc   : > { %5617 = vmatpush.bf16.msra.mxu3 %v8678_v47  ;;  %v8793_v47 = vld [vmem:[#allocation15] ss:$0 sm:$0xff] }
 0x4ce   : > { %v5111_v28 = vpop.f32.mrf.mxu2 }
 0x4cf   : > { %v5112_v42 = vadd.f32 %v5111_v28, %v5098_v48 }
 0x4d0   : > { %v5125_v10 = vpop.f32.mrf.mxu3 }
 0x4d1   : > { %v5126_v12 = vadd.f32 %v5125_v10, %v5112_v42  ;;  %v8792_v42 = vld [vmem:[#allocation14] ss:$0 sm:$0xff] }
 0x4df   : > { %v5137_v57 = vpop.f32.mrf.mxu0 }
 0x4e0   : > { %v5138_v41 = vadd.f32 %v5137_v57, %v5124_v59 }
 0x4e2   : > { %v5151_v21 = vpop.f32.mrf.mxu1 }
 0x4e3   : > { %v5152_v56 = vadd.f32 %v5151_v21, %v5138_v41 }
 0x4e6   : > { %v5165_v40 = vpop.f32.mrf.mxu2 }
 0x4e7   : > { %v5139_v11 = vpop.f32.mrf.mxu0  ;;  %v5166_v52 = vadd.f32 %v5165_v40, %v5152_v56 }
 0x4e8   : > { %v5179_v32 = vpop.f32.mrf.mxu3  ;;  %v5140_v20 = vadd.f32 %v5139_v11, %v5126_v12 }
 0x4e9   : > { %v5180_v14 = vadd.f32 %v5179_v32, %v5166_v52 }
 0x4ea   : > { %v5153_v1 = vpop.f32.mrf.mxu1 }
 0x4eb   : > { %v5154_v36 = vadd.f32 %v5153_v1, %v5140_v20  ;;  %v5298_v35 = vmax.f32 %v5180_v14, 0.0 }
 0x4ee   : > { %v5167_v13 = vpop.f32.mrf.mxu2 }
 0x4ef   : > { %v5168_v23 = vadd.f32 %v5167_v13, %v5154_v36 }
 0x4f0   : > { %v5181_v17 = vpop.f32.mrf.mxu3 }
 0x4f1   : > { %v5182_v24 = vadd.f32 %v5181_v17, %v5168_v23 }
 0x4f3   : > { %v5302_v26 = vmax.f32 %v5182_v24, 0.0 }
 0x4f5   : > { %v5306_v27 = vpack.c.bf16 %v5302_v26, %v5298_v35 }
 0x4f7   : > { %5604 = vmatmul.bf16.vlgmr.msra.gmra.mxu2 %v5306_v27 }
 0x4ff   : > { %v5193_v44 = vpop.f32.mrf.mxu0 }
 0x500   : > { %v5194_v4 = vadd.f32 %v5193_v44, %v3563_v60 }
 0x502   : > { %v5207_v55 = vpop.f32.mrf.mxu1 }
 0x503   : > { %v5208_v15 = vadd.f32 %v5207_v55, %v5194_v4 }
 0x506   : > { %v5221_v2 = vpop.f32.mrf.mxu2 }
 0x507   : > { %v5195_v0 = vpop.f32.mrf.mxu0  ;;  %v5222_v51 = vadd.f32 %v5221_v2, %v5208_v15 }
 0x508   : > { %v5235_v3 = vpop.f32.mrf.mxu3  ;;  %v5196_v16 = vadd.f32 %v5195_v0, %v3563_v60 }
 0x509   : > { %v5236_v30 = vadd.f32 %v5235_v3, %v5222_v51 }
 0x50a   : > { %v5209_v8 = vpop.f32.mrf.mxu1 }
 0x50b   : > { %v5210_v46 = vadd.f32 %v5209_v8, %v5196_v16 }
 0x50e   : > { %v5223_v19 = vpop.f32.mrf.mxu2 }
 0x50f   : > { %v5224_v25 = vadd.f32 %v5223_v19, %v5210_v46 }
 0x510   : > { %v5237_v18 = vpop.f32.mrf.mxu3 }
 0x511   : > { %v5238_v53 = vadd.f32 %v5237_v18, %v5224_v25 }
 0x51f   : > { %v5249_v61 = vpop.f32.mrf.mxu0 }
 0x520   : > { %v5263_v49 = vpop.f32.mrf.mxu1  ;;  %v5250_v9 = vadd.f32 %v5249_v61, %v5236_v30 }
 0x522   : > { %v5264_v5 = vadd.f32 %v5263_v49, %v5250_v9 }
 0x527   : > { %v5277_v38 = vpop.f32.mrf.mxu2  ;;  %v5251_v39 = vpop.f32.mrf.mxu0 }
 0x528   : > { %v5291_v63 = vpop.f32.mrf.mxu3  ;;  %v5252_v50 = vadd.f32 %v5251_v39, %v5238_v53  ;;  %v5278_v33 = vadd.f32 %v5277_v38, %v5264_v5  ;;  %v5265_v62 = vpop.f32.mrf.mxu1  ;;  %v8794_v53 = vld [vmem:[#allocation4] ss:$0 sm:$0xff] }
 0x52a   : > { %v5266_v58 = vadd.f32 %v5265_v62, %v5252_v50  ;;  %v5292_v37 = vadd.f32 %v5291_v63, %v5278_v33 }
 0x52c   : > { %v5299_v10 = vmax.f32 %v5292_v37, 0.0 }
 0x52f   : > { %v5279_v6 = vpop.f32.mrf.mxu2 }
 0x530   : > { %v5280_v34 = vadd.f32 %v5279_v6, %v5266_v58  ;;  %v5293_v28 = vpop.f32.mrf.mxu3 }
 0x532   : > { %v5294_v48 = vadd.f32 %v5293_v28, %v5280_v34 }
 0x534   : > { %v5303_v59 = vmax.f32 %v5294_v48, 0.0 }
 0x536   : > { %v5307_v57 = vpack.c.bf16 %v5303_v59, %v5299_v10 }
 0x538   : > { %5618 = vmatmul.bf16.vlgmr.msra.gmra.mxu3 %v5307_v57 }
 0x53f   : > { %v5577_v21 = vpop.f32.mrf.mxu0 }
 0x540   : > { %v5591_v41 = vpop.f32.mrf.mxu1  ;;  %v5578_v12 = vadd.f32 %v8792_v42, %v5577_v21 }
 0x542   : > { %v5592_v56 = vadd.f32 %v5591_v41, %v5578_v12 }
 0x547   : > { %v5579_v11 = vpop.f32.mrf.mxu0 }
 0x548   : > { %v5580_v1 = vadd.f32 %v8792_v42, %v5579_v11  ;;  %v5593_v36 = vpop.f32.mrf.mxu1 }
 0x54a   : > { %v5594_v14 = vadd.f32 %v5593_v36, %v5580_v1 }
 0x57a   : > { %v5605_v40 = vpop.f32.mrf.mxu2 }
 0x57b   : > { %v5606_v32 = vadd.f32 %v5605_v40, %v5592_v56 }
 0x582   : > { %v5607_v29 = vpop.f32.mrf.mxu2 }
 0x583   : > { %v5608_v23 = vadd.f32 %v5607_v29, %v5594_v14 }
 0x5bb   : > { %v5619_v20 = vpop.f32.mrf.mxu3 }
 0x5bc   : > { %v5620_v52 = vadd.f32 %v5619_v20, %v5606_v32 }
 0x5be   : > { %v8122_v13 = vmul.f32 -1.442695, %v5620_v52 }
 0x5c0   : > { %8795 = vpow2.f32 %v8122_v13 }
 0x5c3   : > { %v5621_v17 = vpop.f32.mrf.mxu3 }
 0x5c4   : > { %v5622_v22 = vadd.f32 %v5621_v17, %v5608_v23 }
 0x5c6   : > { %v8796_v24 = vpop.eup %8795  ;;  %v8123_v35 = vmul.f32 -1.442695, %v5622_v22 }
 0x5c7   : > { %v5630_v26 = vadd.f32 1.0, %v8796_v24 }
 0x5c8   : > { %8797 = vpow2.f32 %v8123_v35 }
 0x5c9   : > { %8799 = vrcp.f32 %v5630_v26  ;;  %v5643_v44 = vand.u32 2147483648, %v5630_v26  ;;  %v5641_v55 = vand.u32 2147483647, %v5630_v26  ;;  %vm5637_vm1 = vweird.f32 %v5630_v26 }
 0x5cb   : > { %v5644_v3 = vor.u32 1.1754944e-38, %v5643_v44  ;;  %vm5642_vm3 = vcmp.eq.f32.partialorder %v5641_v55, 8.507059e+37 }
 0x5ce   : > { %v8798_v27 = vpop.eup %8797 }
 0x5cf   : > { %v8800_v31 = vpop.eup %8799  ;;  %v5631_v45 = vadd.f32 1.0, %v8798_v27 }
 0x5d0   : > { %v5633_v43 = vmul.f32 %v8800_v31, %v5630_v26  ;;  %vm5638_vm0 = vweird.f32 %v8800_v31 }
 0x5d1   : > { %8801 = vrcp.f32 %v5631_v45  ;;  %vm5639_vm2 = vmor %vm5637_vm1, %vm5638_vm0  ;;  %v5658_v19 = vand.u32 2147483648, %v5631_v45  ;;  %v5656_v18 = vand.u32 2147483647, %v5631_v45  ;;  %vm5652_vm6 = vweird.f32 %v5631_v45 }
 0x5d2   : > { %v5634_v7 = vsub.f32 1.0, %v5633_v43 }
 0x5d3   : > { %v5659_v49 = vor.u32 1.1754944e-38, %v5658_v19  ;;  %vm5657_vm8 = vcmp.eq.f32.partialorder %v5656_v18, 8.507059e+37 }
 0x5d4   : > { %v5635_v54 = vmul.f32 %v8800_v31, %v5634_v7 }
 0x5d6   : > { %v5636_v60 = vadd.f32 %v8800_v31, %v5635_v54 }
 0x5d7   : > { %v8802_v2 = vpop.eup %8801 }
 0x5d8   : > { %v5640_v4 = vsel %vm5639_vm2, %v8800_v31, %v5636_v60  ;;  %v5648_v0 = vmul.f32 %v8802_v2, %v5631_v45  ;;  %vm5653_vm5 = vweird.f32 %v8802_v2 }
 0x5d9   : > { %v5645_v8 = vsel %vm5642_vm3, %v5644_v3, %v5640_v4  ;;  %vm5654_vm7 = vmor %vm5652_vm6, %vm5653_vm5 }
 0x5da   : > { %v5666_v15 = vmul.f32 %v8793_v47, %v5645_v8  ;;  %v5649_v16 = vsub.f32 1.0, %v5648_v0 }
 0x5dc   : > { %v5669_v51 = vsel %vm5668_vm4, %v5666_v15, 0.0  ;;  %v5650_v46 = vmul.f32 %v8802_v2, %v5649_v16 }
 0x5dd   : > { %5670 = vadd.xlane.f32.xlu0 %v5669_v51 }
 0x5de   : > { %v5651_v61 = vadd.f32 %v8802_v2, %v5650_v46 }
 0x5e0   : > { %v5655_v30 = vsel %vm5654_vm7, %v8802_v2, %v5651_v61 }
 0x5e1   : > { %v5660_v25 = vsel %vm5657_vm8, %v5659_v49, %v5655_v30 }
 0x5e2   : > { %v5667_v9 = vmul.f32 %v8793_v47, %v5660_v25 }
 0x5e4   : > { %v5672_v38 = vsel %vm5668_vm4, %v5667_v9, 0.0 }
 0x5e5   : > { %5673 = vadd.xlane.f32.xlu0 %v5672_v38 }
 0x650   : > { %v5671_v63 = vpop.xlane.xlu0 %5670 }
 0x651   : > { %v5679_v39 = vadd.f32 %v8794_v53, %v5671_v63 }
 0x653   : > { %v8124_v5 = vmul.f32 -1.442695, %v5679_v39 }
 0x655   : > { %8803 = vpow2.f32 %v8124_v5 }
 0x658   : > { %v5674_v50 = vpop.xlane.xlu0 %5673 }
 0x659   : > { %v5680_v33 = vadd.f32 %v8794_v53, %v5674_v50 }
 0x65b   : > { %v8804_v62 = vpop.eup %8803  ;;  %v8125_v58 = vmul.f32 -1.442695, %v5680_v33 }
 0x65c   : > { %v5687_v6 = vadd.f32 1.0, %v8804_v62 }
 0x65d   : > { %8805 = vpow2.f32 %v8125_v58 }
 0x65e   : > { %8807 = vrcp.f32 %v5687_v6  ;;  %v5700_v59 = vand.u32 2147483648, %v5687_v6  ;;  %v5698_v21 = vand.u32 2147483647, %v5687_v6  ;;  %vm5694_vm10 = vweird.f32 %v5687_v6 }
 0x660   : > { %v5701_v12 = vor.u32 1.1754944e-38, %v5700_v59  ;;  %vm5699_vm13 = vcmp.eq.f32.partialorder %v5698_v21, 8.507059e+37 }
 0x663   : > { %v8806_v37 = vpop.eup %8805 }
 0x664   : > { %v8808_v34 = vpop.eup %8807  ;;  %v5688_v28 = vadd.f32 1.0, %v8806_v37 }
 0x665   : > { %v5690_v48 = vmul.f32 %v8808_v34, %v5687_v6  ;;  %vm5695_vm9 = vweird.f32 %v8808_v34 }
 0x666   : > { %8809 = vrcp.f32 %v5688_v28  ;;  %vm5696_vm12 = vmor %vm5694_vm10, %vm5695_vm9  ;;  %v5715_v20 = vand.u32 2147483648, %v5688_v28  ;;  %v5713_v52 = vand.u32 2147483647, %v5688_v28  ;;  %vm5709_vm15 = vweird.f32 %v5688_v28 }
 0x667   : > { %v5691_v10 = vsub.f32 1.0, %v5690_v48 }
 0x668   : > { %v5716_v13 = vor.u32 1.1754944e-38, %v5715_v20  ;;  %vm5714_vm1 = vcmp.eq.f32.partialorder %v5713_v52, 8.507059e+37 }
 0x669   : > { %v5692_v57 = vmul.f32 %v8808_v34, %v5691_v10 }
 0x66b   : > { %v5693_v42 = vadd.f32 %v8808_v34, %v5692_v57 }
 0x66c   : > { %v8810_v41 = vpop.eup %8809 }
 0x66d   : > { %v5697_v40 = vsel %vm5696_vm12, %v8808_v34, %v5693_v42  ;;  %v5705_v56 = vmul.f32 %v8810_v41, %v5688_v28  ;;  %vm5710_vm14 = vweird.f32 %v8810_v41 }
 0x66e   : > { %v5702_v11 = vsel %vm5699_vm13, %v5701_v12, %v5697_v40  ;;  %vm5711_vm0 = vmor %vm5709_vm15, %vm5710_vm14 }
 0x66f   : > { %5720 = vst.msk [vmem:[%s11263_s10] sm:$0xff] %vm5719_vm11, %v5702_v11  ;;  %v5706_v32 = vsub.f32 1.0, %v5705_v56 }
 0x671   : > { %v5707_v1 = vmul.f32 %v8810_v41, %v5706_v32 }
 0x673   : > { %v5708_v36 = vadd.f32 %v8810_v41, %v5707_v1 }
 0x675   : > { %v5712_v29 = vsel %vm5711_vm0, %v8810_v41, %v5708_v36 }
 0x676   : > { %v5717_v14 = vsel %vm5714_vm1, %v5716_v13, %v5712_v29 }
 0x677   : > { %5721 = vst.msk [vmem:[%s11263_s10 + $0x8] sm:$0xff] %vm5719_vm11, %v5717_v14 }
 0x678 PF: > { %s28_s20 = sadd.s32 1, %s9051_s20   ;;  %s11911_s22 = sld [smem:[#allocation22_spill]] }
 0x679   : > { %p25_p2 = scmp.ge.s32.totalorder %s28_s20, 4   ;;  %s11912_s24 = sld [smem:[#allocation21_spill]] }
 0x67a   : > { %s11913_s15 = smov %s9035_s16  ;;  %s11914_s16 = smov %s9039_s17 }
 0x67b   : > { %s11916_s18 = smov %s9047_s19  ;;  %27 = sbr.rel (!%p25_p2) target bundleno = 11 (0xb), region = 190 }
 0x67e   : > { %s11915_s17 = smov %s11911_s22 }
 0x67f   : > { %s11917_s19 = smov %s11912_s24 }
 0x680   :  { %5744 = vsyncpa [#allocation8], 1 }
 0x681   :  { %5746 = vsyncpa [#allocation8 + $0x1], 1 }
 0x682   :  { %5747 = vsyncpa [#allocation10], 1 }
 0x683   :  { %5748 = vsyncpa [#allocation13], 1 }
 0x684   :  { %5749 = vsyncpa [#allocation16], 1 }

</bundles_post_ra>
